<compile_context>
chip_gen: v7x
topology: tpu7x:2x2x1
jax: 0.10.0
libtpu: 0.0.40
codegen_flags: <defaults>
</compile_context>

<pallas_src>
import numpy as np
import jax
import jax.numpy as jnp
from jax import lax
from jax.experimental import pallas as pl
from jax.experimental.pallas import tpu as pltpu

# --- small, self-consistent config (mirrors ViT(img_size, patch_size, ...)) ---
IMG = 16
PATCH = 4
EMB = 32
HEADS = 4
HEAD_DIM = EMB // HEADS
NUM_ENC = 2
NUM_CLASSES = 10
N_PATCHES = (IMG // PATCH) ** 2          # 16
SEQ = N_PATCHES + 1                      # 17 (cls token + patches)
SEQ_PAD = 24                             # sublane-aligned per-batch token stride
PATCH_DIM = 3 * PATCH * PATCH            # 48
MLP_HIDDEN = EMB * 4
EPS = 1e-5                               # PyTorch LayerNorm default
HEAD_PAD = 128                           # lane-padded logits width
NEG_BIG = -1e30


def _layernorm(v, g, b):
    mu = jnp.mean(v, axis=-1, keepdims=True)
    var = jnp.mean((v - mu) ** 2, axis=-1, keepdims=True)
    return (v - mu) * lax.rsqrt(var + EPS) * g + b


def _erf(x):
    # Abramowitz & Stegun 7.1.26 (max abs err ~1.5e-7): exact-GELU support
    # without relying on a native erf lowering; uses only exp/mul/add/select.
    a1, a2, a3, a4, a5 = (0.254829592, -0.284496736, 1.421413741,
                          -1.453152027, 1.061405429)
    p = 0.3275911
    s = jnp.where(x >= 0, 1.0, -1.0).astype(jnp.float32)
    ax = jnp.abs(x)
    t = 1.0 / (1.0 + p * ax)
    poly = ((((a5 * t + a4) * t + a3) * t + a2) * t + a1) * t
    return s * (1.0 - poly * jnp.exp(-ax * ax))


def _gelu_exact(x):
    return 0.5 * x * (1.0 + _erf(x * np.float32(0.7071067811865476)))


# ------------------------------ fused ViT kernel ------------------------------
def vit_kernel(p_ref, wp_ref, bp_ref, cls_ref, pos_ref,
               g1_ref, be1_ref, wqkv_ref, bqkv_ref, wo_ref, bo_ref,
               g2_ref, be2_ref, w1_ref, bm1_ref, w2_ref, bm2_ref,
               hg_ref, hb_ref, hw1_ref, hb1_ref, hw2_ref, hb2_ref,
               o_ref, tok_ref):
    TB = tok_ref.shape[0]
    R = TB * SEQ_PAD

    # ---- patch embedding: Conv2d(stride=patch) == per-patch matmul ----
    patches = p_ref[...].reshape(TB * N_PATCHES, PATCH_DIM)           # bf16
    proj = jnp.dot(patches, wp_ref[...],
                   preferred_element_type=jnp.float32) + bp_ref[...]  # (TB*16,E)

    cls_tok = cls_ref[...] + pos_ref[0:1, :]                          # (1, E)
    tok_ref[:, 0:1, :] = jnp.broadcast_to(cls_tok.reshape(1, 1, EMB), (TB, 1, EMB))
    tok_ref[:, 1:SEQ, :] = (proj.reshape(TB, N_PATCHES, EMB)
                            + pos_ref[1:SEQ, :][None])
    tok_ref[:, SEQ:SEQ_PAD, :] = jnp.zeros((TB, SEQ_PAD - SEQ, EMB), jnp.float32)

    x = tok_ref[...].reshape(R, EMB)                                  # (TB*24, E) f32

    # key-padding bias: pad key positions (SEQ..SEQ_PAD-1) get -1e30
    k_idx = lax.broadcasted_iota(jnp.int32, (1, 1, SEQ_PAD), 2)
    key_bias = jnp.where(k_idx < SEQ, jnp.float32(0.0), jnp.float32(NEG_BIG))

    # ---- transformer encoder blocks (weights stacked on leading axis) ----
    for l in range(NUM_ENC):                       # static unroll, NUM_ENC=2
        n1 = _layernorm(x, g1_ref[l], be1_ref[l])
        # fused QKV projection; 1/sqrt(head_dim) folded into wq/bq at init
        qkv = jnp.dot(n1.astype(jnp.bfloat16), wqkv_ref[l],
                      preferred_element_type=jnp.float32) + bqkv_ref[l]
        qkv3 = qkv.reshape(TB, SEQ_PAD, 3 * EMB)

        ctx_heads = []
        for h in range(HEADS):                     # 4 iterations, batched over TB
            q = qkv3[:, :, h * HEAD_DIM:(h + 1) * HEAD_DIM].astype(jnp.bfloat16)
            k = qkv3[:, :, EMB + h * HEAD_DIM:
                     EMB + (h + 1) * HEAD_DIM].astype(jnp.bfloat16)
            v = qkv3[:, :, 2 * EMB + h * HEAD_DIM:
                     2 * EMB + (h + 1) * HEAD_DIM].astype(jnp.bfloat16)
            s = jnp.einsum('bqd,bkd->bqk', q, k,
                           preferred_element_type=jnp.float32) + key_bias
            m = jnp.max(s, axis=-1, keepdims=True)
            e = jnp.exp(s - m)
            probs = e / jnp.sum(e, axis=-1, keepdims=True)
            ctx_heads.append(
                jnp.einsum('bqk,bkd->bqd', probs.astype(jnp.bfloat16), v,
                           preferred_element_type=jnp.float32))
        ctx = jnp.concatenate(ctx_heads, axis=-1).reshape(R, EMB)

        attn = jnp.dot(ctx.astype(jnp.bfloat16), wo_ref[l],
                       preferred_element_type=jnp.float32) + bo_ref[l]
        res1 = attn + x
        n2 = _layernorm(res1, g2_ref[l], be2_ref[l])
        h1 = jnp.dot(n2.astype(jnp.bfloat16), w1_ref[l],
                     preferred_element_type=jnp.float32) + bm1_ref[l]
        h1 = _gelu_exact(h1)                       # exact (erf) GELU, as nn.GELU()
        # TODO(synk): nn.Dropout omitted (eval-mode identity; stochastic dropout
        # not reproduced).
        mlp = jnp.dot(h1.astype(jnp.bfloat16), w2_ref[l],
                      preferred_element_type=jnp.float32) + bm2_ref[l]
        x = mlp + res1

    # ---- MLP head on the cls tokens (row 0 of every SEQ_PAD block) ----
    cls_rows = x.reshape(TB, SEQ_PAD, EMB)[:, 0:1, :].reshape(TB, EMB)
    n = _layernorm(cls_rows, hg_ref[...], hb_ref[...])
    hh = jnp.dot(n.astype(jnp.bfloat16), hw1_ref[...],
                 preferred_element_type=jnp.float32) + hb1_ref[...]
    logits = jnp.dot(hh.astype(jnp.bfloat16), hw2_ref[...],
                     preferred_element_type=jnp.float32) + hb2_ref[...]
    o_ref[...] = logits.reshape(TB, 1, HEAD_PAD)


# ------------------------------ parameter init -------------------------------
def init_params(key):
    ks = jax.random.split(key, 64)
    cnt = iter(range(64))

    def nrm(shape, scale=0.02):
        return scale * jax.random.normal(ks[next(cnt)], shape, jnp.float32)

    params = {}
    # Conv2d(3, EMB, kernel=PATCH, stride=PATCH) as a (PATCH_DIM, EMB) matmul.
    conv_w = nrm((EMB, 3, PATCH, PATCH))
    conv_b = nrm((EMB,))
    params['wp'] = conv_w.reshape(EMB, PATCH_DIM).T.astype(jnp.bfloat16)
    params['bp'] = conv_b.reshape(1, EMB)
    params['cls'] = jax.random.normal(ks[next(cnt)], (1, EMB), jnp.float32)

    # sinusoidal positional embeddings (get_positional_embeddings)
    pos = np.zeros((SEQ, EMB), np.float32)
    position = np.arange(SEQ, dtype=np.float32)[:, None]
    div_term = np.exp(np.arange(0, EMB, 2, dtype=np.float32) * -(np.log(10000.0) / EMB))
    pos[:, 0::2] = np.sin(position * div_term)
    pos[:, 1::2] = np.cos(position * div_term)
    params['pos'] = jnp.asarray(pos)

    inv_scale = np.float32(1.0 / np.sqrt(HEAD_DIM))

    g1, b1, wqkv, bqkv, wo, bo, g2, b2, w1, bm1, w2, bm2 = ([] for _ in range(12))
    for _ in range(NUM_ENC):
        g1.append(jnp.ones((1, EMB), jnp.float32))
        b1.append(jnp.zeros((1, EMB), jnp.float32))
        # torch Linear weight: (out, in); y = x @ W.T + b
        wq, bq = nrm((EMB, EMB)), nrm((EMB,))
        wk, bk = nrm((EMB, EMB)), nrm((EMB,))
        wv, bv = nrm((EMB, EMB)), nrm((EMB,))
        # fold 1/sqrt(head_dim) into the query projection (weight AND bias)
        wqkv.append(jnp.concatenate([wq.T * inv_scale, wk.T, wv.T], axis=1))   # (E, 3E)
        bqkv.append(jnp.concatenate([bq * inv_scale, bk, bv]).reshape(1, 3 * EMB))
        wo_t, bo_t = nrm((EMB, EMB)), nrm((EMB,))
        wo.append(wo_t.T)                     # (E, E), input = concat head ctx
        bo.append(bo_t.reshape(1, EMB))
        g2.append(jnp.ones((1, EMB), jnp.float32))
        b2.append(jnp.zeros((1, EMB), jnp.float32))
        w1_t, b1_t = nrm((MLP_HIDDEN, EMB)), nrm((MLP_HIDDEN,))
        w2_t, b2_t = nrm((EMB, MLP_HIDDEN)), nrm((EMB,))
        w1.append(w1_t.T); bm1.append(b1_t.reshape(1, MLP_HIDDEN))
        w2.append(w2_t.T); bm2.append(b2_t.reshape(1, EMB))

    params['g1'] = jnp.stack(g1); params['b1'] = jnp.stack(b1)
    params['wqkv'] = jnp.stack(wqkv).astype(jnp.bfloat16)
    params['bqkv'] = jnp.stack(bqkv)
    params['wo'] = jnp.stack(wo).astype(jnp.bfloat16)
    params['bo'] = jnp.stack(bo)
    params['g2'] = jnp.stack(g2); params['b2'] = jnp.stack(b2)
    params['w1'] = jnp.stack(w1).astype(jnp.bfloat16)
    params['bm1'] = jnp.stack(bm1)
    params['w2'] = jnp.stack(w2).astype(jnp.bfloat16)
    params['bm2'] = jnp.stack(bm2)

    params['hg'] = jnp.ones((1, EMB), jnp.float32)
    params['hb'] = jnp.zeros((1, EMB), jnp.float32)
    hw1, hb1 = nrm((EMB, EMB)), nrm((EMB,))
    hw2, hb2 = nrm((NUM_CLASSES, EMB)), nrm((NUM_CLASSES,))
    params['hw1'] = hw1.T.astype(jnp.bfloat16)
    params['hb1'] = hb1.reshape(1, EMB)
    # lane-padded final projection: (E, 128) with real weights in cols [:10]
    hw2_pad = jnp.zeros((EMB, HEAD_PAD), jnp.float32).at[:, :NUM_CLASSES].set(hw2.T)
    hb2_pad = jnp.zeros((1, HEAD_PAD), jnp.float32).at[0, :NUM_CLASSES].set(hb2)
    params['hw2'] = hw2_pad.astype(jnp.bfloat16)
    params['hb2'] = hb2_pad
    return params


# --------------------------------- forward -----------------------------------
def _choose_tb(B):
    # Up to 32 batch elems per grid step (32*SEQ_PAD = 768 token rows: 3x256 MXU
    # passes on v6e/v7x, 6x128 on v5e).  Keep >= 2 grid steps when possible so
    # both v7x TensorCores get work on the "parallel" axis.  Must divide B.
    cap = max(1, B // 2)
    for cand in (32, 16, 8, 4, 2, 1):
        if cand <= cap and B % cand == 0:
            return cand
    return 1


def vit_forward(x, params):
    B = x.shape[0]
    TB = _choose_tb(B)
    # glue: extract non-overlapping PATCHxPATCH patches from NCHW, flatten to
    # (cin, kh, kw) per patch -> matches Conv2d(stride=patch) as a matmul, and
    # patch order (h, w) matches rearrange 'b c h w -> b (h w) c'.
    hp = IMG // PATCH
    p = x.reshape(B, 3, hp, PATCH, hp, PATCH)
    p = p.transpose(0, 2, 4, 1, 3, 5).reshape(B, N_PATCHES, PATCH_DIM)
    p = p.astype(jnp.bfloat16)      # kernel consumes it in bf16: halve the DMA

    args = (p,
            params['wp'], params['bp'], params['cls'], params['pos'],
            params['g1'], params['b1'], params['wqkv'], params['bqkv'],
            params['wo'], params['bo'], params['g2'], params['b2'],
            params['w1'], params['bm1'], params['w2'], params['bm2'],
            params['hg'], params['hb'], params['hw1'], params['hb1'],
            params['hw2'], params['hb2'])

    def rep(a):  # whole array, replicated across the batch grid
        nd = a.ndim
        return pl.BlockSpec(a.shape, lambda i, _nd=nd: (0,) * _nd)

    in_specs = [pl.BlockSpec((TB, N_PATCHES, PATCH_DIM), lambda i: (i, 0, 0))] + \
               [rep(a) for a in args[1:]]

    out = pl.pallas_call(
        vit_kernel,
        out_shape=jax.ShapeDtypeStruct((B, 1, HEAD_PAD), jnp.float32),
        grid_spec=pltpu.PrefetchScalarGridSpec(
            num_scalar_prefetch=0,
            grid=(B // TB,),
            in_specs=in_specs,
            out_specs=pl.BlockSpec((TB, 1, HEAD_PAD), lambda i: (i, 0, 0)),
            scratch_shapes=[pltpu.VMEM((TB, SEQ_PAD, EMB), jnp.float32)],  # tokens
        ),
        compiler_params=pltpu.CompilerParams(
            dimension_semantics=("parallel",)),
    )(*args)
    return out.reshape(B, HEAD_PAD)[:, :NUM_CLASSES]


if __name__ == "__main__":
    key = jax.random.PRNGKey(0)
    kx, kp = jax.random.split(key)
    x = jax.random.normal(kx, (2, 3, IMG, IMG), jnp.float32)   # NCHW, like PyTorch
    params = init_params(kp)

    out = jax.jit(vit_forward)(x, params)
    out = jax.block_until_ready(out)
    assert out.shape == (2, NUM_CLASSES) and out.dtype == jnp.float32
    assert bool(jnp.all(jnp.isfinite(out)))
    print("KERNEL_OK")
</pallas_src>

<mosaic_0001>
module attributes {stable_mosaic.version = 11 : i64} {
  func.func @vit_kernel(%arg0: i32, %arg1: memref<1x16x48xbf16, #tpu.memory_space<vmem>>, %arg2: memref<48x32xbf16, #tpu.memory_space<vmem>>, %arg3: memref<1x32xf32, #tpu.memory_space<vmem>>, %arg4: memref<1x32xf32, #tpu.memory_space<vmem>>, %arg5: memref<17x32xf32, #tpu.memory_space<vmem>>, %arg6: memref<2x1x32xf32, #tpu.memory_space<vmem>>, %arg7: memref<2x1x32xf32, #tpu.memory_space<vmem>>, %arg8: memref<2x32x96xbf16, #tpu.memory_space<vmem>>, %arg9: memref<2x1x96xf32, #tpu.memory_space<vmem>>, %arg10: memref<2x32x32xbf16, #tpu.memory_space<vmem>>, %arg11: memref<2x1x32xf32, #tpu.memory_space<vmem>>, %arg12: memref<2x1x32xf32, #tpu.memory_space<vmem>>, %arg13: memref<2x1x32xf32, #tpu.memory_space<vmem>>, %arg14: memref<2x32x128xbf16, #tpu.memory_space<vmem>>, %arg15: memref<2x1x128xf32, #tpu.memory_space<vmem>>, %arg16: memref<2x128x32xbf16, #tpu.memory_space<vmem>>, %arg17: memref<2x1x32xf32, #tpu.memory_space<vmem>>, %arg18: memref<1x32xf32, #tpu.memory_space<vmem>>, %arg19: memref<1x32xf32, #tpu.memory_space<vmem>>, %arg20: memref<32x32xbf16, #tpu.memory_space<vmem>>, %arg21: memref<1x32xf32, #tpu.memory_space<vmem>>, %arg22: memref<32x128xbf16, #tpu.memory_space<vmem>>, %arg23: memref<1x128xf32, #tpu.memory_space<vmem>>, %arg24: memref<1x1x128xf32, #tpu.memory_space<vmem>>, %arg25: memref<1x24x32xf32, #tpu.memory_space<vmem>>) attributes {dimension_semantics = [#tpu.dimension_semantics<parallel>], iteration_bounds = array<i64: 2>, scalar_prefetch = 0 : i64, scratch_operands = 1 : i64, tpu.core_type = #tpu.core_type<tc>, window_params = [{transform_indices = @transform_0, window_bounds = array<i64: 1, 16, 48>}, {pipeline_mode = #tpu.pipeline_mode<synchronous>, transform_indices = @transform_1, window_bounds = array<i64: 48, 32>}, {pipeline_mode = #tpu.pipeline_mode<synchronous>, transform_indices = @transform_2, window_bounds = array<i64: 1, 32>}, {pipeline_mode = #tpu.pipeline_mode<synchronous>, transform_indices = @transform_3, window_bounds = array<i64: 1, 32>}, {pipeline_mode = #tpu.pipeline_mode<synchronous>, transform_indices = @transform_4, window_bounds = array<i64: 17, 32>}, {pipeline_mode = #tpu.pipeline_mode<synchronous>, transform_indices = @transform_5, window_bounds = array<i64: 2, 1, 32>}, {pipeline_mode = #tpu.pipeline_mode<synchronous>, transform_indices = @transform_6, window_bounds = array<i64: 2, 1, 32>}, {pipeline_mode = #tpu.pipeline_mode<synchronous>, transform_indices = @transform_7, window_bounds = array<i64: 2, 32, 96>}, {pipeline_mode = #tpu.pipeline_mode<synchronous>, transform_indices = @transform_8, window_bounds = array<i64: 2, 1, 96>}, {pipeline_mode = #tpu.pipeline_mode<synchronous>, transform_indices = @transform_9, window_bounds = array<i64: 2, 32, 32>}, {pipeline_mode = #tpu.pipeline_mode<synchronous>, transform_indices = @transform_10, window_bounds = array<i64: 2, 1, 32>}, {pipeline_mode = #tpu.pipeline_mode<synchronous>, transform_indices = @transform_11, window_bounds = array<i64: 2, 1, 32>}, {pipeline_mode = #tpu.pipeline_mode<synchronous>, transform_indices = @transform_12, window_bounds = array<i64: 2, 1, 32>}, {pipeline_mode = #tpu.pipeline_mode<synchronous>, transform_indices = @transform_13, window_bounds = array<i64: 2, 32, 128>}, {pipeline_mode = #tpu.pipeline_mode<synchronous>, transform_indices = @transform_14, window_bounds = array<i64: 2, 1, 128>}, {pipeline_mode = #tpu.pipeline_mode<synchronous>, transform_indices = @transform_15, window_bounds = array<i64: 2, 128, 32>}, {pipeline_mode = #tpu.pipeline_mode<synchronous>, transform_indices = @transform_16, window_bounds = array<i64: 2, 1, 32>}, {pipeline_mode = #tpu.pipeline_mode<synchronous>, transform_indices = @transform_17, window_bounds = array<i64: 1, 32>}, {pipeline_mode = #tpu.pipeline_mode<synchronous>, transform_indices = @transform_18, window_bounds = array<i64: 1, 32>}, {pipeline_mode = #tpu.pipeline_mode<synchronous>, transform_indices = @transform_19, window_bounds = array<i64: 32, 32>}, {pipeline_mode = #tpu.pipeline_mode<synchronous>, transform_indices = @transform_20, window_bounds = array<i64: 1, 32>}, {pipeline_mode = #tpu.pipeline_mode<synchronous>, transform_indices = @transform_21, window_bounds = array<i64: 32, 128>}, {pipeline_mode = #tpu.pipeline_mode<synchronous>, transform_indices = @transform_22, window_bounds = array<i64: 1, 128>}, {transform_indices = @transform_23, window_bounds = array<i64: 1, 1, 128>}]} {
    %c0 = arith.constant 0 : index
    %c0_0 = arith.constant 0 : index
    %c0_1 = arith.constant 0 : index
    %0 = vector.load %arg1[%c0, %c0_0, %c0_1] : memref<1x16x48xbf16, #tpu.memory_space<vmem>>, vector<1x16x48xbf16>
    %1 = vector.shape_cast %0 : vector<1x16x48xbf16> to vector<16x48xbf16>
    %c0_2 = arith.constant 0 : index
    %c0_3 = arith.constant 0 : index
    %2 = vector.load %arg2[%c0_2, %c0_3] : memref<48x32xbf16, #tpu.memory_space<vmem>>, vector<48x32xbf16>
    %cst = arith.constant dense<0.000000e+00> : vector<16x32xf32>
    %3 = tpu.matmul %1, %2, %cst {dimension_numbers = #tpu.dot_dimension_numbers<[1], [0], [0], [1], [0, 0, 1, 1], [], []>} : vector<16x48xbf16>, vector<48x32xbf16>, vector<16x32xf32> -> vector<16x32xf32>
    %c0_4 = arith.constant 0 : index
    %c0_5 = arith.constant 0 : index
    %4 = vector.load %arg3[%c0_4, %c0_5] : memref<1x32xf32, #tpu.memory_space<vmem>>, vector<1x32xf32>
    %5 = vector.broadcast %4 : vector<1x32xf32> to vector<16x32xf32>
    %6 = arith.addf %3, %5 : vector<16x32xf32>
    %c0_6 = arith.constant 0 : index
    %c0_7 = arith.constant 0 : index
    %7 = vector.load %arg4[%c0_6, %c0_7] : memref<1x32xf32, #tpu.memory_space<vmem>>, vector<1x32xf32>
    %c0_8 = arith.constant 0 : index
    %c0_9 = arith.constant 0 : index
    %8 = vector.load %arg5[%c0_8, %c0_9] : memref<17x32xf32, #tpu.memory_space<vmem>>, vector<1x32xf32>
    %9 = arith.addf %7, %8 : vector<1x32xf32>
    %10 = vector.shape_cast %9 : vector<1x32xf32> to vector<1x1x32xf32>
    %c0_10 = arith.constant 0 : index
    %c0_11 = arith.constant 0 : index
    %c0_12 = arith.constant 0 : index
    %11 = vector.load %arg25[%c0_10, %c0_11, %c0_12] : memref<1x24x32xf32, #tpu.memory_space<vmem>>, vector<1x1x32xf32>
    tpu.vector_store %arg25[%c0_10, %c0_11, %c0_12], %10 {strides = array<i32>} : memref<1x24x32xf32, #tpu.memory_space<vmem>>, vector<1x1x32xf32>,
    %12 = vector.shape_cast %6 : vector<16x32xf32> to vector<1x16x32xf32>
    %c1 = arith.constant 1 : index
    %c0_13 = arith.constant 0 : index
    %13 = vector.load %arg5[%c1, %c0_13] : memref<17x32xf32, #tpu.memory_space<vmem>>, vector<16x32xf32>
    %14 = vector.shape_cast %13 : vector<16x32xf32> to vector<1x16x32xf32>
    %15 = arith.addf %12, %14 : vector<1x16x32xf32>
    %c0_14 = arith.constant 0 : index
    %c1_15 = arith.constant 1 : index
    %c0_16 = arith.constant 0 : index
    %16 = vector.load %arg25[%c0_14, %c1_15, %c0_16] : memref<1x24x32xf32, #tpu.memory_space<vmem>>, vector<1x16x32xf32>
    tpu.vector_store %arg25[%c0_14, %c1_15, %c0_16], %15 {strides = array<i32>} : memref<1x24x32xf32, #tpu.memory_space<vmem>>, vector<1x16x32xf32>,
    %cst_17 = arith.constant 0.000000e+00 : f32
    %17 = vector.broadcast %cst_17 : f32 to vector<1x7x32xf32>
    %c0_18 = arith.constant 0 : index
    %c17 = arith.constant 17 : index
    %c0_19 = arith.constant 0 : index
    %18 = vector.load %arg25[%c0_18, %c17, %c0_19] : memref<1x24x32xf32, #tpu.memory_space<vmem>>, vector<1x7x32xf32>
    tpu.vector_store %arg25[%c0_18, %c17, %c0_19], %17 {strides = array<i32>} : memref<1x24x32xf32, #tpu.memory_space<vmem>>, vector<1x7x32xf32>,
    %c0_20 = arith.constant 0 : index
    %c0_21 = arith.constant 0 : index
    %c0_22 = arith.constant 0 : index
    %19 = vector.load %arg25[%c0_20, %c0_21, %c0_22] : memref<1x24x32xf32, #tpu.memory_space<vmem>>, vector<1x24x32xf32>
    %20 = vector.shape_cast %19 : vector<1x24x32xf32> to vector<24x32xf32>
    %21 = tpu.iota {dimensions = array<i32: 2>} : vector<1x1x24xi32>
    %c17_i32 = arith.constant 17 : i32
    %22 = vector.broadcast %c17_i32 : i32 to vector<1x1x24xi32>
    %23 = arith.cmpi slt, %21, %22 : vector<1x1x24xi32>
    %cst_23 = arith.constant 0.000000e+00 : f32
    %cst_24 = arith.constant -1.000000e+30 : f32
    %24 = vector.broadcast %cst_23 : f32 to vector<1x1x24xf32>
    %25 = vector.broadcast %cst_24 : f32 to vector<1x1x24xf32>
    %26 = arith.select %23, %24, %25 : vector<1x1x24xi1>, vector<1x1x24xf32>
    %c0_25 = arith.constant 0 : index
    %c0_26 = arith.constant 0 : index
    %c0_27 = arith.constant 0 : index
    %27 = vector.load %arg6[%c0_25, %c0_26, %c0_27] : memref<2x1x32xf32, #tpu.memory_space<vmem>>, vector<1x1x32xf32>
    %28 = vector.shape_cast %27 : vector<1x1x32xf32> to vector<1x32xf32>
    %c0_28 = arith.constant 0 : index
    %c0_29 = arith.constant 0 : index
    %c0_30 = arith.constant 0 : index
    %29 = vector.load %arg7[%c0_28, %c0_29, %c0_30] : memref<2x1x32xf32, #tpu.memory_space<vmem>>, vector<1x1x32xf32>
    %30 = vector.shape_cast %29 : vector<1x1x32xf32> to vector<1x32xf32>
    %cst_31 = arith.constant dense<0.000000e+00> : vector<24xf32>
    %31 = vector.multi_reduction <add>, %20, %cst_31 [1] : vector<24x32xf32> to vector<24xf32>
    %32 = vector.shape_cast %31 : vector<24xf32> to vector<24x1xf32>
    %cst_32 = arith.constant 3.200000e+01 : f32
    %33 = vector.broadcast %cst_32 : f32 to vector<24x1xf32>
    %34 = arith.divf %32, %33 : vector<24x1xf32>
    %35 = vector.broadcast %34 : vector<24x1xf32> to vector<24x32xf32>
    %36 = arith.subf %20, %35 : vector<24x32xf32>
    %37 = arith.mulf %36, %36 : vector<24x32xf32>
    %cst_33 = arith.constant dense<0.000000e+00> : vector<24xf32>
    %38 = vector.multi_reduction <add>, %37, %cst_33 [1] : vector<24x32xf32> to vector<24xf32>
    %39 = vector.shape_cast %38 : vector<24xf32> to vector<24x1xf32>
    %cst_34 = arith.constant 3.200000e+01 : f32
    %40 = vector.broadcast %cst_34 : f32 to vector<24x1xf32>
    %41 = arith.divf %39, %40 : vector<24x1xf32>
    %42 = vector.broadcast %34 : vector<24x1xf32> to vector<24x32xf32>
    %43 = arith.subf %20, %42 : vector<24x32xf32>
    %cst_35 = arith.constant 9.99999974E-6 : f32
    %44 = vector.broadcast %cst_35 : f32 to vector<24x1xf32>
    %45 = arith.addf %41, %44 : vector<24x1xf32>
    %46 = math.rsqrt %45 : vector<24x1xf32>
    %47 = vector.broadcast %46 : vector<24x1xf32> to vector<24x32xf32>
    %48 = arith.mulf %43, %47 : vector<24x32xf32>
    %49 = vector.broadcast %28 : vector<1x32xf32> to vector<24x32xf32>
    %50 = arith.mulf %48, %49 : vector<24x32xf32>
    %51 = vector.broadcast %30 : vector<1x32xf32> to vector<24x32xf32>
    %52 = arith.addf %50, %51 : vector<24x32xf32>
    %53 = arith.truncf %52 : vector<24x32xf32> to vector<24x32xbf16>
    %c0_36 = arith.constant 0 : index
    %c0_37 = arith.constant 0 : index
    %c0_38 = arith.constant 0 : index
    %54 = vector.load %arg8[%c0_36, %c0_37, %c0_38] : memref<2x32x96xbf16, #tpu.memory_space<vmem>>, vector<1x32x96xbf16>
    %55 = vector.shape_cast %54 : vector<1x32x96xbf16> to vector<32x96xbf16>
    %cst_39 = arith.constant dense<0.000000e+00> : vector<24x96xf32>
    %56 = tpu.matmul %53, %55, %cst_39 {dimension_numbers = #tpu.dot_dimension_numbers<[1], [0], [0], [1], [0, 0, 1, 1], [], []>} : vector<24x32xbf16>, vector<32x96xbf16>, vector<24x96xf32> -> vector<24x96xf32>
    %c0_40 = arith.constant 0 : index
    %c0_41 = arith.constant 0 : index
    %c0_42 = arith.constant 0 : index
    %57 = vector.load %arg9[%c0_40, %c0_41, %c0_42] : memref<2x1x96xf32, #tpu.memory_space<vmem>>, vector<1x1x96xf32>
    %58 = vector.shape_cast %57 : vector<1x1x96xf32> to vector<1x96xf32>
    %59 = vector.broadcast %58 : vector<1x96xf32> to vector<24x96xf32>
    %60 = arith.addf %56, %59 : vector<24x96xf32>
    %61 = vector.shape_cast %60 : vector<24x96xf32> to vector<1x24x96xf32>
    %62 = vector.extract_strided_slice %61 {offsets = [0, 0, 0], sizes = [1, 24, 8], strides = [1, 1, 1]} : vector<1x24x96xf32> to vector<1x24x8xf32>
    %63 = arith.truncf %62 : vector<1x24x8xf32> to vector<1x24x8xbf16>
    %64 = vector.extract_strided_slice %61 {offsets = [0, 0, 32], sizes = [1, 24, 8], strides = [1, 1, 1]} : vector<1x24x96xf32> to vector<1x24x8xf32>
    %65 = arith.truncf %64 : vector<1x24x8xf32> to vector<1x24x8xbf16>
    %66 = vector.extract_strided_slice %61 {offsets = [0, 0, 64], sizes = [1, 24, 8], strides = [1, 1, 1]} : vector<1x24x96xf32> to vector<1x24x8xf32>
    %67 = arith.truncf %66 : vector<1x24x8xf32> to vector<1x24x8xbf16>
    "tpu.trace_start"() <{level = 10 : i32, message = "bqd,bkd->bqk"}> : () -> ()
    %cst_43 = arith.constant dense<0.000000e+00> : vector<1x24x24xf32>
    %68 = tpu.matmul %63, %65, %cst_43 {dimension_numbers = #tpu.dot_dimension_numbers<[2], [2], [1], [1], [0, 0, 0, 1, 1, 1], [0], [0]>} : vector<1x24x8xbf16>, vector<1x24x8xbf16>, vector<1x24x24xf32> -> vector<1x24x24xf32>
    "tpu.trace_stop"() : () -> ()
    %69 = vector.broadcast %26 : vector<1x1x24xf32> to vector<1x24x24xf32>
    %70 = arith.addf %68, %69 : vector<1x24x24xf32>
    %cst_44 = arith.constant dense<0xFF800000> : vector<1x24xf32>
    %71 = vector.multi_reduction <maximumf>, %70, %cst_44 [2] : vector<1x24x24xf32> to vector<1x24xf32>
    %72 = vector.shape_cast %71 : vector<1x24xf32> to vector<1x24x1xf32>
    %73 = vector.broadcast %72 : vector<1x24x1xf32> to vector<1x24x24xf32>
    %74 = arith.subf %70, %73 : vector<1x24x24xf32>
    %75 = math.exp %74 : vector<1x24x24xf32>
    %cst_45 = arith.constant dense<0.000000e+00> : vector<1x24xf32>
    %76 = vector.multi_reduction <add>, %75, %cst_45 [2] : vector<1x24x24xf32> to vector<1x24xf32>
    %77 = vector.shape_cast %76 : vector<1x24xf32> to vector<1x24x1xf32>
    %78 = vector.broadcast %77 : vector<1x24x1xf32> to vector<1x24x24xf32>
    %79 = arith.divf %75, %78 : vector<1x24x24xf32>
    %80 = arith.truncf %79 : vector<1x24x24xf32> to vector<1x24x24xbf16>
    "tpu.trace_start"() <{level = 10 : i32, message = "bqk,bkd->bqd"}> : () -> ()
    %cst_46 = arith.constant dense<0.000000e+00> : vector<1x24x8xf32>
    %81 = tpu.matmul %80, %67, %cst_46 {dimension_numbers = #tpu.dot_dimension_numbers<[2], [1], [1], [2], [0, 0, 0, 1, 1, 2], [0], [0]>} : vector<1x24x24xbf16>, vector<1x24x8xbf16>, vector<1x24x8xf32> -> vector<1x24x8xf32>
    "tpu.trace_stop"() : () -> ()
    %82 = vector.extract_strided_slice %61 {offsets = [0, 0, 8], sizes = [1, 24, 8], strides = [1, 1, 1]} : vector<1x24x96xf32> to vector<1x24x8xf32>
    %83 = arith.truncf %82 : vector<1x24x8xf32> to vector<1x24x8xbf16>
    %84 = vector.extract_strided_slice %61 {offsets = [0, 0, 40], sizes = [1, 24, 8], strides = [1, 1, 1]} : vector<1x24x96xf32> to vector<1x24x8xf32>
    %85 = arith.truncf %84 : vector<1x24x8xf32> to vector<1x24x8xbf16>
    %86 = vector.extract_strided_slice %61 {offsets = [0, 0, 72], sizes = [1, 24, 8], strides = [1, 1, 1]} : vector<1x24x96xf32> to vector<1x24x8xf32>
    %87 = arith.truncf %86 : vector<1x24x8xf32> to vector<1x24x8xbf16>
    "tpu.trace_start"() <{level = 10 : i32, message = "bqd,bkd->bqk"}> : () -> ()
    %cst_47 = arith.constant dense<0.000000e+00> : vector<1x24x24xf32>
    %88 = tpu.matmul %83, %85, %cst_47 {dimension_numbers = #tpu.dot_dimension_numbers<[2], [2], [1], [1], [0, 0, 0, 1, 1, 1], [0], [0]>} : vector<1x24x8xbf16>, vector<1x24x8xbf16>, vector<1x24x24xf32> -> vector<1x24x24xf32>
    "tpu.trace_stop"() : () -> ()
    %89 = vector.broadcast %26 : vector<1x1x24xf32> to vector<1x24x24xf32>
    %90 = arith.addf %88, %89 : vector<1x24x24xf32>
    %cst_48 = arith.constant dense<0xFF800000> : vector<1x24xf32>
    %91 = vector.multi_reduction <maximumf>, %90, %cst_48 [2] : vector<1x24x24xf32> to vector<1x24xf32>
    %92 = vector.shape_cast %91 : vector<1x24xf32> to vector<1x24x1xf32>
    %93 = vector.broadcast %92 : vector<1x24x1xf32> to vector<1x24x24xf32>
    %94 = arith.subf %90, %93 : vector<1x24x24xf32>
    %95 = math.exp %94 : vector<1x24x24xf32>
    %cst_49 = arith.constant dense<0.000000e+00> : vector<1x24xf32>
    %96 = vector.multi_reduction <add>, %95, %cst_49 [2] : vector<1x24x24xf32> to vector<1x24xf32>
    %97 = vector.shape_cast %96 : vector<1x24xf32> to vector<1x24x1xf32>
    %98 = vector.broadcast %97 : vector<1x24x1xf32> to vector<1x24x24xf32>
    %99 = arith.divf %95, %98 : vector<1x24x24xf32>
    %100 = arith.truncf %99 : vector<1x24x24xf32> to vector<1x24x24xbf16>
    "tpu.trace_start"() <{level = 10 : i32, message = "bqk,bkd->bqd"}> : () -> ()
    %cst_50 = arith.constant dense<0.000000e+00> : vector<1x24x8xf32>
    %101 = tpu.matmul %100, %87, %cst_50 {dimension_numbers = #tpu.dot_dimension_numbers<[2], [1], [1], [2], [0, 0, 0, 1, 1, 2], [0], [0]>} : vector<1x24x24xbf16>, vector<1x24x8xbf16>, vector<1x24x8xf32> -> vector<1x24x8xf32>
    "tpu.trace_stop"() : () -> ()
    %102 = vector.extract_strided_slice %61 {offsets = [0, 0, 16], sizes = [1, 24, 8], strides = [1, 1, 1]} : vector<1x24x96xf32> to vector<1x24x8xf32>
    %103 = arith.truncf %102 : vector<1x24x8xf32> to vector<1x24x8xbf16>
    %104 = vector.extract_strided_slice %61 {offsets = [0, 0, 48], sizes = [1, 24, 8], strides = [1, 1, 1]} : vector<1x24x96xf32> to vector<1x24x8xf32>
    %105 = arith.truncf %104 : vector<1x24x8xf32> to vector<1x24x8xbf16>
    %106 = vector.extract_strided_slice %61 {offsets = [0, 0, 80], sizes = [1, 24, 8], strides = [1, 1, 1]} : vector<1x24x96xf32> to vector<1x24x8xf32>
    %107 = arith.truncf %106 : vector<1x24x8xf32> to vector<1x24x8xbf16>
    "tpu.trace_start"() <{level = 10 : i32, message = "bqd,bkd->bqk"}> : () -> ()
    %cst_51 = arith.constant dense<0.000000e+00> : vector<1x24x24xf32>
    %108 = tpu.matmul %103, %105, %cst_51 {dimension_numbers = #tpu.dot_dimension_numbers<[2], [2], [1], [1], [0, 0, 0, 1, 1, 1], [0], [0]>} : vector<1x24x8xbf16>, vector<1x24x8xbf16>, vector<1x24x24xf32> -> vector<1x24x24xf32>
    "tpu.trace_stop"() : () -> ()
    %109 = vector.broadcast %26 : vector<1x1x24xf32> to vector<1x24x24xf32>
    %110 = arith.addf %108, %109 : vector<1x24x24xf32>
    %cst_52 = arith.constant dense<0xFF800000> : vector<1x24xf32>
    %111 = vector.multi_reduction <maximumf>, %110, %cst_52 [2] : vector<1x24x24xf32> to vector<1x24xf32>
    %112 = vector.shape_cast %111 : vector<1x24xf32> to vector<1x24x1xf32>
    %113 = vector.broadcast %112 : vector<1x24x1xf32> to vector<1x24x24xf32>
    %114 = arith.subf %110, %113 : vector<1x24x24xf32>
    %115 = math.exp %114 : vector<1x24x24xf32>
    %cst_53 = arith.constant dense<0.000000e+00> : vector<1x24xf32>
    %116 = vector.multi_reduction <add>, %115, %cst_53 [2] : vector<1x24x24xf32> to vector<1x24xf32>
    %117 = vector.shape_cast %116 : vector<1x24xf32> to vector<1x24x1xf32>
    %118 = vector.broadcast %117 : vector<1x24x1xf32> to vector<1x24x24xf32>
    %119 = arith.divf %115, %118 : vector<1x24x24xf32>
    %120 = arith.truncf %119 : vector<1x24x24xf32> to vector<1x24x24xbf16>
    "tpu.trace_start"() <{level = 10 : i32, message = "bqk,bkd->bqd"}> : () -> ()
    %cst_54 = arith.constant dense<0.000000e+00> : vector<1x24x8xf32>
    %121 = tpu.matmul %120, %107, %cst_54 {dimension_numbers = #tpu.dot_dimension_numbers<[2], [1], [1], [2], [0, 0, 0, 1, 1, 2], [0], [0]>} : vector<1x24x24xbf16>, vector<1x24x8xbf16>, vector<1x24x8xf32> -> vector<1x24x8xf32>
    "tpu.trace_stop"() : () -> ()
    %122 = vector.extract_strided_slice %61 {offsets = [0, 0, 24], sizes = [1, 24, 8], strides = [1, 1, 1]} : vector<1x24x96xf32> to vector<1x24x8xf32>
    %123 = arith.truncf %122 : vector<1x24x8xf32> to vector<1x24x8xbf16>
    %124 = vector.extract_strided_slice %61 {offsets = [0, 0, 56], sizes = [1, 24, 8], strides = [1, 1, 1]} : vector<1x24x96xf32> to vector<1x24x8xf32>
    %125 = arith.truncf %124 : vector<1x24x8xf32> to vector<1x24x8xbf16>
    %126 = vector.extract_strided_slice %61 {offsets = [0, 0, 88], sizes = [1, 24, 8], strides = [1, 1, 1]} : vector<1x24x96xf32> to vector<1x24x8xf32>
    %127 = arith.truncf %126 : vector<1x24x8xf32> to vector<1x24x8xbf16>
    "tpu.trace_start"() <{level = 10 : i32, message = "bqd,bkd->bqk"}> : () -> ()
    %cst_55 = arith.constant dense<0.000000e+00> : vector<1x24x24xf32>
    %128 = tpu.matmul %123, %125, %cst_55 {dimension_numbers = #tpu.dot_dimension_numbers<[2], [2], [1], [1], [0, 0, 0, 1, 1, 1], [0], [0]>} : vector<1x24x8xbf16>, vector<1x24x8xbf16>, vector<1x24x24xf32> -> vector<1x24x24xf32>
    "tpu.trace_stop"() : () -> ()
    %129 = vector.broadcast %26 : vector<1x1x24xf32> to vector<1x24x24xf32>
    %130 = arith.addf %128, %129 : vector<1x24x24xf32>
    %cst_56 = arith.constant dense<0xFF800000> : vector<1x24xf32>
    %131 = vector.multi_reduction <maximumf>, %130, %cst_56 [2] : vector<1x24x24xf32> to vector<1x24xf32>
    %132 = vector.shape_cast %131 : vector<1x24xf32> to vector<1x24x1xf32>
    %133 = vector.broadcast %132 : vector<1x24x1xf32> to vector<1x24x24xf32>
    %134 = arith.subf %130, %133 : vector<1x24x24xf32>
    %135 = math.exp %134 : vector<1x24x24xf32>
    %cst_57 = arith.constant dense<0.000000e+00> : vector<1x24xf32>
    %136 = vector.multi_reduction <add>, %135, %cst_57 [2] : vector<1x24x24xf32> to vector<1x24xf32>
    %137 = vector.shape_cast %136 : vector<1x24xf32> to vector<1x24x1xf32>
    %138 = vector.broadcast %137 : vector<1x24x1xf32> to vector<1x24x24xf32>
    %139 = arith.divf %135, %138 : vector<1x24x24xf32>
    %140 = arith.truncf %139 : vector<1x24x24xf32> to vector<1x24x24xbf16>
    "tpu.trace_start"() <{level = 10 : i32, message = "bqk,bkd->bqd"}> : () -> ()
    %cst_58 = arith.constant dense<0.000000e+00> : vector<1x24x8xf32>
    %141 = tpu.matmul %140, %127, %cst_58 {dimension_numbers = #tpu.dot_dimension_numbers<[2], [1], [1], [2], [0, 0, 0, 1, 1, 2], [0], [0]>} : vector<1x24x24xbf16>, vector<1x24x8xbf16>, vector<1x24x8xf32> -> vector<1x24x8xf32>
    "tpu.trace_stop"() : () -> ()
    %142 = tpu.concatenate %81, %101, %121, %141 in 2 : vector<1x24x8xf32>, vector<1x24x8xf32>, vector<1x24x8xf32>, vector<1x24x8xf32> -> vector<1x24x32xf32>
    %143 = vector.shape_cast %142 : vector<1x24x32xf32> to vector<24x32xf32>
    %144 = arith.truncf %143 : vector<24x32xf32> to vector<24x32xbf16>
    %c0_59 = arith.constant 0 : index
    %c0_60 = arith.constant 0 : index
    %c0_61 = arith.constant 0 : index
    %145 = vector.load %arg10[%c0_59, %c0_60, %c0_61] : memref<2x32x32xbf16, #tpu.memory_space<vmem>>, vector<1x32x32xbf16>
    %146 = vector.shape_cast %145 : vector<1x32x32xbf16> to vector<32x32xbf16>
    %cst_62 = arith.constant dense<0.000000e+00> : vector<24x32xf32>
    %147 = tpu.matmul %144, %146, %cst_62 {dimension_numbers = #tpu.dot_dimension_numbers<[1], [0], [0], [1], [0, 0, 1, 1], [], []>} : vector<24x32xbf16>, vector<32x32xbf16>, vector<24x32xf32> -> vector<24x32xf32>
    %c0_63 = arith.constant 0 : index
    %c0_64 = arith.constant 0 : index
    %c0_65 = arith.constant 0 : index
    %148 = vector.load %arg11[%c0_63, %c0_64, %c0_65] : memref<2x1x32xf32, #tpu.memory_space<vmem>>, vector<1x1x32xf32>
    %149 = vector.shape_cast %148 : vector<1x1x32xf32> to vector<1x32xf32>
    %150 = vector.broadcast %149 : vector<1x32xf32> to vector<24x32xf32>
    %151 = arith.addf %147, %150 : vector<24x32xf32>
    %152 = arith.addf %151, %20 : vector<24x32xf32>
    %c0_66 = arith.constant 0 : index
    %c0_67 = arith.constant 0 : index
    %c0_68 = arith.constant 0 : index
    %153 = vector.load %arg12[%c0_66, %c0_67, %c0_68] : memref<2x1x32xf32, #tpu.memory_space<vmem>>, vector<1x1x32xf32>
    %154 = vector.shape_cast %153 : vector<1x1x32xf32> to vector<1x32xf32>
    %c0_69 = arith.constant 0 : index
    %c0_70 = arith.constant 0 : index
    %c0_71 = arith.constant 0 : index
    %155 = vector.load %arg13[%c0_69, %c0_70, %c0_71] : memref<2x1x32xf32, #tpu.memory_space<vmem>>, vector<1x1x32xf32>
    %156 = vector.shape_cast %155 : vector<1x1x32xf32> to vector<1x32xf32>
    %cst_72 = arith.constant dense<0.000000e+00> : vector<24xf32>
    %157 = vector.multi_reduction <add>, %152, %cst_72 [1] : vector<24x32xf32> to vector<24xf32>
    %158 = vector.shape_cast %157 : vector<24xf32> to vector<24x1xf32>
    %cst_73 = arith.constant 3.200000e+01 : f32
    %159 = vector.broadcast %cst_73 : f32 to vector<24x1xf32>
    %160 = arith.divf %158, %159 : vector<24x1xf32>
    %161 = vector.broadcast %160 : vector<24x1xf32> to vector<24x32xf32>
    %162 = arith.subf %152, %161 : vector<24x32xf32>
    %163 = arith.mulf %162, %162 : vector<24x32xf32>
    %cst_74 = arith.constant dense<0.000000e+00> : vector<24xf32>
    %164 = vector.multi_reduction <add>, %163, %cst_74 [1] : vector<24x32xf32> to vector<24xf32>
    %165 = vector.shape_cast %164 : vector<24xf32> to vector<24x1xf32>
    %cst_75 = arith.constant 3.200000e+01 : f32
    %166 = vector.broadcast %cst_75 : f32 to vector<24x1xf32>
    %167 = arith.divf %165, %166 : vector<24x1xf32>
    %168 = vector.broadcast %160 : vector<24x1xf32> to vector<24x32xf32>
    %169 = arith.subf %152, %168 : vector<24x32xf32>
    %cst_76 = arith.constant 9.99999974E-6 : f32
    %170 = vector.broadcast %cst_76 : f32 to vector<24x1xf32>
    %171 = arith.addf %167, %170 : vector<24x1xf32>
    %172 = math.rsqrt %171 : vector<24x1xf32>
    %173 = vector.broadcast %172 : vector<24x1xf32> to vector<24x32xf32>
    %174 = arith.mulf %169, %173 : vector<24x32xf32>
    %175 = vector.broadcast %154 : vector<1x32xf32> to vector<24x32xf32>
    %176 = arith.mulf %174, %175 : vector<24x32xf32>
    %177 = vector.broadcast %156 : vector<1x32xf32> to vector<24x32xf32>
    %178 = arith.addf %176, %177 : vector<24x32xf32>
    %179 = arith.truncf %178 : vector<24x32xf32> to vector<24x32xbf16>
    %c0_77 = arith.constant 0 : index
    %c0_78 = arith.constant 0 : index
    %c0_79 = arith.constant 0 : index
    %180 = vector.load %arg14[%c0_77, %c0_78, %c0_79] : memref<2x32x128xbf16, #tpu.memory_space<vmem>>, vector<1x32x128xbf16>
    %181 = vector.shape_cast %180 : vector<1x32x128xbf16> to vector<32x128xbf16>
    %cst_80 = arith.constant dense<0.000000e+00> : vector<24x128xf32>
    %182 = tpu.matmul %179, %181, %cst_80 {dimension_numbers = #tpu.dot_dimension_numbers<[1], [0], [0], [1], [0, 0, 1, 1], [], []>} : vector<24x32xbf16>, vector<32x128xbf16>, vector<24x128xf32> -> vector<24x128xf32>
    %c0_81 = arith.constant 0 : index
    %c0_82 = arith.constant 0 : index
    %c0_83 = arith.constant 0 : index
    %183 = vector.load %arg15[%c0_81, %c0_82, %c0_83] : memref<2x1x128xf32, #tpu.memory_space<vmem>>, vector<1x1x128xf32>
    %184 = vector.shape_cast %183 : vector<1x1x128xf32> to vector<1x128xf32>
    %185 = vector.broadcast %184 : vector<1x128xf32> to vector<24x128xf32>
    %186 = arith.addf %182, %185 : vector<24x128xf32>
    %cst_84 = arith.constant 5.000000e-01 : f32
    %187 = vector.broadcast %cst_84 : f32 to vector<24x128xf32>
    %188 = arith.mulf %187, %186 : vector<24x128xf32>
    %cst_85 = arith.constant 0.707106769 : f32
    %189 = vector.broadcast %cst_85 : f32 to vector<24x128xf32>
    %190 = arith.mulf %186, %189 : vector<24x128xf32>
    %cst_86 = arith.constant 0.000000e+00 : f32
    %191 = vector.broadcast %cst_86 : f32 to vector<24x128xf32>
    %192 = arith.cmpf oge, %190, %191 : vector<24x128xf32>
    %cst_87 = arith.constant 1.000000e+00 : f32
    %cst_88 = arith.constant -1.000000e+00 : f32
    %193 = vector.broadcast %cst_87 : f32 to vector<24x128xf32>
    %194 = vector.broadcast %cst_88 : f32 to vector<24x128xf32>
    %195 = arith.select %192, %193, %194 : vector<24x128xi1>, vector<24x128xf32>
    %196 = math.absf %190 : vector<24x128xf32>
    %cst_89 = arith.constant 0.327591091 : f32
    %197 = vector.broadcast %cst_89 : f32 to vector<24x128xf32>
    %198 = arith.mulf %197, %196 : vector<24x128xf32>
    %cst_90 = arith.constant 1.000000e+00 : f32
    %199 = vector.broadcast %cst_90 : f32 to vector<24x128xf32>
    %200 = arith.addf %199, %198 : vector<24x128xf32>
    %cst_91 = arith.constant 1.000000e+00 : f32
    %201 = vector.broadcast %cst_91 : f32 to vector<24x128xf32>
    %202 = arith.divf %201, %200 : vector<24x128xf32>
    %cst_92 = arith.constant 1.06140542 : f32
    %203 = vector.broadcast %cst_92 : f32 to vector<24x128xf32>
    %204 = arith.mulf %203, %202 : vector<24x128xf32>
    %cst_93 = arith.constant -1.45315206 : f32
    %205 = vector.broadcast %cst_93 : f32 to vector<24x128xf32>
    %206 = arith.addf %204, %205 : vector<24x128xf32>
    %207 = arith.mulf %206, %202 : vector<24x128xf32>
    %cst_94 = arith.constant 1.42141378 : f32
    %208 = vector.broadcast %cst_94 : f32 to vector<24x128xf32>
    %209 = arith.addf %207, %208 : vector<24x128xf32>
    %210 = arith.mulf %209, %202 : vector<24x128xf32>
    %cst_95 = arith.constant -0.284496725 : f32
    %211 = vector.broadcast %cst_95 : f32 to vector<24x128xf32>
    %212 = arith.addf %210, %211 : vector<24x128xf32>
    %213 = arith.mulf %212, %202 : vector<24x128xf32>
    %cst_96 = arith.constant 0.254829586 : f32
    %214 = vector.broadcast %cst_96 : f32 to vector<24x128xf32>
    %215 = arith.addf %213, %214 : vector<24x128xf32>
    %216 = arith.mulf %215, %202 : vector<24x128xf32>
    %cst_97 = arith.constant 0.000000e+00 : f32
    %217 = vector.broadcast %cst_97 : f32 to vector<24x128xf32>
    %218 = arith.subf %217, %196 : vector<24x128xf32>
    %219 = arith.mulf %218, %196 : vector<24x128xf32>
    %220 = math.exp %219 : vector<24x128xf32>
    %221 = arith.mulf %216, %220 : vector<24x128xf32>
    %cst_98 = arith.constant 1.000000e+00 : f32
    %222 = vector.broadcast %cst_98 : f32 to vector<24x128xf32>
    %223 = arith.subf %222, %221 : vector<24x128xf32>
    %224 = arith.mulf %195, %223 : vector<24x128xf32>
    %cst_99 = arith.constant 1.000000e+00 : f32
    %225 = vector.broadcast %cst_99 : f32 to vector<24x128xf32>
    %226 = arith.addf %225, %224 : vector<24x128xf32>
    %227 = arith.mulf %188, %226 : vector<24x128xf32>
    %228 = arith.truncf %227 : vector<24x128xf32> to vector<24x128xbf16>
    %c0_100 = arith.constant 0 : index
    %c0_101 = arith.constant 0 : index
    %c0_102 = arith.constant 0 : index
    %229 = vector.load %arg16[%c0_100, %c0_101, %c0_102] : memref<2x128x32xbf16, #tpu.memory_space<vmem>>, vector<1x128x32xbf16>
    %230 = vector.shape_cast %229 : vector<1x128x32xbf16> to vector<128x32xbf16>
    %cst_103 = arith.constant dense<0.000000e+00> : vector<24x32xf32>
    %231 = tpu.matmul %228, %230, %cst_103 {dimension_numbers = #tpu.dot_dimension_numbers<[1], [0], [0], [1], [0, 0, 1, 1], [], []>} : vector<24x128xbf16>, vector<128x32xbf16>, vector<24x32xf32> -> vector<24x32xf32>
    %c0_104 = arith.constant 0 : index
    %c0_105 = arith.constant 0 : index
    %c0_106 = arith.constant 0 : index
    %232 = vector.load %arg17[%c0_104, %c0_105, %c0_106] : memref<2x1x32xf32, #tpu.memory_space<vmem>>, vector<1x1x32xf32>
    %233 = vector.shape_cast %232 : vector<1x1x32xf32> to vector<1x32xf32>
    %234 = vector.broadcast %233 : vector<1x32xf32> to vector<24x32xf32>
    %235 = arith.addf %231, %234 : vector<24x32xf32>
    %236 = arith.addf %235, %152 : vector<24x32xf32>
    %c1_107 = arith.constant 1 : index
    %c0_108 = arith.constant 0 : index
    %c0_109 = arith.constant 0 : index
    %237 = vector.load %arg6[%c1_107, %c0_108, %c0_109] : memref<2x1x32xf32, #tpu.memory_space<vmem>>, vector<1x1x32xf32>
    %238 = vector.shape_cast %237 : vector<1x1x32xf32> to vector<1x32xf32>
    %c1_110 = arith.constant 1 : index
    %c0_111 = arith.constant 0 : index
    %c0_112 = arith.constant 0 : index
    %239 = vector.load %arg7[%c1_110, %c0_111, %c0_112] : memref<2x1x32xf32, #tpu.memory_space<vmem>>, vector<1x1x32xf32>
    %240 = vector.shape_cast %239 : vector<1x1x32xf32> to vector<1x32xf32>
    %cst_113 = arith.constant dense<0.000000e+00> : vector<24xf32>
    %241 = vector.multi_reduction <add>, %236, %cst_113 [1] : vector<24x32xf32> to vector<24xf32>
    %242 = vector.shape_cast %241 : vector<24xf32> to vector<24x1xf32>
    %cst_114 = arith.constant 3.200000e+01 : f32
    %243 = vector.broadcast %cst_114 : f32 to vector<24x1xf32>
    %244 = arith.divf %242, %243 : vector<24x1xf32>
    %245 = vector.broadcast %244 : vector<24x1xf32> to vector<24x32xf32>
    %246 = arith.subf %236, %245 : vector<24x32xf32>
    %247 = arith.mulf %246, %246 : vector<24x32xf32>
    %cst_115 = arith.constant dense<0.000000e+00> : vector<24xf32>
    %248 = vector.multi_reduction <add>, %247, %cst_115 [1] : vector<24x32xf32> to vector<24xf32>
    %249 = vector.shape_cast %248 : vector<24xf32> to vector<24x1xf32>
    %cst_116 = arith.constant 3.200000e+01 : f32
    %250 = vector.broadcast %cst_116 : f32 to vector<24x1xf32>
    %251 = arith.divf %249, %250 : vector<24x1xf32>
    %252 = vector.broadcast %244 : vector<24x1xf32> to vector<24x32xf32>
    %253 = arith.subf %236, %252 : vector<24x32xf32>
    %cst_117 = arith.constant 9.99999974E-6 : f32
    %254 = vector.broadcast %cst_117 : f32 to vector<24x1xf32>
    %255 = arith.addf %251, %254 : vector<24x1xf32>
    %256 = math.rsqrt %255 : vector<24x1xf32>
    %257 = vector.broadcast %256 : vector<24x1xf32> to vector<24x32xf32>
    %258 = arith.mulf %253, %257 : vector<24x32xf32>
    %259 = vector.broadcast %238 : vector<1x32xf32> to vector<24x32xf32>
    %260 = arith.mulf %258, %259 : vector<24x32xf32>
    %261 = vector.broadcast %240 : vector<1x32xf32> to vector<24x32xf32>
    %262 = arith.addf %260, %261 : vector<24x32xf32>
    %263 = arith.truncf %262 : vector<24x32xf32> to vector<24x32xbf16>
    %c1_118 = arith.constant 1 : index
    %c0_119 = arith.constant 0 : index
    %c0_120 = arith.constant 0 : index
    %264 = vector.load %arg8[%c1_118, %c0_119, %c0_120] : memref<2x32x96xbf16, #tpu.memory_space<vmem>>, vector<1x32x96xbf16>
    %265 = vector.shape_cast %264 : vector<1x32x96xbf16> to vector<32x96xbf16>
    %cst_121 = arith.constant dense<0.000000e+00> : vector<24x96xf32>
    %266 = tpu.matmul %263, %265, %cst_121 {dimension_numbers = #tpu.dot_dimension_numbers<[1], [0], [0], [1], [0, 0, 1, 1], [], []>} : vector<24x32xbf16>, vector<32x96xbf16>, vector<24x96xf32> -> vector<24x96xf32>
    %c1_122 = arith.constant 1 : index
    %c0_123 = arith.constant 0 : index
    %c0_124 = arith.constant 0 : index
    %267 = vector.load %arg9[%c1_122, %c0_123, %c0_124] : memref<2x1x96xf32, #tpu.memory_space<vmem>>, vector<1x1x96xf32>
    %268 = vector.shape_cast %267 : vector<1x1x96xf32> to vector<1x96xf32>
    %269 = vector.broadcast %268 : vector<1x96xf32> to vector<24x96xf32>
    %270 = arith.addf %266, %269 : vector<24x96xf32>
    %271 = vector.shape_cast %270 : vector<24x96xf32> to vector<1x24x96xf32>
    %272 = vector.extract_strided_slice %271 {offsets = [0, 0, 0], sizes = [1, 24, 8], strides = [1, 1, 1]} : vector<1x24x96xf32> to vector<1x24x8xf32>
    %273 = arith.truncf %272 : vector<1x24x8xf32> to vector<1x24x8xbf16>
    %274 = vector.extract_strided_slice %271 {offsets = [0, 0, 32], sizes = [1, 24, 8], strides = [1, 1, 1]} : vector<1x24x96xf32> to vector<1x24x8xf32>
    %275 = arith.truncf %274 : vector<1x24x8xf32> to vector<1x24x8xbf16>
    %276 = vector.extract_strided_slice %271 {offsets = [0, 0, 64], sizes = [1, 24, 8], strides = [1, 1, 1]} : vector<1x24x96xf32> to vector<1x24x8xf32>
    %277 = arith.truncf %276 : vector<1x24x8xf32> to vector<1x24x8xbf16>
    "tpu.trace_start"() <{level = 10 : i32, message = "bqd,bkd->bqk"}> : () -> ()
    %cst_125 = arith.constant dense<0.000000e+00> : vector<1x24x24xf32>
    %278 = tpu.matmul %273, %275, %cst_125 {dimension_numbers = #tpu.dot_dimension_numbers<[2], [2], [1], [1], [0, 0, 0, 1, 1, 1], [0], [0]>} : vector<1x24x8xbf16>, vector<1x24x8xbf16>, vector<1x24x24xf32> -> vector<1x24x24xf32>
    "tpu.trace_stop"() : () -> ()
    %279 = vector.broadcast %26 : vector<1x1x24xf32> to vector<1x24x24xf32>
    %280 = arith.addf %278, %279 : vector<1x24x24xf32>
    %cst_126 = arith.constant dense<0xFF800000> : vector<1x24xf32>
    %281 = vector.multi_reduction <maximumf>, %280, %cst_126 [2] : vector<1x24x24xf32> to vector<1x24xf32>
    %282 = vector.shape_cast %281 : vector<1x24xf32> to vector<1x24x1xf32>
    %283 = vector.broadcast %282 : vector<1x24x1xf32> to vector<1x24x24xf32>
    %284 = arith.subf %280, %283 : vector<1x24x24xf32>
    %285 = math.exp %284 : vector<1x24x24xf32>
    %cst_127 = arith.constant dense<0.000000e+00> : vector<1x24xf32>
    %286 = vector.multi_reduction <add>, %285, %cst_127 [2] : vector<1x24x24xf32> to vector<1x24xf32>
    %287 = vector.shape_cast %286 : vector<1x24xf32> to vector<1x24x1xf32>
    %288 = vector.broadcast %287 : vector<1x24x1xf32> to vector<1x24x24xf32>
    %289 = arith.divf %285, %288 : vector<1x24x24xf32>
    %290 = arith.truncf %289 : vector<1x24x24xf32> to vector<1x24x24xbf16>
    "tpu.trace_start"() <{level = 10 : i32, message = "bqk,bkd->bqd"}> : () -> ()
    %cst_128 = arith.constant dense<0.000000e+00> : vector<1x24x8xf32>
    %291 = tpu.matmul %290, %277, %cst_128 {dimension_numbers = #tpu.dot_dimension_numbers<[2], [1], [1], [2], [0, 0, 0, 1, 1, 2], [0], [0]>} : vector<1x24x24xbf16>, vector<1x24x8xbf16>, vector<1x24x8xf32> -> vector<1x24x8xf32>
    "tpu.trace_stop"() : () -> ()
    %292 = vector.extract_strided_slice %271 {offsets = [0, 0, 8], sizes = [1, 24, 8], strides = [1, 1, 1]} : vector<1x24x96xf32> to vector<1x24x8xf32>
    %293 = arith.truncf %292 : vector<1x24x8xf32> to vector<1x24x8xbf16>
    %294 = vector.extract_strided_slice %271 {offsets = [0, 0, 40], sizes = [1, 24, 8], strides = [1, 1, 1]} : vector<1x24x96xf32> to vector<1x24x8xf32>
    %295 = arith.truncf %294 : vector<1x24x8xf32> to vector<1x24x8xbf16>
    %296 = vector.extract_strided_slice %271 {offsets = [0, 0, 72], sizes = [1, 24, 8], strides = [1, 1, 1]} : vector<1x24x96xf32> to vector<1x24x8xf32>
    %297 = arith.truncf %296 : vector<1x24x8xf32> to vector<1x24x8xbf16>
    "tpu.trace_start"() <{level = 10 : i32, message = "bqd,bkd->bqk"}> : () -> ()
    %cst_129 = arith.constant dense<0.000000e+00> : vector<1x24x24xf32>
    %298 = tpu.matmul %293, %295, %cst_129 {dimension_numbers = #tpu.dot_dimension_numbers<[2], [2], [1], [1], [0, 0, 0, 1, 1, 1], [0], [0]>} : vector<1x24x8xbf16>, vector<1x24x8xbf16>, vector<1x24x24xf32> -> vector<1x24x24xf32>
    "tpu.trace_stop"() : () -> ()
    %299 = vector.broadcast %26 : vector<1x1x24xf32> to vector<1x24x24xf32>
    %300 = arith.addf %298, %299 : vector<1x24x24xf32>
    %cst_130 = arith.constant dense<0xFF800000> : vector<1x24xf32>
    %301 = vector.multi_reduction <maximumf>, %300, %cst_130 [2] : vector<1x24x24xf32> to vector<1x24xf32>
    %302 = vector.shape_cast %301 : vector<1x24xf32> to vector<1x24x1xf32>
    %303 = vector.broadcast %302 : vector<1x24x1xf32> to vector<1x24x24xf32>
    %304 = arith.subf %300, %303 : vector<1x24x24xf32>
    %305 = math.exp %304 : vector<1x24x24xf32>
    %cst_131 = arith.constant dense<0.000000e+00> : vector<1x24xf32>
    %306 = vector.multi_reduction <add>, %305, %cst_131 [2] : vector<1x24x24xf32> to vector<1x24xf32>
    %307 = vector.shape_cast %306 : vector<1x24xf32> to vector<1x24x1xf32>
    %308 = vector.broadcast %307 : vector<1x24x1xf32> to vector<1x24x24xf32>
    %309 = arith.divf %305, %308 : vector<1x24x24xf32>
    %310 = arith.truncf %309 : vector<1x24x24xf32> to vector<1x24x24xbf16>
    "tpu.trace_start"() <{level = 10 : i32, message = "bqk,bkd->bqd"}> : () -> ()
    %cst_132 = arith.constant dense<0.000000e+00> : vector<1x24x8xf32>
    %311 = tpu.matmul %310, %297, %cst_132 {dimension_numbers = #tpu.dot_dimension_numbers<[2], [1], [1], [2], [0, 0, 0, 1, 1, 2], [0], [0]>} : vector<1x24x24xbf16>, vector<1x24x8xbf16>, vector<1x24x8xf32> -> vector<1x24x8xf32>
    "tpu.trace_stop"() : () -> ()
    %312 = vector.extract_strided_slice %271 {offsets = [0, 0, 16], sizes = [1, 24, 8], strides = [1, 1, 1]} : vector<1x24x96xf32> to vector<1x24x8xf32>
    %313 = arith.truncf %312 : vector<1x24x8xf32> to vector<1x24x8xbf16>
    %314 = vector.extract_strided_slice %271 {offsets = [0, 0, 48], sizes = [1, 24, 8], strides = [1, 1, 1]} : vector<1x24x96xf32> to vector<1x24x8xf32>
    %315 = arith.truncf %314 : vector<1x24x8xf32> to vector<1x24x8xbf16>
    %316 = vector.extract_strided_slice %271 {offsets = [0, 0, 80], sizes = [1, 24, 8], strides = [1, 1, 1]} : vector<1x24x96xf32> to vector<1x24x8xf32>
    %317 = arith.truncf %316 : vector<1x24x8xf32> to vector<1x24x8xbf16>
    "tpu.trace_start"() <{level = 10 : i32, message = "bqd,bkd->bqk"}> : () -> ()
    %cst_133 = arith.constant dense<0.000000e+00> : vector<1x24x24xf32>
    %318 = tpu.matmul %313, %315, %cst_133 {dimension_numbers = #tpu.dot_dimension_numbers<[2], [2], [1], [1], [0, 0, 0, 1, 1, 1], [0], [0]>} : vector<1x24x8xbf16>, vector<1x24x8xbf16>, vector<1x24x24xf32> -> vector<1x24x24xf32>
    "tpu.trace_stop"() : () -> ()
    %319 = vector.broadcast %26 : vector<1x1x24xf32> to vector<1x24x24xf32>
    %320 = arith.addf %318, %319 : vector<1x24x24xf32>
    %cst_134 = arith.constant dense<0xFF800000> : vector<1x24xf32>
    %321 = vector.multi_reduction <maximumf>, %320, %cst_134 [2] : vector<1x24x24xf32> to vector<1x24xf32>
    %322 = vector.shape_cast %321 : vector<1x24xf32> to vector<1x24x1xf32>
    %323 = vector.broadcast %322 : vector<1x24x1xf32> to vector<1x24x24xf32>
    %324 = arith.subf %320, %323 : vector<1x24x24xf32>
    %325 = math.exp %324 : vector<1x24x24xf32>
    %cst_135 = arith.constant dense<0.000000e+00> : vector<1x24xf32>
    %326 = vector.multi_reduction <add>, %325, %cst_135 [2] : vector<1x24x24xf32> to vector<1x24xf32>
    %327 = vector.shape_cast %326 : vector<1x24xf32> to vector<1x24x1xf32>
    %328 = vector.broadcast %327 : vector<1x24x1xf32> to vector<1x24x24xf32>
    %329 = arith.divf %325, %328 : vector<1x24x24xf32>
    %330 = arith.truncf %329 : vector<1x24x24xf32> to vector<1x24x24xbf16>
    "tpu.trace_start"() <{level = 10 : i32, message = "bqk,bkd->bqd"}> : () -> ()
    %cst_136 = arith.constant dense<0.000000e+00> : vector<1x24x8xf32>
    %331 = tpu.matmul %330, %317, %cst_136 {dimension_numbers = #tpu.dot_dimension_numbers<[2], [1], [1], [2], [0, 0, 0, 1, 1, 2], [0], [0]>} : vector<1x24x24xbf16>, vector<1x24x8xbf16>, vector<1x24x8xf32> -> vector<1x24x8xf32>
    "tpu.trace_stop"() : () -> ()
    %332 = vector.extract_strided_slice %271 {offsets = [0, 0, 24], sizes = [1, 24, 8], strides = [1, 1, 1]} : vector<1x24x96xf32> to vector<1x24x8xf32>
    %333 = arith.truncf %332 : vector<1x24x8xf32> to vector<1x24x8xbf16>
    %334 = vector.extract_strided_slice %271 {offsets = [0, 0, 56], sizes = [1, 24, 8], strides = [1, 1, 1]} : vector<1x24x96xf32> to vector<1x24x8xf32>
    %335 = arith.truncf %334 : vector<1x24x8xf32> to vector<1x24x8xbf16>
    %336 = vector.extract_strided_slice %271 {offsets = [0, 0, 88], sizes = [1, 24, 8], strides = [1, 1, 1]} : vector<1x24x96xf32> to vector<1x24x8xf32>
    %337 = arith.truncf %336 : vector<1x24x8xf32> to vector<1x24x8xbf16>
    "tpu.trace_start"() <{level = 10 : i32, message = "bqd,bkd->bqk"}> : () -> ()
    %cst_137 = arith.constant dense<0.000000e+00> : vector<1x24x24xf32>
    %338 = tpu.matmul %333, %335, %cst_137 {dimension_numbers = #tpu.dot_dimension_numbers<[2], [2], [1], [1], [0, 0, 0, 1, 1, 1], [0], [0]>} : vector<1x24x8xbf16>, vector<1x24x8xbf16>, vector<1x24x24xf32> -> vector<1x24x24xf32>
    "tpu.trace_stop"() : () -> ()
    %339 = vector.broadcast %26 : vector<1x1x24xf32> to vector<1x24x24xf32>
    %340 = arith.addf %338, %339 : vector<1x24x24xf32>
    %cst_138 = arith.constant dense<0xFF800000> : vector<1x24xf32>
    %341 = vector.multi_reduction <maximumf>, %340, %cst_138 [2] : vector<1x24x24xf32> to vector<1x24xf32>
    %342 = vector.shape_cast %341 : vector<1x24xf32> to vector<1x24x1xf32>
    %343 = vector.broadcast %342 : vector<1x24x1xf32> to vector<1x24x24xf32>
    %344 = arith.subf %340, %343 : vector<1x24x24xf32>
    %345 = math.exp %344 : vector<1x24x24xf32>
    %cst_139 = arith.constant dense<0.000000e+00> : vector<1x24xf32>
    %346 = vector.multi_reduction <add>, %345, %cst_139 [2] : vector<1x24x24xf32> to vector<1x24xf32>
    %347 = vector.shape_cast %346 : vector<1x24xf32> to vector<1x24x1xf32>
    %348 = vector.broadcast %347 : vector<1x24x1xf32> to vector<1x24x24xf32>
    %349 = arith.divf %345, %348 : vector<1x24x24xf32>
    %350 = arith.truncf %349 : vector<1x24x24xf32> to vector<1x24x24xbf16>
    "tpu.trace_start"() <{level = 10 : i32, message = "bqk,bkd->bqd"}> : () -> ()
    %cst_140 = arith.constant dense<0.000000e+00> : vector<1x24x8xf32>
    %351 = tpu.matmul %350, %337, %cst_140 {dimension_numbers = #tpu.dot_dimension_numbers<[2], [1], [1], [2], [0, 0, 0, 1, 1, 2], [0], [0]>} : vector<1x24x24xbf16>, vector<1x24x8xbf16>, vector<1x24x8xf32> -> vector<1x24x8xf32>
    "tpu.trace_stop"() : () -> ()
    %352 = tpu.concatenate %291, %311, %331, %351 in 2 : vector<1x24x8xf32>, vector<1x24x8xf32>, vector<1x24x8xf32>, vector<1x24x8xf32> -> vector<1x24x32xf32>
    %353 = vector.shape_cast %352 : vector<1x24x32xf32> to vector<24x32xf32>
    %354 = arith.truncf %353 : vector<24x32xf32> to vector<24x32xbf16>
    %c1_141 = arith.constant 1 : index
    %c0_142 = arith.constant 0 : index
    %c0_143 = arith.constant 0 : index
    %355 = vector.load %arg10[%c1_141, %c0_142, %c0_143] : memref<2x32x32xbf16, #tpu.memory_space<vmem>>, vector<1x32x32xbf16>
    %356 = vector.shape_cast %355 : vector<1x32x32xbf16> to vector<32x32xbf16>
    %cst_144 = arith.constant dense<0.000000e+00> : vector<24x32xf32>
    %357 = tpu.matmul %354, %356, %cst_144 {dimension_numbers = #tpu.dot_dimension_numbers<[1], [0], [0], [1], [0, 0, 1, 1], [], []>} : vector<24x32xbf16>, vector<32x32xbf16>, vector<24x32xf32> -> vector<24x32xf32>
    %c1_145 = arith.constant 1 : index
    %c0_146 = arith.constant 0 : index
    %c0_147 = arith.constant 0 : index
    %358 = vector.load %arg11[%c1_145, %c0_146, %c0_147] : memref<2x1x32xf32, #tpu.memory_space<vmem>>, vector<1x1x32xf32>
    %359 = vector.shape_cast %358 : vector<1x1x32xf32> to vector<1x32xf32>
    %360 = vector.broadcast %359 : vector<1x32xf32> to vector<24x32xf32>
    %361 = arith.addf %357, %360 : vector<24x32xf32>
    %362 = arith.addf %361, %236 : vector<24x32xf32>
    %c1_148 = arith.constant 1 : index
    %c0_149 = arith.constant 0 : index
    %c0_150 = arith.constant 0 : index
    %363 = vector.load %arg12[%c1_148, %c0_149, %c0_150] : memref<2x1x32xf32, #tpu.memory_space<vmem>>, vector<1x1x32xf32>
    %364 = vector.shape_cast %363 : vector<1x1x32xf32> to vector<1x32xf32>
    %c1_151 = arith.constant 1 : index
    %c0_152 = arith.constant 0 : index
    %c0_153 = arith.constant 0 : index
    %365 = vector.load %arg13[%c1_151, %c0_152, %c0_153] : memref<2x1x32xf32, #tpu.memory_space<vmem>>, vector<1x1x32xf32>
    %366 = vector.shape_cast %365 : vector<1x1x32xf32> to vector<1x32xf32>
    %cst_154 = arith.constant dense<0.000000e+00> : vector<24xf32>
    %367 = vector.multi_reduction <add>, %362, %cst_154 [1] : vector<24x32xf32> to vector<24xf32>
    %368 = vector.shape_cast %367 : vector<24xf32> to vector<24x1xf32>
    %cst_155 = arith.constant 3.200000e+01 : f32
    %369 = vector.broadcast %cst_155 : f32 to vector<24x1xf32>
    %370 = arith.divf %368, %369 : vector<24x1xf32>
    %371 = vector.broadcast %370 : vector<24x1xf32> to vector<24x32xf32>
    %372 = arith.subf %362, %371 : vector<24x32xf32>
    %373 = arith.mulf %372, %372 : vector<24x32xf32>
    %cst_156 = arith.constant dense<0.000000e+00> : vector<24xf32>
    %374 = vector.multi_reduction <add>, %373, %cst_156 [1] : vector<24x32xf32> to vector<24xf32>
    %375 = vector.shape_cast %374 : vector<24xf32> to vector<24x1xf32>
    %cst_157 = arith.constant 3.200000e+01 : f32
    %376 = vector.broadcast %cst_157 : f32 to vector<24x1xf32>
    %377 = arith.divf %375, %376 : vector<24x1xf32>
    %378 = vector.broadcast %370 : vector<24x1xf32> to vector<24x32xf32>
    %379 = arith.subf %362, %378 : vector<24x32xf32>
    %cst_158 = arith.constant 9.99999974E-6 : f32
    %380 = vector.broadcast %cst_158 : f32 to vector<24x1xf32>
    %381 = arith.addf %377, %380 : vector<24x1xf32>
    %382 = math.rsqrt %381 : vector<24x1xf32>
    %383 = vector.broadcast %382 : vector<24x1xf32> to vector<24x32xf32>
    %384 = arith.mulf %379, %383 : vector<24x32xf32>
    %385 = vector.broadcast %364 : vector<1x32xf32> to vector<24x32xf32>
    %386 = arith.mulf %384, %385 : vector<24x32xf32>
    %387 = vector.broadcast %366 : vector<1x32xf32> to vector<24x32xf32>
    %388 = arith.addf %386, %387 : vector<24x32xf32>
    %389 = arith.truncf %388 : vector<24x32xf32> to vector<24x32xbf16>
    %c1_159 = arith.constant 1 : index
    %c0_160 = arith.constant 0 : index
    %c0_161 = arith.constant 0 : index
    %390 = vector.load %arg14[%c1_159, %c0_160, %c0_161] : memref<2x32x128xbf16, #tpu.memory_space<vmem>>, vector<1x32x128xbf16>
    %391 = vector.shape_cast %390 : vector<1x32x128xbf16> to vector<32x128xbf16>
    %cst_162 = arith.constant dense<0.000000e+00> : vector<24x128xf32>
    %392 = tpu.matmul %389, %391, %cst_162 {dimension_numbers = #tpu.dot_dimension_numbers<[1], [0], [0], [1], [0, 0, 1, 1], [], []>} : vector<24x32xbf16>, vector<32x128xbf16>, vector<24x128xf32> -> vector<24x128xf32>
    %c1_163 = arith.constant 1 : index
    %c0_164 = arith.constant 0 : index
    %c0_165 = arith.constant 0 : index
    %393 = vector.load %arg15[%c1_163, %c0_164, %c0_165] : memref<2x1x128xf32, #tpu.memory_space<vmem>>, vector<1x1x128xf32>
    %394 = vector.shape_cast %393 : vector<1x1x128xf32> to vector<1x128xf32>
    %395 = vector.broadcast %394 : vector<1x128xf32> to vector<24x128xf32>
    %396 = arith.addf %392, %395 : vector<24x128xf32>
    %cst_166 = arith.constant 5.000000e-01 : f32
    %397 = vector.broadcast %cst_166 : f32 to vector<24x128xf32>
    %398 = arith.mulf %397, %396 : vector<24x128xf32>
    %cst_167 = arith.constant 0.707106769 : f32
    %399 = vector.broadcast %cst_167 : f32 to vector<24x128xf32>
    %400 = arith.mulf %396, %399 : vector<24x128xf32>
    %cst_168 = arith.constant 0.000000e+00 : f32
    %401 = vector.broadcast %cst_168 : f32 to vector<24x128xf32>
    %402 = arith.cmpf oge, %400, %401 : vector<24x128xf32>
    %cst_169 = arith.constant 1.000000e+00 : f32
    %cst_170 = arith.constant -1.000000e+00 : f32
    %403 = vector.broadcast %cst_169 : f32 to vector<24x128xf32>
    %404 = vector.broadcast %cst_170 : f32 to vector<24x128xf32>
    %405 = arith.select %402, %403, %404 : vector<24x128xi1>, vector<24x128xf32>
    %406 = math.absf %400 : vector<24x128xf32>
    %cst_171 = arith.constant 0.327591091 : f32
    %407 = vector.broadcast %cst_171 : f32 to vector<24x128xf32>
    %408 = arith.mulf %407, %406 : vector<24x128xf32>
    %cst_172 = arith.constant 1.000000e+00 : f32
    %409 = vector.broadcast %cst_172 : f32 to vector<24x128xf32>
    %410 = arith.addf %409, %408 : vector<24x128xf32>
    %cst_173 = arith.constant 1.000000e+00 : f32
    %411 = vector.broadcast %cst_173 : f32 to vector<24x128xf32>
    %412 = arith.divf %411, %410 : vector<24x128xf32>
    %cst_174 = arith.constant 1.06140542 : f32
    %413 = vector.broadcast %cst_174 : f32 to vector<24x128xf32>
    %414 = arith.mulf %413, %412 : vector<24x128xf32>
    %cst_175 = arith.constant -1.45315206 : f32
    %415 = vector.broadcast %cst_175 : f32 to vector<24x128xf32>
    %416 = arith.addf %414, %415 : vector<24x128xf32>
    %417 = arith.mulf %416, %412 : vector<24x128xf32>
    %cst_176 = arith.constant 1.42141378 : f32
    %418 = vector.broadcast %cst_176 : f32 to vector<24x128xf32>
    %419 = arith.addf %417, %418 : vector<24x128xf32>
    %420 = arith.mulf %419, %412 : vector<24x128xf32>
    %cst_177 = arith.constant -0.284496725 : f32
    %421 = vector.broadcast %cst_177 : f32 to vector<24x128xf32>
    %422 = arith.addf %420, %421 : vector<24x128xf32>
    %423 = arith.mulf %422, %412 : vector<24x128xf32>
    %cst_178 = arith.constant 0.254829586 : f32
    %424 = vector.broadcast %cst_178 : f32 to vector<24x128xf32>
    %425 = arith.addf %423, %424 : vector<24x128xf32>
    %426 = arith.mulf %425, %412 : vector<24x128xf32>
    %cst_179 = arith.constant 0.000000e+00 : f32
    %427 = vector.broadcast %cst_179 : f32 to vector<24x128xf32>
    %428 = arith.subf %427, %406 : vector<24x128xf32>
    %429 = arith.mulf %428, %406 : vector<24x128xf32>
    %430 = math.exp %429 : vector<24x128xf32>
    %431 = arith.mulf %426, %430 : vector<24x128xf32>
    %cst_180 = arith.constant 1.000000e+00 : f32
    %432 = vector.broadcast %cst_180 : f32 to vector<24x128xf32>
    %433 = arith.subf %432, %431 : vector<24x128xf32>
    %434 = arith.mulf %405, %433 : vector<24x128xf32>
    %cst_181 = arith.constant 1.000000e+00 : f32
    %435 = vector.broadcast %cst_181 : f32 to vector<24x128xf32>
    %436 = arith.addf %435, %434 : vector<24x128xf32>
    %437 = arith.mulf %398, %436 : vector<24x128xf32>
    %438 = arith.truncf %437 : vector<24x128xf32> to vector<24x128xbf16>
    %c1_182 = arith.constant 1 : index
    %c0_183 = arith.constant 0 : index
    %c0_184 = arith.constant 0 : index
    %439 = vector.load %arg16[%c1_182, %c0_183, %c0_184] : memref<2x128x32xbf16, #tpu.memory_space<vmem>>, vector<1x128x32xbf16>
    %440 = vector.shape_cast %439 : vector<1x128x32xbf16> to vector<128x32xbf16>
    %cst_185 = arith.constant dense<0.000000e+00> : vector<24x32xf32>
    %441 = tpu.matmul %438, %440, %cst_185 {dimension_numbers = #tpu.dot_dimension_numbers<[1], [0], [0], [1], [0, 0, 1, 1], [], []>} : vector<24x128xbf16>, vector<128x32xbf16>, vector<24x32xf32> -> vector<24x32xf32>
    %c1_186 = arith.constant 1 : index
    %c0_187 = arith.constant 0 : index
    %c0_188 = arith.constant 0 : index
    %442 = vector.load %arg17[%c1_186, %c0_187, %c0_188] : memref<2x1x32xf32, #tpu.memory_space<vmem>>, vector<1x1x32xf32>
    %443 = vector.shape_cast %442 : vector<1x1x32xf32> to vector<1x32xf32>
    %444 = vector.broadcast %443 : vector<1x32xf32> to vector<24x32xf32>
    %445 = arith.addf %441, %444 : vector<24x32xf32>
    %446 = arith.addf %445, %362 : vector<24x32xf32>
    %447 = vector.shape_cast %446 : vector<24x32xf32> to vector<1x24x32xf32>
    %448 = vector.extract_strided_slice %447 {offsets = [0, 0, 0], sizes = [1, 1, 32], strides = [1, 1, 1]} : vector<1x24x32xf32> to vector<1x1x32xf32>
    %449 = vector.shape_cast %448 : vector<1x1x32xf32> to vector<1x32xf32>
    %c0_189 = arith.constant 0 : index
    %c0_190 = arith.constant 0 : index
    %450 = vector.load %arg18[%c0_189, %c0_190] : memref<1x32xf32, #tpu.memory_space<vmem>>, vector<1x32xf32>
    %c0_191 = arith.constant 0 : index
    %c0_192 = arith.constant 0 : index
    %451 = vector.load %arg19[%c0_191, %c0_192] : memref<1x32xf32, #tpu.memory_space<vmem>>, vector<1x32xf32>
    %cst_193 = arith.constant dense<0.000000e+00> : vector<1xf32>
    %452 = vector.multi_reduction <add>, %449, %cst_193 [1] : vector<1x32xf32> to vector<1xf32>
    %453 = vector.shape_cast %452 : vector<1xf32> to vector<1x1xf32>
    %cst_194 = arith.constant 3.200000e+01 : f32
    %454 = vector.broadcast %cst_194 : f32 to vector<1x1xf32>
    %455 = arith.divf %453, %454 : vector<1x1xf32>
    %456 = vector.broadcast %455 : vector<1x1xf32> to vector<1x32xf32>
    %457 = arith.subf %449, %456 : vector<1x32xf32>
    %458 = arith.mulf %457, %457 : vector<1x32xf32>
    %cst_195 = arith.constant dense<0.000000e+00> : vector<1xf32>
    %459 = vector.multi_reduction <add>, %458, %cst_195 [1] : vector<1x32xf32> to vector<1xf32>
    %460 = vector.shape_cast %459 : vector<1xf32> to vector<1x1xf32>
    %cst_196 = arith.constant 3.200000e+01 : f32
    %461 = vector.broadcast %cst_196 : f32 to vector<1x1xf32>
    %462 = arith.divf %460, %461 : vector<1x1xf32>
    %463 = vector.broadcast %455 : vector<1x1xf32> to vector<1x32xf32>
    %464 = arith.subf %449, %463 : vector<1x32xf32>
    %cst_197 = arith.constant 9.99999974E-6 : f32
    %465 = vector.broadcast %cst_197 : f32 to vector<1x1xf32>
    %466 = arith.addf %462, %465 : vector<1x1xf32>
    %467 = math.rsqrt %466 : vector<1x1xf32>
    %468 = vector.broadcast %467 : vector<1x1xf32> to vector<1x32xf32>
    %469 = arith.mulf %464, %468 : vector<1x32xf32>
    %470 = arith.mulf %469, %450 : vector<1x32xf32>
    %471 = arith.addf %470, %451 : vector<1x32xf32>
    %472 = arith.truncf %471 : vector<1x32xf32> to vector<1x32xbf16>
    %c0_198 = arith.constant 0 : index
    %c0_199 = arith.constant 0 : index
    %473 = vector.load %arg20[%c0_198, %c0_199] : memref<32x32xbf16, #tpu.memory_space<vmem>>, vector<32x32xbf16>
    %cst_200 = arith.constant dense<0.000000e+00> : vector<1x32xf32>
    %474 = tpu.matmul %472, %473, %cst_200 {dimension_numbers = #tpu.dot_dimension_numbers<[1], [0], [0], [1], [0, 0, 1, 1], [], []>} : vector<1x32xbf16>, vector<32x32xbf16>, vector<1x32xf32> -> vector<1x32xf32>
    %c0_201 = arith.constant 0 : index
    %c0_202 = arith.constant 0 : index
    %475 = vector.load %arg21[%c0_201, %c0_202] : memref<1x32xf32, #tpu.memory_space<vmem>>, vector<1x32xf32>
    %476 = arith.addf %474, %475 : vector<1x32xf32>
    %477 = arith.truncf %476 : vector<1x32xf32> to vector<1x32xbf16>
    %c0_203 = arith.constant 0 : index
    %c0_204 = arith.constant 0 : index
    %478 = vector.load %arg22[%c0_203, %c0_204] : memref<32x128xbf16, #tpu.memory_space<vmem>>, vector<32x128xbf16>
    %cst_205 = arith.constant dense<0.000000e+00> : vector<1x128xf32>
    %479 = tpu.matmul %477, %478, %cst_205 {dimension_numbers = #tpu.dot_dimension_numbers<[1], [0], [0], [1], [0, 0, 1, 1], [], []>} : vector<1x32xbf16>, vector<32x128xbf16>, vector<1x128xf32> -> vector<1x128xf32>
    %c0_206 = arith.constant 0 : index
    %c0_207 = arith.constant 0 : index
    %480 = vector.load %arg23[%c0_206, %c0_207] : memref<1x128xf32, #tpu.memory_space<vmem>>, vector<1x128xf32>
    %481 = arith.addf %479, %480 : vector<1x128xf32>
    %482 = vector.shape_cast %481 : vector<1x128xf32> to vector<1x1x128xf32>
    %c0_208 = arith.constant 0 : index
    %c0_209 = arith.constant 0 : index
    %c0_210 = arith.constant 0 : index
    %483 = vector.load %arg24[%c0_208, %c0_209, %c0_210] : memref<1x1x128xf32, #tpu.memory_space<vmem>>, vector<1x1x128xf32>
    tpu.vector_store %arg24[%c0_208, %c0_209, %c0_210], %482 {strides = array<i32>} : memref<1x1x128xf32, #tpu.memory_space<vmem>>, vector<1x1x128xf32>,
    return
  }
  func.func @transform_0(%arg0: i32) -> (i32, i32, i32) {
    %c0_i32 = arith.constant 0 : i32
    %c0_i32_0 = arith.constant 0 : i32
    %c0_i32_1 = arith.constant 0 : i32
    return %arg0, %c0_i32, %c0_i32_0 : i32, i32, i32
  }
  func.func @transform_1(%arg0: i32) -> (i32, i32) {
    %c0_i32 = arith.constant 0 : i32
    %c0_i32_0 = arith.constant 0 : i32
    %c0_i32_1 = arith.constant 0 : i32
    return %c0_i32, %c0_i32_0 : i32, i32
  }
  func.func @transform_2(%arg0: i32) -> (i32, i32) {
    %c0_i32 = arith.constant 0 : i32
    %c0_i32_0 = arith.constant 0 : i32
    %c0_i32_1 = arith.constant 0 : i32
    return %c0_i32, %c0_i32_0 : i32, i32
  }
  func.func @transform_3(%arg0: i32) -> (i32, i32) {
    %c0_i32 = arith.constant 0 : i32
    %c0_i32_0 = arith.constant 0 : i32
    %c0_i32_1 = arith.constant 0 : i32
    return %c0_i32, %c0_i32_0 : i32, i32
  }
  func.func @transform_4(%arg0: i32) -> (i32, i32) {
    %c0_i32 = arith.constant 0 : i32
    %c0_i32_0 = arith.constant 0 : i32
    %c0_i32_1 = arith.constant 0 : i32
    return %c0_i32, %c0_i32_0 : i32, i32
  }
  func.func @transform_5(%arg0: i32) -> (i32, i32, i32) {
    %c0_i32 = arith.constant 0 : i32
    %c0_i32_0 = arith.constant 0 : i32
    %c0_i32_1 = arith.constant 0 : i32
    %c0_i32_2 = arith.constant 0 : i32
    return %c0_i32, %c0_i32_0, %c0_i32_1 : i32, i32, i32
  }
  func.func @transform_6(%arg0: i32) -> (i32, i32, i32) {
    %c0_i32 = arith.constant 0 : i32
    %c0_i32_0 = arith.constant 0 : i32
    %c0_i32_1 = arith.constant 0 : i32
    %c0_i32_2 = arith.constant 0 : i32
    return %c0_i32, %c0_i32_0, %c0_i32_1 : i32, i32, i32
  }
  func.func @transform_7(%arg0: i32) -> (i32, i32, i32) {
    %c0_i32 = arith.constant 0 : i32
    %c0_i32_0 = arith.constant 0 : i32
    %c0_i32_1 = arith.constant 0 : i32
    %c0_i32_2 = arith.constant 0 : i32
    return %c0_i32, %c0_i32_0, %c0_i32_1 : i32, i32, i32
  }
  func.func @transform_8(%arg0: i32) -> (i32, i32, i32) {
    %c0_i32 = arith.constant 0 : i32
    %c0_i32_0 = arith.constant 0 : i32
    %c0_i32_1 = arith.constant 0 : i32
    %c0_i32_2 = arith.constant 0 : i32
    return %c0_i32, %c0_i32_0, %c0_i32_1 : i32, i32, i32
  }
  func.func @transform_9(%arg0: i32) -> (i32, i32, i32) {
    %c0_i32 = arith.constant 0 : i32
    %c0_i32_0 = arith.constant 0 : i32
    %c0_i32_1 = arith.constant 0 : i32
    %c0_i32_2 = arith.constant 0 : i32
    return %c0_i32, %c0_i32_0, %c0_i32_1 : i32, i32, i32
  }
  func.func @transform_10(%arg0: i32) -> (i32, i32, i32) {
    %c0_i32 = arith.constant 0 : i32
    %c0_i32_0 = arith.constant 0 : i32
    %c0_i32_1 = arith.constant 0 : i32
    %c0_i32_2 = arith.constant 0 : i32
    return %c0_i32, %c0_i32_0, %c0_i32_1 : i32, i32, i32
  }
  func.func @transform_11(%arg0: i32) -> (i32, i32, i32) {
    %c0_i32 = arith.constant 0 : i32
    %c0_i32_0 = arith.constant 0 : i32
    %c0_i32_1 = arith.constant 0 : i32
    %c0_i32_2 = arith.constant 0 : i32
    return %c0_i32, %c0_i32_0, %c0_i32_1 : i32, i32, i32
  }
  func.func @transform_12(%arg0: i32) -> (i32, i32, i32) {
    %c0_i32 = arith.constant 0 : i32
    %c0_i32_0 = arith.constant 0 : i32
    %c0_i32_1 = arith.constant 0 : i32
    %c0_i32_2 = arith.constant 0 : i32
    return %c0_i32, %c0_i32_0, %c0_i32_1 : i32, i32, i32
  }
  func.func @transform_13(%arg0: i32) -> (i32, i32, i32) {
    %c0_i32 = arith.constant 0 : i32
    %c0_i32_0 = arith.constant 0 : i32
    %c0_i32_1 = arith.constant 0 : i32
    %c0_i32_2 = arith.constant 0 : i32
    return %c0_i32, %c0_i32_0, %c0_i32_1 : i32, i32, i32
  }
  func.func @transform_14(%arg0: i32) -> (i32, i32, i32) {
    %c0_i32 = arith.constant 0 : i32
    %c0_i32_0 = arith.constant 0 : i32
    %c0_i32_1 = arith.constant 0 : i32
    %c0_i32_2 = arith.constant 0 : i32
    return %c0_i32, %c0_i32_0, %c0_i32_1 : i32, i32, i32
  }
  func.func @transform_15(%arg0: i32) -> (i32, i32, i32) {
    %c0_i32 = arith.constant 0 : i32
    %c0_i32_0 = arith.constant 0 : i32
    %c0_i32_1 = arith.constant 0 : i32
    %c0_i32_2 = arith.constant 0 : i32
    return %c0_i32, %c0_i32_0, %c0_i32_1 : i32, i32, i32
  }
  func.func @transform_16(%arg0: i32) -> (i32, i32, i32) {
    %c0_i32 = arith.constant 0 : i32
    %c0_i32_0 = arith.constant 0 : i32
    %c0_i32_1 = arith.constant 0 : i32
    %c0_i32_2 = arith.constant 0 : i32
    return %c0_i32, %c0_i32_0, %c0_i32_1 : i32, i32, i32
  }
  func.func @transform_17(%arg0: i32) -> (i32, i32) {
    %c0_i32 = arith.constant 0 : i32
    %c0_i32_0 = arith.constant 0 : i32
    %c0_i32_1 = arith.constant 0 : i32
    return %c0_i32, %c0_i32_0 : i32, i32
  }
  func.func @transform_18(%arg0: i32) -> (i32, i32) {
    %c0_i32 = arith.constant 0 : i32
    %c0_i32_0 = arith.constant 0 : i32
    %c0_i32_1 = arith.constant 0 : i32
    return %c0_i32, %c0_i32_0 : i32, i32
  }
  func.func @transform_19(%arg0: i32) -> (i32, i32) {
    %c0_i32 = arith.constant 0 : i32
    %c0_i32_0 = arith.constant 0 : i32
    %c0_i32_1 = arith.constant 0 : i32
    return %c0_i32, %c0_i32_0 : i32, i32
  }
  func.func @transform_20(%arg0: i32) -> (i32, i32) {
    %c0_i32 = arith.constant 0 : i32
    %c0_i32_0 = arith.constant 0 : i32
    %c0_i32_1 = arith.constant 0 : i32
    return %c0_i32, %c0_i32_0 : i32, i32
  }
  func.func @transform_21(%arg0: i32) -> (i32, i32) {
    %c0_i32 = arith.constant 0 : i32
    %c0_i32_0 = arith.constant 0 : i32
    %c0_i32_1 = arith.constant 0 : i32
    return %c0_i32, %c0_i32_0 : i32, i32
  }
  func.func @transform_22(%arg0: i32) -> (i32, i32) {
    %c0_i32 = arith.constant 0 : i32
    %c0_i32_0 = arith.constant 0 : i32
    %c0_i32_1 = arith.constant 0 : i32
    return %c0_i32, %c0_i32_0 : i32, i32
  }
  func.func @transform_23(%arg0: i32) -> (i32, i32, i32) {
    %c0_i32 = arith.constant 0 : i32
    %c0_i32_0 = arith.constant 0 : i32
    %c0_i32_1 = arith.constant 0 : i32
    return %arg0, %c0_i32, %c0_i32_0 : i32, i32, i32
  }
}

</mosaic_0001>

<bundles_post_ra>
// kernel: vit_forward.1
= control target key start
LH: loop header
LB: loop body
LE: loop exit
PB: predicated region body
PF: predicated region fallthrough
CT: control target
= control target key end

     0   :  { %s5363_s0 = inlined_call_operand.vmem [shape: bf16[2,16,48], index: 0, kind: input, shape index: {}]   ;;  %s5364_s1 = inlined_call_operand.vmem [shape: bf16[48,32], index: 1, kind: input, shape index: {}]   ;;  %s5365_s2 = inlined_call_operand.vmem [shape: f32[1,32], index: 2, kind: input, shape index: {}]   ;;  %s5366_s3 = inlined_call_operand.vmem [shape: f32[1,32], index: 3, kind: input, shape index: {}]   ;;  %s5367_s4 = inlined_call_operand.vmem [shape: f32[17,32], index: 4, kind: input, shape index: {}]   ;;  %s5368_s5 = inlined_call_operand.vmem [shape: f32[2,1,32], index: 5, kind: input, shape index: {}]   ;;  %s5369_s6 = inlined_call_operand.vmem [shape: f32[2,1,32], index: 6, kind: input, shape index: {}]   ;;  %s5370_s7 = inlined_call_operand.vmem [shape: bf16[2,32,96], index: 7, kind: input, shape index: {}]   ;;  %s5371_s8 = inlined_call_operand.vmem [shape: f32[2,1,96], index: 8, kind: input, shape index: {}]   ;;  %s5372_s9 = inlined_call_operand.vmem [shape: bf16[2,32,32], index: 9, kind: input, shape index: {}]   ;;  %s5373_s10 = inlined_call_operand.vmem [shape: f32[2,1,32], index: 10, kind: input, shape index: {}]   ;;  %s5374_s11 = inlined_call_operand.vmem [shape: f32[2,1,32], index: 11, kind: input, shape index: {}]   ;;  %s5375_s12 = inlined_call_operand.vmem [shape: f32[2,1,32], index: 12, kind: input, shape index: {}]   ;;  %s5376_s13 = inlined_call_operand.vmem [shape: bf16[2,32,128], index: 13, kind: input, shape index: {}]   ;;  %s5377_s14 = inlined_call_operand.vmem [shape: f32[2,1,128], index: 14, kind: input, shape index: {}]   ;;  %s5378_s15 = inlined_call_operand.vmem [shape: bf16[2,128,32], index: 15, kind: input, shape index: {}]   ;;  %s5379_s16 = inlined_call_operand.vmem [shape: f32[2,1,32], index: 16, kind: input, shape index: {}]   ;;  %s5380_s17 = inlined_call_operand.vmem [shape: f32[1,32], index: 17, kind: input, shape index: {}]   ;;  %s5381_s18 = inlined_call_operand.vmem [shape: f32[1,32], index: 18, kind: input, shape index: {}]   ;;  %s5382_s19 = inlined_call_operand.vmem [shape: bf16[32,32], index: 19, kind: input, shape index: {}]   ;;  %s5383_s20 = inlined_call_operand.vmem [shape: f32[1,32], index: 20, kind: input, shape index: {}]   ;;  %s5384_s21 = inlined_call_operand.vmem [shape: bf16[32,128], index: 21, kind: input, shape index: {}]   ;;  %s5385_s22 = inlined_call_operand.vmem [shape: f32[1,128], index: 22, kind: input, shape index: {}]   ;;  %s5386_s23 = inlined_call_operand.hbm [shape: f32[2,1,128], index: 23, kind: output, shape index: {}]  }
   0x1   :  { %5426 = sst [smem:[#allocation13_spill]] %s5363_s0 }
   0x2   :  { %5427 = sst [smem:[#allocation14_spill]] %s5364_s1 }
   0x3   :  { %5428 = sst [smem:[#allocation15_spill]] %s5365_s2 }
   0x4   :  { %5429 = sst [smem:[#allocation16_spill]] %s5366_s3 }
   0x5   :  { %5430 = sst [smem:[#allocation17_spill]] %s5367_s4 }
   0x6   :  { %5431 = sst [smem:[#allocation18_spill]] %s5368_s5 }
   0x7   :  { %5432 = sst [smem:[#allocation19_spill]] %s5369_s6 }
   0x8   :  { %5433 = sst [smem:[#allocation20_spill]] %s5370_s7 }
   0x9   :  { %5434 = sst [smem:[#allocation21_spill]] %s5371_s8 }
   0xa   :  { %5435 = sst [smem:[#allocation22_spill]] %s5385_s22 }
   0xb   :  { %5436 = sst [smem:[#allocation23_spill]] %s5386_s23 }
   0xc   :  { %28 = vsyncpa [#allocation4], 0 }
   0xd   :  { %30 = vsyncpa [#allocation4 + $0x1], 0  ;;  %s4572_s4 = smov 0   ;;  %s4574_s30 = smov 0  }
   0xe   :  { %s4576_s24 = smov 0   ;;  %s4578_s25 = smov 0  }
   0xf LB: > { %5437 = sst [smem:[#allocation6_spill]] %s4419_s4  ;;  %s4593_s5 = sadd.s32 4294967295, %s4431_s25   ;;  %s4431_s25 = sphi %s4578_s25, %s5473_s25   ;;  %s4427_s24 = sphi %s4576_s24, %s5475_s24   ;;  %s4423_s30 = sphi %s4574_s30, %s5477_s30   ;;  %s4419_s4 = sphi %s4572_s4, %s5476_s4  }
  0x10   : > { %5438 = sst [smem:[#allocation7_spill]] %s4427_s24  ;;  %s3570_s1 = sadd.s32 4294967294, %s4431_s25  }
  0x11   : > { %5439 = sst [smem:[#allocation8_spill]] %s4431_s25  ;;  %s4597_s26 = sadd.s32 1, %s4431_s25  }
  0x12   : > { %5440 = sst [smem:[#allocation9_spill]] %s4597_s26  ;;  %s531_s2 = sadd.s32 1, %s4427_s24 }
  0x13   : > { %s528_s6 = ssub.s32 %s4431_s25, %s4597_s26  ;;  %p541_p0 = scmp.ne.s32.totalorder %s4427_s24, %s4423_s30 }
  0x14   : > { %p529_p1 = scmp.eq.s32.totalorder %s528_s6, 0  ;;  %p542_p2 = scmp.eq.s32.totalorder %s4593_s5, 1 }
  0x15   : > { %p547_p3 = scmp.ne.s32.totalorder %s4423_s30, %s4419_s4  ;;  %p548_p4 = scmp.eq.s32.totalorder %s3570_s1, 1 }
  0x16   : > { %s4608_s27 = scalar_select %p529_p1, %s4427_s24, %s531_s2  }
  0x17   : > { %p4610_p5 = por %p542_p2, %p541_p0  ;;  %p4614_p6 = por %p548_p4, %p547_p3 }
  0x18   : > { %5441 = sst [smem:[#allocation10_spill]] %s4608_s27  ;;  %p3573_p7 = scmp.ge.s32.totalorder %s4431_s25, 1 }
  0x19   : > { %s5442_s7 = scalar_select %p4610_p5, 1, 0 }
  0x1a   : > { %s5444_s28 = scalar_select %p4614_p6, 1, 0 }
  0x1b   : > { %5443 = sst [smem:[#allocation11_spill]] %s5442_s7  ;;  %p640_p8 = scmp.lt.s32.totalorder %s4431_s25, 3 }
  0x1c   : > { %5445 = sst [smem:[#allocation12_spill]] %s5444_s28 }
  0x1d   : > { %p641_p9 = pnand %p3573_p7, %p640_p8 }
  0x1e   : > { %s5446_s0 = sld [smem:[#allocation14_spill]] (!%p641_p9)  ;;  %v4433_v1 = vmov (!%p641_p9), 0.0   ;;  %vm4434_vm0 = vmmov (!%p641_p9), 0   ;;  %p703_p10 = scmp.lt.s32.totalorder (!%p641_p9), %s4593_s5, 1  ;;  %vm747_vm1 = vcmask (!%p641_p9), 392192   ;;  %vm795_vm2 = vcmask (!%p641_p9), 253952  }
  0x1f   : > { %644 = sbr.rel (%p641_p9) target bundleno = 8527 (0x214f), region = 112  ;;  %3834 = vmatprep.subr.bf16.mxu0 (!%p641_p9), %v4433_v1  ;;  %3840 = vmatprep.mubr.msk.bf16.mxu0 (!%p641_p9), %vm4434_vm0, %v4433_v1  ;;  %s5447_s1 = sld [smem:[#allocation13_spill]] (!%p641_p9)  ;;  %vm804_vm3 = vcmask (!%p641_p9), 260096   ;;  %vm801_vm4 = vcmask (!%p641_p9), 261120   ;;  %vm960_vm5 = vcmask (!%p641_p9), 64512   ;;  %vm1021_vm7 = vcmask (!%p641_p9), 195584  }
  0x20   : > { %s5448_s25 = sld [smem:[#allocation16_spill]] (!%p641_p9)  ;;  %s5449_s22 = sld [smem:[#allocation17_spill]] (!%p641_p9)  ;;  %805 = vst.msk [vmem:[#allocation2 + $0x11] sm:$0x7f] (!%p641_p9), %vm804_vm3, %v4433_v1  ;;  %vm1068_vm8 = vcmask (!%p641_p9), 1043456   ;;  %vm1654_vm9 = vcmask (!%p641_p9), 130048  }
  0x21   : > { %s5451_s28 = sld [smem:[#allocation20_spill]] (!%p641_p9)  ;;  %s5452_s26 = sld [smem:[#allocation18_spill]] (!%p641_p9) }
  0x22   : > { %s5453_s29 = sld [smem:[#allocation19_spill]] (!%p641_p9)  ;;  %s5454_s8 = sld [smem:[#allocation21_spill]] (!%p641_p9) }
  0x23   : > { %s4436_s7 = smov (!%p641_p9), 88   ;;  %s5423_s3 = smov (!%p641_p9), 120  }
  0x24   : > { %v4187_v0 = vld [vmem:[%s5446_s0] sm:$0xff] (!%p641_p9)   ;;  %v4188_v2 = vld [vmem:[%s5446_s0 + $0x8] sm:$0xff] (!%p641_p9)   ;;  %v4189_v3 = vld [vmem:[%s5446_s0 + $0x10] sm:$0xff] (!%p641_p9)   ;;  %s5415_s24 = smov (!%p641_p9), 80   ;;  %s5403_s23 = smov (!%p641_p9), 72  }
  0x25   : > { %3835 = vmatpush3.bf16.msra.mxu0 (!%p641_p9), %v4187_v0  ;;  %s5401_s4 = smov (!%p641_p9), 104   ;;  %s5469_s0 = sld [smem:[#allocation23_spill]] (!%p641_p9) }
  0x26   : > { %3836 = vmatprep.subr.bf16.mxu0 %v4433_v1  ;;  %s704_s6 = scalar_select %p703_p10, %s4593_s5, 1  ;;  %v792_v5 = vld [vmem:[%s5448_s25] sm:$0x1]  ;;  %v797_v10 = vld [vmem:[%s5449_s22 + $0x1] sm:$0xff]  ;;  %v798_v14 = vld [vmem:[%s5449_s22 + $0x9] sm:$0xff] }
  0x27   : > { %v793_v6 = vld [vmem:[%s5449_s22] sm:$0x1]  ;;  %v4192_v41 = vld [vmem:[%s5451_s28 + $0x8] sm:$0xff]   ;;  %s4435_s25 = smov 96  }
  0x28   : > { %s3715_s27 = sshll.u32 %s704_s6, 3  ;;  %v794_v7 = vadd.f32 %v793_v6, %v792_v5  ;;  %v4191_v40 = vld [vmem:[%s5451_s28] sm:$0xff]   ;;  %s5405_s6 = smov 48  }
  0x29   : > { %3837 = vmatpush3.bf16.msra.mxu0 %v4188_v2  ;;  %s707_s2 = scalar_lea.vmem %s5447_s1, %s3715_s27  ;;  %s5450_s27 = sld [smem:[#allocation15_spill]]  ;;  %3844 = vmatprep.subr.bf16.mxu1 %v4191_v40  ;;  %v3582_v53 = vld [vmem:[%s5452_s26] ss:$0 sm:$0xff] }
  0x2a   : > { %3838 = vmatprep.subr.bf16.mxu0 %v4433_v1  ;;  %v4190_v4 = vld [vmem:[%s707_s2] sm:$0xff]   ;;  %796 = vst.msk [vmem:[#allocation2] sm:$0x1] %vm795_vm2, %v794_v7  ;;  %3845 = vmatpush3.bf16.msra.mxu1 %v4191_v40  ;;  %s5421_s1 = smov 64   ;;  %s5419_s2 = smov 56  }
  0x2b   : > { %3846 = vmatprep.subr.bf16.mxu1 %v4192_v41  ;;  %v3583_v59 = vld [vmem:[%s5453_s29] ss:$0 sm:$0xff] }
  0x2d   : > { %3839 = vmatpush3.bf16.msra.mxu0 %v4189_v3 }
  0x2e   : > { %3847 = vmatpush3.bf16.msra.mxu1 %v4192_v41 }
  0x2f   : > { %v3576_v8 = vld [vmem:[%s5450_s27] ss:$0 sm:$0xff]  ;;  %s5413_s27 = smov 112  }
  0x30   : > { %3841 = vmatmul.mubr.msk.bf16.vlgmr.msra.gmra.mrb[0].mxu0 %vm747_vm1, %v4190_v4  ;;  %v3584_v4 = vld [vmem:[%s5454_s8] ss:$0 sm:$0xff] }
 0x103   : > { %v785_v9 = vpop.f32.mrb[0].mxu0 }
 0x104   : > { %v786_v11 = vadd.f32 %v3576_v8, %v785_v9  ;;  %v3842_v12 = vpop.f32.mrb[1].mxu0 }
 0x105   : > { %v788_v13 = vpop.f32.mrb[2].mxu0 }
 0x106   : > { %v799_v15 = vadd.f32 %v797_v10, %v786_v11  ;;  %v789_v16 = vadd.f32 %v3576_v8, %v788_v13  ;;  %v3843_v17 = vpop.f32.mrb[3].mxu0 }
 0x108   : > { %802 = vst.msk [vmem:[#allocation2 + $0x1] sm:$0xff] %vm801_vm4, %v799_v15  ;;  %v800_v18 = vadd.f32 %v798_v14, %v789_v16 }
 0x10a   : > { %803 = vst.msk [vmem:[#allocation2 + $0x9] sm:$0xff] %vm801_vm4, %v800_v18 }
 0x10f   : > { %v4658_v19 = vld [vmem:[#allocation2] sm:$0xff] }
 0x110   : > { %v815_v20 = vsel %vm801_vm4, %v4658_v19, 0.0 }
 0x111   : > { %816 = vadd.xlane.f32.xlu0 %v815_v20  ;;  %v4662_v21 = vld [vmem:[#allocation2 + $0x10] sm:$0xff]  ;;  %v4664_v22 = vld [vmem:[#allocation2 + $0x8] sm:$0xff] }
 0x112   : > { %v821_v23 = vsel %vm801_vm4, %v4662_v21, 0.0  ;;  %v818_v24 = vsel %vm801_vm4, %v4664_v22, 0.0 }
 0x113   : > { %822 = vadd.xlane.f32.xlu1 %v821_v23 }
 0x115   : > { %819 = vadd.xlane.f32.xlu0 %v818_v24 }
 0x19e   : > { %v817_v25 = vpop.xlane.xlu0 %816 }
 0x19f   : > { %v825_v26 = vmul.f32 0.03125, %v817_v25 }
 0x1a0   : > { %v823_v27 = vpop.xlane.xlu1 %822 }
 0x1a1   : > { %v828_v28 = vsub.f32 %v4658_v19, %v825_v26  ;;  %v827_v29 = vmul.f32 0.03125, %v823_v27  ;;  %v809_v27 = vlaneseq }
 0x1a2   : > { %v820_v30 = vpop.xlane.xlu0 %819 }
 0x1a3   : > { %v830_v31 = vsub.f32 %v4662_v21, %v827_v29  ;;  %v826_v32 = vmul.f32 0.03125, %v820_v30  ;;  %v831_v33 = vmul.f32 %v828_v28, %v828_v28  ;;  %v4438_v29 = vmov -1e+30  }
 0x1a5   : > { %v829_v34 = vsub.f32 %v4664_v22, %v826_v32  ;;  %v834_v35 = vsel %vm801_vm4, %v831_v33, 0.0  ;;  %v833_v36 = vmul.f32 %v830_v31, %v830_v31 }
 0x1a6   : > { %835 = vadd.xlane.f32.xlu1 %v834_v35 }
 0x1a7   : > { %v832_v37 = vmul.f32 %v829_v34, %v829_v34  ;;  %v840_v38 = vsel %vm801_vm4, %v833_v36, 0.0 }
 0x1a9   : > { %v837_v39 = vsel %vm801_vm4, %v832_v37, 0.0 }
 0x1aa   : > { %841 = vadd.xlane.f32.xlu1 %v840_v38  ;;  %838 = vadd.xlane.f32.xlu0 %v837_v39 }
 0x233   : > { %v836_v42 = vpop.xlane.xlu1 %835 }
 0x234   : > { %v843_v43 = vmul.f32 0.03125, %v836_v42 }
 0x236   : > { %v846_v44 = vadd.f32 1e-05, %v843_v43 }
 0x237   : > { %v842_v45 = vpop.xlane.xlu1 %841  ;;  %v839_v46 = vpop.xlane.xlu0 %838 }
 0x238   : > { %4223 = vrsqrt.f32 %v846_v44  ;;  %v845_v47 = vmul.f32 0.03125, %v842_v45  ;;  %v844_v48 = vmul.f32 0.03125, %v839_v46 }
 0x23a   : > { %v848_v49 = vadd.f32 1e-05, %v845_v47  ;;  %v847_v50 = vadd.f32 1e-05, %v844_v48 }
 0x23c   : > { %4225 = vrsqrt.f32 %v848_v49 }
 0x23d   : > { %4227 = vrsqrt.f32 %v847_v50 }
 0x242   : > { %v4224_v51 = vpop.eup %4223 }
 0x243   : > { %v852_v52 = vmul.f32 %v4224_v51, %v828_v28  ;;  %v810_v28 = vand.u32 127, %v809_v27 }
 0x245   : > { %v861_v58 = vmul.f32 %v3582_v53, %v852_v52  ;;  %vm811_vm6 = vcmp.lt.s32.totalorder %v810_v28, 17 }
 0x246   : > { %v4226_v54 = vpop.eup %4225  ;;  %v4723_v30 = vsel %vm811_vm6, 0.0, %v4438_v29 }
 0x247   : > { %v4228_v55 = vpop.eup %4227  ;;  %v854_v56 = vmul.f32 %v4226_v54, %v830_v31  ;;  %v870_v63 = vadd.f32 %v3583_v59, %v861_v58 }
 0x248   : > { %v853_v57 = vmul.f32 %v4228_v55, %v829_v34 }
 0x249   : > { %v863_v60 = vmul.f32 %v3582_v53, %v854_v56 }
 0x24a   : > { %v862_v61 = vmul.f32 %v3582_v53, %v853_v57 }
 0x24b   : > { %v872_v62 = vadd.f32 %v3583_v59, %v863_v60 }
 0x24c   : > { %v871_v0 = vadd.f32 %v3583_v59, %v862_v61 }
 0x24d   : > { %v874_v2 = vpack.c.bf16 %v872_v62, %v872_v62 }
 0x24e   : > { %v873_v3 = vpack.c.bf16 %v871_v0, %v870_v63 }
 0x250   : > { %3848 = vmatprep.mubr.msk.bf16.mxu1 %vm801_vm4, %v873_v3 }
 0x251   : > { %3849 = vmatmul.mubr.msk.bf16.vlgmr.msra.gmra.mrb[0].mxu1 %vm801_vm4, %v874_v2 }
 0x324   : > { %v3850_v5 = vpop.f32.mrb[0].mxu1 }
 0x325   : > { %v947_v6 = vadd.f32 %v3850_v5, %v3584_v4  ;;  %v938_v7 = vpop.f32.mrb[1].mxu1 }
 0x326   : > { %v3851_v8 = vpop.f32.mrb[2].mxu1  ;;  %v939_v11 = vadd.f32 %v3584_v4, %v938_v7 }
 0x327   : > { %v4693_v9 = vpack.c.bf16 %v947_v6, %v947_v6  ;;  %v941_v10 = vpop.f32.mrb[3].mxu1 }
 0x328   : > { %v942_v12 = vadd.f32 %v3584_v4, %v941_v10 }
 0x329   : > { %958 = vrot.lane.b32.xlu1 %v4693_v9, %s4435_s25 }
 0x32a   : > { %v4697_v13 = vpack.c.bf16 %v942_v12, %v939_v11 }
 0x32c   : > { %956 = vrot.lane.b32.xlu0 %v4697_v13, %s4435_s25  ;;  %3856 = vmatprep.mubr.msk.bf16.mxu1 %vm960_vm5, %v4697_v13 }
 0x32d   : > { %1124 = vrot.lane.b32.xlu1 %v4697_v13, %s4436_s7 }
 0x330   : > { %1120 = vrot.lane.b32.xlu0 %v4697_v13, %s5423_s3 }
 0x331   : > { %1126 = vrot.lane.b32.xlu1 %v4693_v9, %s4436_s7 }
 0x335   : > { %1122 = vrot.lane.b32.xlu1 %v4693_v9, %s5423_s3  ;;  %s5455_s3 = smov 120  }
 0x39b   : > { %v959_v14 = vpop.permute.xlu1 %958 }
 0x39c   : > { %v971_v24 = vsel %vm960_vm5, %v959_v14, 0 }
 0x39e   : > { %v957_v15 = vpop.permute.xlu0 %956 }
 0x39f   : > { %v1125_v16 = vpop.permute.xlu1 %1124  ;;  %4076 = vmatprep.subr.msk.bf16.mxu1 %vm960_vm5, %v957_v15  ;;  %v968_v17 = vsel %vm960_vm5, %v957_v15, 0 }
 0x3a0   : > { %3853 = vmatpush3.bf16.xpose.msra.mxu1 %v968_v17  ;;  %4079 = vmatprep.subr.msk.bf16.mxu0 %vm960_vm5, %v1125_v16  ;;  %v1135_v18 = vsel %vm960_vm5, %v1125_v16, 0 }
 0x3a1   : > { %4077 = vmatprep.subr.msk.bf16.mxu1 %vm960_vm5, %v959_v14  ;;  %3869 = vmatpush3.bf16.xpose.msra.mxu0 %v1135_v18 }
 0x3a2   : > { %v1121_v20 = vpop.permute.xlu0 %1120 }
 0x3a3   : > { %v1127_v23 = vpop.permute.xlu1 %1126  ;;  %3872 = vmatprep.mubr.msk.bf16.mxu0 %vm960_vm5, %v1121_v20 }
 0x3a4   : > { %4080 = vmatprep.subr.msk.bf16.mxu0 %vm960_vm5, %v1127_v23  ;;  %v1138_v25 = vsel %vm960_vm5, %v1127_v23, 0 }
 0x3a7   : > { %v1123_v26 = vpop.permute.xlu1 %1122 }
 0x3a8   : > { %3855 = vmatpush3.bf16.xpose.msra.mxu1 %v971_v24 }
 0x3a9   : > { %3871 = vmatpush3.bf16.xpose.msra.mxu0 %v1138_v25 }
 0x3af   : > { %3857 = vmatmul.mubr.msk.bf16.vlgmr.msra.gmra.mrb[4].mxu1 %vm960_vm5, %v4693_v9 }
 0x3b0   : > { %3873 = vmatmul.mubr.msk.bf16.vlgmr.msra.gmra.mrb[4].mxu0 %vm960_vm5, %v1123_v26 }
 0x482   : > { %v3858_v31 = vpop.f32.mrb[4].mxu1 }
 0x483   : > { %v1007_v32 = vpop.f32.mrb[5].mxu1  ;;  %v3874_v33 = vpop.f32.mrb[4].mxu0  ;;  %v1016_v39 = vadd.f32 %v3858_v31, %v4723_v30 }
 0x484   : > { %v1008_v34 = vadd.f32 %v1007_v32, %v4723_v30  ;;  %v3859_v35 = vpop.f32.mrb[6].mxu1  ;;  %v1174_v36 = vpop.f32.mrb[5].mxu0  ;;  %v1183_v43 = vadd.f32 %v3874_v33, %v4723_v30 }
 0x485   : > { %v1010_v37 = vpop.f32.mrb[7].mxu1  ;;  %v3875_v38 = vpop.f32.mrb[6].mxu0  ;;  %v1175_v45 = vadd.f32 %v1174_v36, %v4723_v30  ;;  %v1028_v46 = vsel %vm1021_vm7, %v1016_v39, -inf }
 0x486   : > { %v1011_v40 = vadd.f32 %v1010_v37, %v4723_v30  ;;  %v1177_v41 = vpop.f32.mrb[7].mxu0  ;;  %v1022_v42 = vsel %vm1021_vm7, %v1008_v34, -inf  ;;  %v1194_v47 = vsel %vm1021_vm7, %v1183_v43, -inf }
 0x487   : > { %1023 = vmax.xlane.f32.xlu0 %v1022_v42  ;;  %v1178_v48 = vadd.f32 %v1177_v41, %v4723_v30  ;;  %v1188_v49 = vsel %vm1021_vm7, %v1175_v45, -inf }
 0x488   : > { %v1025_v44 = vsel %vm1021_vm7, %v1011_v40, -inf }
 0x489   : > { %1026 = vmax.xlane.f32.xlu1 %v1025_v44  ;;  %v1191_v50 = vsel %vm1021_vm7, %v1178_v48, -inf }
 0x48b   : > { %1029 = vmax.xlane.f32.xlu0 %v1028_v46 }
 0x48d   : > { %1195 = vmax.xlane.f32.xlu1 %v1194_v47 }
 0x48f   : > { %1189 = vmax.xlane.f32.xlu0 %v1188_v49 }
 0x493   : > { %1192 = vmax.xlane.f32.xlu0 %v1191_v50 }
 0x514   : > { %v1024_v51 = vpop.xlane.xlu0 %1023 }
 0x515   : > { %v1031_v52 = vsub.f32 %v1008_v34, %v1024_v51 }
 0x516   : > { %v1027_v53 = vpop.xlane.xlu1 %1026 }
 0x517   : > { %v1034_v56 = vmul.f32 1.442695, %v1031_v52  ;;  %v1032_v10 = vsub.f32 %v1011_v40, %v1027_v53 }
 0x518   : > { %v1030_v54 = vpop.xlane.xlu0 %1029 }
 0x519   : > { %v1033_v55 = vsub.f32 %v1016_v39, %v1030_v54  ;;  %v1036_v12 = vmul.f32 1.442695, %v1032_v10 }
 0x51a   : > { %v1196_v57 = vpop.xlane.xlu1 %1195 }
 0x51b   : > { %v1038_v58 = vmul.f32 1.442695, %v1033_v55  ;;  %v1199_v59 = vsub.f32 %v1183_v43, %v1196_v57 }
 0x51c   : > { %v1190_v4 = vpop.xlane.xlu0 %1189 }
 0x51d   : > { %4229 = vpow2.f32 %v1038_v58  ;;  %v1204_v60 = vmul.f32 1.442695, %v1199_v59  ;;  %v1197_v7 = vsub.f32 %v1175_v45, %v1190_v4 }
 0x51e   : > { %4231 = vpow2.f32 %v1034_v56 }
 0x51f   : > { %4233 = vpow2.f32 %v1204_v60  ;;  %v1200_v11 = vmul.f32 1.442695, %v1197_v7 }
 0x520   : > { %v1193_v5 = vpop.xlane.xlu0 %1192 }
 0x521   : > { %v1198_v6 = vsub.f32 %v1178_v48, %v1193_v5 }
 0x523   : > { %v1202_v8 = vmul.f32 1.442695, %v1198_v6 }
 0x525   : > { %4235 = vpow2.f32 %v1202_v8 }
 0x526   : > { %4237 = vpow2.f32 %v1200_v11 }
 0x527   : > { %v4737_v61 = vpop.eup %4229  ;;  %4239 = vpow2.f32 %v1036_v12 }
 0x528   : > { %v4739_v62 = vpop.eup %4231  ;;  %v1046_v63 = vsel %vm1021_vm7, %v4737_v61, 0.0 }
 0x529   : > { %v4743_v0 = vpop.eup %4233  ;;  %1047 = vadd.xlane.f32.xlu0 %v1046_v63  ;;  %v1040_v3 = vsel %vm1021_vm7, %v4739_v62, 0.0 }
 0x52a   : > { %v1212_v2 = vsel %vm1021_vm7, %v4743_v0, 0.0 }
 0x52b   : > { %1213 = vadd.xlane.f32.xlu1 %v1212_v2 }
 0x52d   : > { %1041 = vadd.xlane.f32.xlu0 %v1040_v3 }
 0x52f   : > { %v4236_v14 = vpop.eup %4235 }
 0x530   : > { %v4238_v15 = vpop.eup %4237  ;;  %v1209_v16 = vsel %vm1021_vm7, %v4236_v14, 0.0 }
 0x531   : > { %v1206_v17 = vsel %vm1021_vm7, %v4238_v15, 0.0  ;;  %v4240_v18 = vpop.eup %4239 }
 0x532   : > { %v1043_v20 = vsel %vm1021_vm7, %v4240_v18, 0.0 }
 0x53c   : > { %1059 = vrot.lane.b32.xlu1 %v4693_v9, %s5421_s1 }
 0x540   : > { %1223 = vrot.lane.b32.xlu1 %v4697_v13, %s5419_s2 }
 0x543   : > { %1057 = vrot.lane.b32.xlu0 %v4697_v13, %s5421_s1  ;;  %s5458_s1 = smov 80  }
 0x562   : > { %1210 = vadd.xlane.f32.xlu0 %v1209_v16 }
 0x564   : > { %1207 = vadd.xlane.f32.xlu1 %v1206_v17 }
 0x568   : > { %1044 = vadd.xlane.f32.xlu1 %v1043_v20 }
 0x578   : > { %1289 = vrot.lane.b32.xlu0 %v4697_v13, %s5415_s24 }
 0x579   : > { %1225 = vrot.lane.b32.xlu1 %v4693_v9, %s5419_s2  ;;  %s5463_s2 = smov 40  }
 0x57c   : > { %1285 = vrot.lane.b32.xlu0 %v4697_v13, %s5413_s27 }
 0x57d   : > { %1291 = vrot.lane.b32.xlu1 %v4693_v9, %s5415_s24  ;;  %s5417_s24 = smov 24  }
 0x581   : > { %1287 = vrot.lane.b32.xlu1 %v4693_v9, %s5413_s27  ;;  %s5462_s27 = smov 104  }
 0x5b6   : > { %v1048_v23 = vpop.xlane.xlu0 %1047 }
 0x5b7   : > { %4241 = vrcp.f32 %v1048_v23 }
 0x5b8   : > { %v1214_v24 = vpop.xlane.xlu1 %1213 }
 0x5ba   : > { %v1042_v25 = vpop.xlane.xlu0 %1041 }
 0x5bb   : > { %4243 = vrcp.f32 %v1042_v25 }
 0x5bc   : > { %v1060_v26 = vpop.permute.xlu1 %1059 }
 0x5bd   : > { %v1070_v28 = vsel %vm1068_vm8, %v1060_v26, 0 }
 0x5be   : > { %v1058_v27 = vpop.permute.xlu0 %1057 }
 0x5bf   : > { %3860 = vmatprep.subr.bf16.mxu1 %v1058_v27 }
 0x5c0   : > { %3861 = vmatpush3.bf16.msra.mxu1 %v1058_v27  ;;  %v1224_v29 = vpop.permute.xlu1 %1223 }
 0x5c1   : > { %4078 = vmatprep.subr.msk.bf16.mxu1 %vm1068_vm8, %v1060_v26  ;;  %v4242_v34 = vpop.eup %4241 }
 0x5c2   : > { %v1054_v39 = vmul.f32 %v4242_v34, %v4737_v61 }
 0x5c4   : > { %3863 = vmatpush3.bf16.msra.mxu1 %v1070_v28  ;;  %v1056_v45 = vpack.c.bf16 %v1054_v39, %v1054_v39 }
 0x5c5   : > { %3876 = vmatprep.subr.bf16.mxu1 %v1224_v29  ;;  %v4244_v35 = vpop.eup %4243 }
 0x5c6   : > { %v1050_v40 = vmul.f32 %v4244_v35, %v4739_v62 }
 0x5ef   : > { %v1211_v32 = vpop.xlane.xlu0 %1210 }
 0x5f1   : > { %v1208_v31 = vpop.xlane.xlu1 %1207 }
 0x5f2   : > { %4245 = vrcp.f32 %v1208_v31 }
 0x5f3   : > { %4247 = vrcp.f32 %v1211_v32  ;;  %v1290_v49 = vpop.permute.xlu0 %1289 }
 0x5f4   : > { %v1300_v54 = vsel %vm960_vm5, %v1290_v49, 0 }
 0x5f5   : > { %v1045_v33 = vpop.xlane.xlu1 %1044 }
 0x5f6   : > { %4249 = vrcp.f32 %v1045_v33 }
 0x5f7   : > { %4251 = vrcp.f32 %v1214_v24  ;;  %v1286_v53 = vpop.permute.xlu0 %1285 }
 0x5f9   : > { %v1226_v48 = vpop.permute.xlu1 %1225 }
 0x5fa   : > { %v1235_v51 = vsel %vm1068_vm8, %v1226_v48, 0 }
 0x5fc   : > { %v4246_v36 = vpop.eup %4245 }
 0x5fd   : > { %v4248_v37 = vpop.eup %4247  ;;  %v1216_v42 = vmul.f32 %v4246_v36, %v4238_v15  ;;  %v1292_v55 = vpop.permute.xlu1 %1291 }
 0x5fe   : > { %v1218_v44 = vmul.f32 %v4248_v37, %v4236_v14  ;;  %v1303_v56 = vsel %vm960_vm5, %v1292_v55, 0 }
 0x600   : > { %v4250_v38 = vpop.eup %4249  ;;  %v1221_v47 = vpack.c.bf16 %v1218_v44, %v1216_v42 }
 0x601   : > { %v1052_v41 = vmul.f32 %v4250_v38, %v4240_v18  ;;  %v4252_v46 = vpop.eup %4251  ;;  %v1288_v57 = vpop.permute.xlu1 %1287 }
 0x602   : > { %v1220_v50 = vmul.f32 %v4252_v46, %v4743_v0 }
 0x603   : > { %v1055_v43 = vpack.c.bf16 %v1052_v41, %v1050_v40 }
 0x604   : > { %v1222_v52 = vpack.c.bf16 %v1220_v50, %v1220_v50 }
 0x605   : > { %3864 = vmatprep.mubr.msk.bf16.mxu1 %vm1021_vm7, %v1055_v43 }
 0x606   : > { %3865 = vmatmul.mubr.msk.bf16.vlgmr.msra.gmra.mrb[8].mxu1 %vm1021_vm7, %v1056_v45 }
 0x607   : > { %3877 = vmatpush3.bf16.msra.mxu1 %v1224_v29  ;;  %3880 = vmatprep.mubr.msk.bf16.mxu1 %vm1021_vm7, %v1221_v47 }
 0x608   : > { %4081 = vmatprep.subr.msk.bf16.mxu1 %vm1068_vm8, %v1226_v48 }
 0x60b   : > { %3879 = vmatpush3.bf16.msra.mxu1 %v1235_v51 }
 0x60c   : > { %4082 = vmatprep.subr.msk.bf16.mxu1 %vm960_vm5, %v1290_v49 }
 0x60e   : > { %3881 = vmatmul.mubr.msk.bf16.vlgmr.msra.gmra.mrb[12].mxu1 %vm1021_vm7, %v1222_v52 }
 0x60f   : > { %3888 = vmatprep.mubr.msk.bf16.mxu1 %vm960_vm5, %v1286_v53 }
 0x614   : > { %3885 = vmatpush3.bf16.xpose.msra.mxu1 %v1300_v54 }
 0x615   : > { %4083 = vmatprep.subr.msk.bf16.mxu1 %vm960_vm5, %v1292_v55 }
 0x61c   : > { %3887 = vmatpush3.bf16.xpose.msra.mxu1 %v1303_v56 }
 0x623   : > { %3889 = vmatmul.mubr.msk.bf16.vlgmr.msra.gmra.mrb[16].mxu1 %vm960_vm5, %v1288_v57 }
 0x6d9   : > { %v4785_v58 = vpop.f32.mrb[8].mxu1 }
 0x6da   : > { %v4787_v59 = vpop.f32.mrb[9].mxu1 }
 0x6db   : > { %v3867_v60 = vpop.f32.mrb[10].mxu1 }
 0x6dc   : > { %v4789_v61 = vpop.f32.mrb[11].mxu1 }
 0x6e1   : > { %v4791_v62 = vpop.f32.mrb[12].mxu1 }
 0x6e2   : > { %v4793_v63 = vpop.f32.mrb[13].mxu1 }
 0x6e3   : > { %v3883_v0 = vpop.f32.mrb[14].mxu1 }
 0x6e4   : > { %v4795_v2 = vpop.f32.mrb[15].mxu1 }
 0x6e5   : > { %v4157_v3 = vpack.i.bf16 %v4795_v2, %v4793_v63 }
 0x6f6   : > { %v3890_v4 = vpop.f32.mrb[16].mxu1 }
 0x6f7   : > { %v1339_v5 = vpop.f32.mrb[17].mxu1  ;;  %v1348_v10 = vadd.f32 %v3890_v4, %v4723_v30 }
 0x6f8   : > { %v1340_v6 = vadd.f32 %v1339_v5, %v4723_v30  ;;  %v3891_v7 = vpop.f32.mrb[18].mxu1 }
 0x6f9   : > { %v1342_v8 = vpop.f32.mrb[19].mxu1  ;;  %v1359_v15 = vsel %vm1021_vm7, %v1348_v10, -inf }
 0x6fa   : > { %v1343_v11 = vadd.f32 %v1342_v8, %v4723_v30  ;;  %v1353_v12 = vsel %vm1021_vm7, %v1340_v6, -inf }
 0x6fb   : > { %1354 = vmax.xlane.f32.xlu0 %v1353_v12 }
 0x6fc   : > { %v1356_v14 = vsel %vm1021_vm7, %v1343_v11, -inf }
 0x6fd   : > { %1357 = vmax.xlane.f32.xlu1 %v1356_v14 }
 0x6ff   : > { %1360 = vmax.xlane.f32.xlu0 %v1359_v15 }
 0x788   : > { %v1355_v16 = vpop.xlane.xlu0 %1354 }
 0x789   : > { %v1362_v17 = vsub.f32 %v1340_v6, %v1355_v16 }
 0x78a   : > { %v1358_v18 = vpop.xlane.xlu1 %1357 }
 0x78b   : > { %v1365_v20 = vmul.f32 1.442695, %v1362_v17  ;;  %v1363_v23 = vsub.f32 %v1343_v11, %v1358_v18 }
 0x78c   : > { %v1361_v24 = vpop.xlane.xlu0 %1360 }
 0x78d   : > { %4253 = vpow2.f32 %v1365_v20  ;;  %v1367_v25 = vmul.f32 1.442695, %v1363_v23  ;;  %v1364_v26 = vsub.f32 %v1348_v10, %v1361_v24 }
 0x78f   : > { %4255 = vpow2.f32 %v1367_v25  ;;  %v1369_v27 = vmul.f32 1.442695, %v1364_v26 }
 0x791   : > { %4257 = vpow2.f32 %v1369_v27 }
 0x797   : > { %v4254_v28 = vpop.eup %4253 }
 0x798   : > { %v1371_v29 = vsel %vm1021_vm7, %v4254_v28, 0.0 }
 0x799   : > { %v4256_v31 = vpop.eup %4255  ;;  %1372 = vadd.xlane.f32.xlu0 %v1371_v29 }
 0x79a   : > { %v1374_v33 = vsel %vm1021_vm7, %v4256_v31, 0.0 }
 0x79b   : > { %v4258_v32 = vpop.eup %4257 }
 0x79c   : > { %v1377_v34 = vsel %vm1021_vm7, %v4258_v32, 0.0 }
 0x79d   : > { %1375 = vadd.xlane.f32.xlu0 %v1374_v33  ;;  %1378 = vadd.xlane.f32.xlu1 %v1377_v34 }
 0x7ae   : > { %1390 = vrot.lane.b32.xlu1 %v4693_v9, %s5405_s6 }
 0x7b2   : > { %1454 = vrot.lane.b32.xlu1 %v4697_v13, %s5403_s23 }
 0x7b3   : > { %1388 = vrot.lane.b32.xlu0 %v4697_v13, %s5405_s6  ;;  %s5407_s6 = smov 16  }
 0x7b6   : > { %1456 = vrot.lane.b32.xlu1 %v4693_v9, %s5403_s23  ;;  %s5409_s23 = smov 8  }
 0x7b7   : > { %1450 = vrot.lane.b32.xlu0 %v4697_v13, %s5401_s4 }
 0x7ba   : > { %1452 = vrot.lane.b32.xlu1 %v4693_v9, %s5401_s4  ;;  %s5411_s4 = smov 40  }
 0x826   : > { %v1373_v35 = vpop.xlane.xlu0 %1372 }
 0x827   : > { %4259 = vrcp.f32 %v1373_v35 }
 0x82a   : > { %v1379_v36 = vpop.xlane.xlu1 %1378  ;;  %v1376_v37 = vpop.xlane.xlu0 %1375 }
 0x82b   : > { %4261 = vrcp.f32 %v1379_v36 }
 0x82c   : > { %4263 = vrcp.f32 %v1376_v37 }
 0x82e   : > { %v1391_v38 = vpop.permute.xlu1 %1390  ;;  %v1389_v39 = vpop.permute.xlu0 %1388 }
 0x82f   : > { %3892 = vmatprep.subr.bf16.mxu0 %v1389_v39  ;;  %v1400_v40 = vsel %vm1068_vm8, %v1391_v38, 0 }
 0x830   : > { %3893 = vmatpush3.bf16.msra.mxu0 %v1389_v39 }
 0x831   : > { %4084 = vmatprep.subr.msk.bf16.mxu0 %vm1068_vm8, %v1391_v38  ;;  %v4260_v41 = vpop.eup %4259 }
 0x832   : > { %v1455_v42 = vpop.permute.xlu1 %1454  ;;  %v1381_v46 = vmul.f32 %v4260_v41, %v4254_v28  ;;  %v1451_v51 = vpop.permute.xlu0 %1450 }
 0x833   : > { %v1465_v50 = vsel %vm960_vm5, %v1455_v42, 0 }
 0x834   : > { %3895 = vmatpush3.bf16.msra.mxu0 %v1400_v40 }
 0x835   : > { %v4262_v43 = vpop.eup %4261  ;;  %4085 = vmatprep.subr.msk.bf16.mxu0 %vm960_vm5, %v1455_v42 }
 0x836   : > { %v4264_v44 = vpop.eup %4263  ;;  %v1385_v45 = vmul.f32 %v4262_v43, %v4258_v32  ;;  %v1457_v52 = vpop.permute.xlu1 %1456  ;;  %v4193_v43 = vld [vmem:[%s5372_s9] sm:$0xff]  }
 0x837   : > { %v1383_v47 = vmul.f32 %v4264_v44, %v4256_v31  ;;  %v1468_v53 = vsel %vm960_vm5, %v1457_v52, 0  ;;  %v4194_v44 = vld [vmem:[%s5372_s9 + $0x8] sm:$0xff]  }
 0x838   : > { %v1387_v48 = vpack.c.bf16 %v1385_v45, %v1385_v45 }
 0x839   : > { %v1386_v49 = vpack.c.bf16 %v1383_v47, %v1381_v46 }
 0x83a   : > { %v1453_v54 = vpop.permute.xlu1 %1452 }
 0x83b   : > { %3896 = vmatprep.mubr.msk.bf16.mxu0 %vm1021_vm7, %v1386_v49 }
 0x83c   : > { %3897 = vmatmul.mubr.msk.bf16.vlgmr.msra.gmra.mrb[8].mxu0 %vm1021_vm7, %v1387_v48 }
 0x83d   : > { %3904 = vmatprep.mubr.msk.bf16.mxu0 %vm960_vm5, %v1451_v51  ;;  %3901 = vmatpush3.bf16.xpose.msra.mxu0 %v1465_v50 }
 0x83e   : > { %4086 = vmatprep.subr.msk.bf16.mxu0 %vm960_vm5, %v1457_v52 }
 0x845   : > { %3903 = vmatpush3.bf16.xpose.msra.mxu0 %v1468_v53 }
 0x84c   : > { %3905 = vmatmul.mubr.msk.bf16.vlgmr.msra.gmra.mrb[12].mxu0 %vm960_vm5, %v1453_v54 }
 0x90f   : > { %v3898_v55 = vpop.f32.mrb[8].mxu0 }
 0x910   : > { %v1436_v56 = vpop.f32.mrb[9].mxu0 }
 0x911   : > { %v3899_v57 = vpop.f32.mrb[10].mxu0 }
 0x912   : > { %v1439_v60 = vpop.f32.mrb[11].mxu0 }
 0x913   : > { %v4162_v0 = vpack.i.bf16 %v1439_v60, %v1436_v56 }
 0x91f   : > { %v3906_v4 = vpop.f32.mrb[12].mxu0 }
 0x920   : > { %v1504_v5 = vpop.f32.mrb[13].mxu0  ;;  %v1513_v10 = vadd.f32 %v3906_v4, %v4723_v30 }
 0x921   : > { %v1505_v6 = vadd.f32 %v1504_v5, %v4723_v30  ;;  %v3907_v7 = vpop.f32.mrb[14].mxu0 }
 0x922   : > { %v1507_v8 = vpop.f32.mrb[15].mxu0  ;;  %v1524_v15 = vsel %vm1021_vm7, %v1513_v10, -inf }
 0x923   : > { %v1508_v11 = vadd.f32 %v1507_v8, %v4723_v30  ;;  %v1518_v12 = vsel %vm1021_vm7, %v1505_v6, -inf }
 0x924   : > { %1519 = vmax.xlane.f32.xlu0 %v1518_v12 }
 0x925   : > { %v1521_v14 = vsel %vm1021_vm7, %v1508_v11, -inf }
 0x926   : > { %1522 = vmax.xlane.f32.xlu1 %v1521_v14 }
 0x928   : > { %1525 = vmax.xlane.f32.xlu0 %v1524_v15 }
 0x9b1   : > { %v1520_v16 = vpop.xlane.xlu0 %1519 }
 0x9b2   : > { %v1527_v17 = vsub.f32 %v1505_v6, %v1520_v16 }
 0x9b3   : > { %v1523_v18 = vpop.xlane.xlu1 %1522 }
 0x9b4   : > { %v1530_v20 = vmul.f32 1.442695, %v1527_v17  ;;  %v1528_v23 = vsub.f32 %v1508_v11, %v1523_v18 }
 0x9b5   : > { %v1526_v24 = vpop.xlane.xlu0 %1525 }
 0x9b6   : > { %4265 = vpow2.f32 %v1530_v20  ;;  %v1532_v25 = vmul.f32 1.442695, %v1528_v23  ;;  %v1529_v26 = vsub.f32 %v1513_v10, %v1526_v24 }
 0x9b8   : > { %4267 = vpow2.f32 %v1532_v25  ;;  %v1534_v27 = vmul.f32 1.442695, %v1529_v26 }
 0x9ba   : > { %4269 = vpow2.f32 %v1534_v27 }
 0x9c0   : > { %v4266_v28 = vpop.eup %4265 }
 0x9c1   : > { %v1536_v29 = vsel %vm1021_vm7, %v4266_v28, 0.0 }
 0x9c2   : > { %v4268_v31 = vpop.eup %4267  ;;  %1537 = vadd.xlane.f32.xlu0 %v1536_v29 }
 0x9c3   : > { %v1539_v33 = vsel %vm1021_vm7, %v4268_v31, 0.0 }
 0x9c4   : > { %v4270_v32 = vpop.eup %4269 }
 0x9c5   : > { %v1542_v34 = vsel %vm1021_vm7, %v4270_v32, 0.0 }
 0x9c6   : > { %1540 = vadd.xlane.f32.xlu0 %v1539_v33  ;;  %1543 = vadd.xlane.f32.xlu1 %v1542_v34 }
 0x9d7   : > { %1555 = vrot.lane.b32.xlu1 %v4693_v9, %s5411_s4 }
 0x9db   : > { %4158 = vrot.lane.b32.xlu1 %v4157_v3, %s5409_s23 }
 0x9dc   : > { %1553 = vrot.lane.b32.xlu0 %v4697_v13, %s5411_s4  ;;  %s5460_s4 = smov 48  }
 0x9df   : > { %1622 = vrot.lane.b32.xlu1 %v4791_v62, %s5409_s23  ;;  %s5459_s23 = smov 112  }
 0x9e0   : > { %4163 = vrot.lane.b32.xlu0 %v4162_v0, %s5407_s6 }
 0x9e3   : > { %1634 = vrot.lane.b32.xlu1 %v3898_v55, %s5407_s6  ;;  %s5464_s6 = smov 8  }
 0xa4f   : > { %v1538_v35 = vpop.xlane.xlu0 %1537 }
 0xa50   : > { %4271 = vrcp.f32 %v1538_v35 }
 0xa53   : > { %v1544_v9 = vpop.xlane.xlu1 %1543  ;;  %v1541_v36 = vpop.xlane.xlu0 %1540 }
 0xa54   : > { %4273 = vrcp.f32 %v1544_v9 }
 0xa55   : > { %4275 = vrcp.f32 %v1541_v36 }
 0xa57   : > { %v1554_v37 = vpop.permute.xlu0 %1553  ;;  %v1556_v63 = vpop.permute.xlu1 %1555 }
 0xa58   : > { %3908 = vmatprep.subr.bf16.mxu1 %v1554_v37  ;;  %v1565_v13 = vsel %vm1068_vm8, %v1556_v63, 0 }
 0xa59   : > { %3909 = vmatpush3.bf16.msra.mxu1 %v1554_v37 }
 0xa5a   : > { %4087 = vmatprep.subr.msk.bf16.mxu1 %vm1068_vm8, %v1556_v63  ;;  %v4272_v62 = vpop.eup %4271 }
 0xa5b   : > { %v1546_v39 = vmul.f32 %v4272_v62, %v4266_v28  ;;  %v4159_v50 = vpop.permute.xlu1 %4158  ;;  %v4164_v54 = vpop.permute.xlu0 %4163 }
 0xa5c   : > { %v4161_v52 = vunpack.i.h.bf16 %v4159_v50  ;;  %v4160_v53 = vunpack.i.l.bf16 %v4159_v50  ;;  %v4166_v56 = vunpack.i.h.bf16 %v4164_v54  ;;  %v4165_v57 = vunpack.i.l.bf16 %v4164_v54 }
 0xa5d   : > { %3911 = vmatpush3.bf16.msra.mxu1 %v1565_v13 }
 0xa5e   : > { %v4274_v2 = vpop.eup %4273  ;;  %3916 = vmatprep.subr.bf16.mxu1 %v4193_v43  ;;  %v1652_v60 = vsel %vm960_vm5, %v4789_v61, %v4161_v52  ;;  %v1651_v0 = vsel %vm960_vm5, %v4787_v59, %v4160_v53  ;;  %v3610_v53 = vld [vmem:[%s5374_s11] ss:$0 sm:$0xff] }
 0xa5f   : > { %v4276_v3 = vpop.eup %4275  ;;  %v1550_v38 = vmul.f32 %v4274_v2, %v4270_v32  ;;  %v1623_v51 = vpop.permute.xlu1 %1622  ;;  %v1656_v11 = vsel %vm1654_vm9, %v1652_v60, %v4166_v56  ;;  %v1655_v12 = vsel %vm1654_vm9, %v1651_v0, %v4165_v57  ;;  %v3611_v0 = vld [vmem:[%s5375_s12] ss:$0 sm:$0xff] }
 0xa60   : > { %v1548_v40 = vmul.f32 %v4276_v3, %v4268_v31  ;;  %v1653_v5 = vsel %vm960_vm5, %v4785_v58, %v1623_v51  ;;  %v3605_v58 = vld [vmem:[%s5373_s10] ss:$0 sm:$0xff] }
 0xa61   : > { %v1552_v41 = vpack.c.bf16 %v1550_v38, %v1550_v38 }
 0xa62   : > { %v1551_v42 = vpack.c.bf16 %v1548_v40, %v1546_v39  ;;  %v4195_v40 = vld [vmem:[%s5376_s13] sm:$0xff]  }
 0xa63   : > { %v1635_v55 = vpop.permute.xlu1 %1634  ;;  %3924 = vmatprep.subr.bf16.mxu0 %v4195_v40 }
 0xa64   : > { %3912 = vmatprep.mubr.msk.bf16.mxu1 %vm1021_vm7, %v1551_v42  ;;  %v1657_v7 = vsel %vm1654_vm9, %v1653_v5, %v1635_v55  ;;  %3925 = vmatpush3.bf16.msra.mxu0 %v4195_v40 }
 0xa65   : > { %3913 = vmatmul.mubr.msk.bf16.vlgmr.msra.gmra.mrb[20].mxu1 %vm1021_vm7, %v1552_v41  ;;  %v4196_v41 = vld [vmem:[%s5376_s13 + $0x8] sm:$0xff]  }
 0xa66   : > { %3917 = vmatpush3.bf16.msra.mxu1 %v4193_v43  ;;  %3926 = vmatprep.subr.bf16.mxu0 %v4196_v41 }
 0xa67   : > { %3918 = vmatprep.subr.bf16.mxu1 %v4194_v44 }
 0xa68   : > { %3927 = vmatpush3.bf16.msra.mxu0 %v4196_v41 }
 0xa6a   : > { %3919 = vmatpush3.bf16.msra.mxu1 %v4194_v44 }
 0xb38   : > { %v3914_v45 = vpop.f32.mrb[20].mxu1 }
 0xb39   : > { %1646 = vrot.lane.b32.xlu1 %v3914_v45, %s5417_s24  ;;  %v1601_v46 = vpop.f32.mrb[21].mxu1 }
 0xb3a   : > { %v3915_v47 = vpop.f32.mrb[22].mxu1 }
 0xb3b   : > { %v1604_v48 = vpop.f32.mrb[23].mxu1 }
 0xb3c   : > { %v4167_v49 = vpack.i.bf16 %v1604_v48, %v1601_v46 }
 0xb3e   : > { %4168 = vrot.lane.b32.xlu0 %v4167_v49, %s5417_s24  ;;  %s5461_s24 = smov 72  }
 0xbab   : > { %v1647_v4 = vpop.permute.xlu1 %1646 }
 0xbac   : > { %v1660_v14 = vsel %vm1021_vm7, %v1657_v7, %v1647_v4 }
 0xbad   : > { %v1662_v16 = vpack.c.bf16 %v1660_v14, %v1660_v14  ;;  %v4198_v14 = vld [vmem:[%s5378_s15 + $0x8] sm:$0xff]  }
 0xbb0   : > { %v4169_v6 = vpop.permute.xlu0 %4168 }
 0xbb1   : > { %v4171_v8 = vunpack.i.h.bf16 %v4169_v6  ;;  %v4170_v10 = vunpack.i.l.bf16 %v4169_v6 }
 0xbb3   : > { %v1658_v61 = vsel %vm1021_vm7, %v1655_v12, %v4170_v10  ;;  %v1659_v59 = vsel %vm1021_vm7, %v1656_v11, %v4171_v8  ;;  %v4197_v12 = vld [vmem:[%s5378_s15] sm:$0xff]  }
 0xbb4   : > { %v1661_v15 = vpack.c.bf16 %v1659_v59, %v1658_v61  ;;  %3932 = vmatprep.subr.bf16.mxu1 %v4197_v12  ;;  %v4199_v61 = vld [vmem:[%s5378_s15 + $0x10] sm:$0xff]   ;;  %v4200_v59 = vld [vmem:[%s5378_s15 + $0x18] sm:$0xff]  }
 0xbb6   : > { %3920 = vmatprep.mubr.msk.bf16.mxu1 %vm801_vm4, %v1661_v15  ;;  %v4201_v15 = vld [vmem:[%s5378_s15 + $0x20] sm:$0xff]  }
 0xbb7   : > { %3921 = vmatmul.mubr.msk.bf16.vlgmr.msra.gmra.mrb[24].mxu1 %vm801_vm4, %v1662_v16  ;;  %v4202_v16 = vld [vmem:[%s5378_s15 + $0x28] sm:$0xff]  }
 0xbb8   : > { %3933 = vmatpush3.bf16.msra.mxu1 %v4197_v12 }
 0xbb9   : > { %3934 = vmatprep.subr.bf16.mxu1 %v4198_v14 }
 0xbbc   : > { %3935 = vmatpush3.bf16.msra.mxu1 %v4198_v14 }
 0xbbd   : > { %3936 = vmatprep.subr.bf16.mxu1 %v4199_v61 }
 0xbc0   : > { %3937 = vmatpush3.bf16.msra.mxu1 %v4199_v61 }
 0xbc1   : > { %3938 = vmatprep.subr.bf16.mxu1 %v4200_v59 }
 0xbc4   : > { %3939 = vmatpush3.bf16.msra.mxu1 %v4200_v59 }
 0xbc5   : > { %3940 = vmatprep.subr.bf16.mxu1 %v4201_v15 }
 0xbc8   : > { %3941 = vmatpush3.bf16.msra.mxu1 %v4201_v15 }
 0xbc9   : > { %3942 = vmatprep.subr.bf16.mxu1 %v4202_v16 }
 0xbcc   : > { %3943 = vmatpush3.bf16.msra.mxu1 %v4202_v16 }
 0xc8a   : > { %v3922_v17 = vpop.f32.mrb[24].mxu1 }
 0xc8b   : > { %v1726_v18 = vpop.f32.mrb[25].mxu1  ;;  %v1735_v20 = vadd.f32 %v3922_v17, %v3605_v58  ;;  %v4204_v17 = vld [vmem:[%s5378_s15 + $0x38] sm:$0xff]  }
 0xc8c   : > { %v1727_v23 = vadd.f32 %v3605_v58, %v1726_v18  ;;  %v3923_v24 = vpop.f32.mrb[26].mxu1  ;;  %v3612_v18 = vld [vmem:[%s5377_s14] ss:$0 sm:$0xff] }
 0xc8d   : > { %v1729_v25 = vpop.f32.mrb[27].mxu1  ;;  %v4884_v28 = vadd.f32 %v1735_v20, %v4662_v21 }
 0xc8e   : > { %v4881_v26 = vadd.f32 %v1727_v23, %v4658_v19  ;;  %v1730_v27 = vadd.f32 %v3605_v58, %v1729_v25  ;;  %v4203_v58 = vld [vmem:[%s5378_s15 + $0x30] sm:$0xff]  }
 0xc8f   : > { %v1751_v33 = vsel %vm801_vm4, %v4884_v28, 0.0  ;;  %3944 = vmatprep.subr.bf16.mxu1 %v4203_v58 }
 0xc90   : > { %v4887_v29 = vadd.f32 %v1730_v27, %v4664_v22  ;;  %v1745_v31 = vsel %vm801_vm4, %v4881_v26, 0.0  ;;  %3945 = vmatpush3.bf16.msra.mxu1 %v4203_v58 }
 0xc91   : > { %1746 = vadd.xlane.f32.xlu0 %v1745_v31  ;;  %3946 = vmatprep.subr.bf16.mxu1 %v4204_v17 }
 0xc92   : > { %v1748_v32 = vsel %vm801_vm4, %v4887_v29, 0.0 }
 0xc93   : > { %1749 = vadd.xlane.f32.xlu1 %v1748_v32 }
 0xc94   : > { %3947 = vmatpush3.bf16.msra.mxu1 %v4204_v17 }
 0xc95   : > { %1752 = vadd.xlane.f32.xlu0 %v1751_v33 }
 0xd1e   : > { %v1747_v19 = vpop.xlane.xlu0 %1746 }
 0xd1f   : > { %v1754_v34 = vmul.f32 0.03125, %v1747_v19 }
 0xd20   : > { %v1750_v35 = vpop.xlane.xlu1 %1749 }
 0xd21   : > { %v1757_v21 = vsub.f32 %v4881_v26, %v1754_v34  ;;  %v1755_v9 = vmul.f32 0.03125, %v1750_v35 }
 0xd22   : > { %v1753_v22 = vpop.xlane.xlu0 %1752 }
 0xd23   : > { %v1758_v36 = vsub.f32 %v4887_v29, %v1755_v9  ;;  %v1756_v37 = vmul.f32 0.03125, %v1753_v22  ;;  %v1760_v63 = vmul.f32 %v1757_v21, %v1757_v21 }
 0xd25   : > { %v1759_v13 = vsub.f32 %v4884_v28, %v1756_v37  ;;  %v1763_v62 = vsel %vm801_vm4, %v1760_v63, 0.0  ;;  %v1761_v2 = vmul.f32 %v1758_v36, %v1758_v36 }
 0xd26   : > { %1764 = vadd.xlane.f32.xlu0 %v1763_v62 }
 0xd27   : > { %v1762_v3 = vmul.f32 %v1759_v13, %v1759_v13  ;;  %v1766_v38 = vsel %vm801_vm4, %v1761_v2, 0.0 }
 0xd29   : > { %v1769_v39 = vsel %vm801_vm4, %v1762_v3, 0.0 }
 0xd2a   : > { %1767 = vadd.xlane.f32.xlu0 %v1766_v38  ;;  %1770 = vadd.xlane.f32.xlu1 %v1769_v39 }
 0xdb3   : > { %v1765_v42 = vpop.xlane.xlu0 %1764 }
 0xdb4   : > { %v1772_v43 = vmul.f32 0.03125, %v1765_v42 }
 0xdb6   : > { %v1775_v44 = vadd.f32 1e-05, %v1772_v43 }
 0xdb7   : > { %v1771_v45 = vpop.xlane.xlu1 %1770  ;;  %v1768_v46 = vpop.xlane.xlu0 %1767 }
 0xdb8   : > { %4277 = vrsqrt.f32 %v1775_v44  ;;  %v1774_v47 = vmul.f32 0.03125, %v1771_v45  ;;  %v1773_v48 = vmul.f32 0.03125, %v1768_v46 }
 0xdba   : > { %v1777_v49 = vadd.f32 1e-05, %v1774_v47  ;;  %v1776_v50 = vadd.f32 1e-05, %v1773_v48 }
 0xdbc   : > { %4279 = vrsqrt.f32 %v1777_v49 }
 0xdbd   : > { %4281 = vrsqrt.f32 %v1776_v50 }
 0xdc2   : > { %v4278_v51 = vpop.eup %4277 }
 0xdc3   : > { %v1781_v52 = vmul.f32 %v4278_v51, %v1757_v21 }
 0xdc5   : > { %v1790_v60 = vmul.f32 %v3610_v53, %v1781_v52 }
 0xdc6   : > { %v4280_v54 = vpop.eup %4279 }
 0xdc7   : > { %v4282_v55 = vpop.eup %4281  ;;  %v1783_v56 = vmul.f32 %v4280_v54, %v1759_v13  ;;  %v1799_v7 = vadd.f32 %v3611_v0, %v1790_v60 }
 0xdc8   : > { %v1782_v57 = vmul.f32 %v4282_v55, %v1758_v36 }
 0xdc9   : > { %v1792_v4 = vmul.f32 %v3610_v53, %v1783_v56 }
 0xdca   : > { %v1791_v5 = vmul.f32 %v3610_v53, %v1782_v57 }
 0xdcb   : > { %v1801_v6 = vadd.f32 %v3611_v0, %v1792_v4 }
 0xdcc   : > { %v1800_v8 = vadd.f32 %v3611_v0, %v1791_v5 }
 0xdcd   : > { %v1803_v10 = vpack.c.bf16 %v1801_v6, %v1801_v6 }
 0xdce   : > { %v1802_v11 = vpack.c.bf16 %v1800_v8, %v1799_v7 }
 0xdd0   : > { %3928 = vmatprep.mubr.msk.bf16.mxu0 %vm801_vm4, %v1802_v11 }
 0xdd1   : > { %3929 = vmatmul.mubr.msk.bf16.vlgmr.msra.gmra.mrb[16].mxu0 %vm801_vm4, %v1803_v10 }
 0xea4   : > { %v3930_v20 = vpop.f32.mrb[16].mxu0 }
 0xea5   : > { %v4942_v23 = vadd.f32 %v3930_v20, %v3612_v18  ;;  %v1867_v24 = vpop.f32.mrb[17].mxu0 }
 0xea6   : > { %v4944_v25 = vadd.f32 %v3612_v18, %v1867_v24  ;;  %v3931_v27 = vpop.f32.mrb[18].mxu0 }
 0xea7   : > { %v4947_v31 = vmul.f32 0.70710677, %v4942_v23  ;;  %v1870_v32 = vpop.f32.mrb[19].mxu0 }
 0xea8   : > { %v4950_v33 = vmul.f32 0.70710677, %v4944_v25  ;;  %v4952_v19 = vadd.f32 %v3612_v18, %v1870_v32 }
 0xea9   : > { %v1895_v34 = vand.u32 2147483647, %v4947_v31  ;;  %vm1889_vm10 = vcmp.ge.f32.partialorder %v4947_v31, 0.0 }
 0xeaa   : > { %v1893_v35 = vand.u32 2147483647, %v4950_v33  ;;  %v4957_v9 = vmul.f32 0.70710677, %v4952_v19  ;;  %vm1887_vm11 = vcmp.ge.f32.partialorder %v4950_v33, 0.0 }
 0xeab   : > { %v1898_v21 = vmul.f32 0.3275911, %v1895_v34  ;;  %v1937_v2 = vsub.f32 0.0, %v1895_v34 }
 0xeac   : > { %v1896_v22 = vmul.f32 0.3275911, %v1893_v35  ;;  %v1894_v37 = vand.u32 2147483647, %v4957_v9  ;;  %v1935_v3 = vsub.f32 0.0, %v1893_v35  ;;  %vm1888_vm12 = vcmp.ge.f32.partialorder %v4957_v9, 0.0 }
 0xead   : > { %v1901_v36 = vadd.f32 1.0, %v1898_v21  ;;  %v1940_v39 = vmul.f32 %v1937_v2, %v1895_v34 }
 0xeae   : > { %v1899_v63 = vadd.f32 1.0, %v1896_v22  ;;  %v1897_v13 = vmul.f32 0.3275911, %v1894_v37  ;;  %v1936_v40 = vsub.f32 0.0, %v1894_v37  ;;  %v1938_v43 = vmul.f32 %v1935_v3, %v1893_v35 }
 0xeaf   : > { %4283 = vrcp.f32 %v1901_v36  ;;  %v1945_v47 = vmul.f32 1.442695, %v1940_v39  ;;  %v4450_v35 = vmov -1.0   ;;  %v1881_v39 = vmul.f32 0.5, %v4944_v25 }
 0xeb0   : > { %4285 = vrcp.f32 %v1899_v63  ;;  %v1900_v62 = vadd.f32 1.0, %v1897_v13  ;;  %v1939_v49 = vmul.f32 %v1936_v40, %v1894_v37  ;;  %v1941_v51 = vmul.f32 1.442695, %v1938_v43 }
 0xeb1   : > { %v1892_v21 = vsel %vm1889_vm10, 1.0, %v4450_v35  ;;  %v1890_v37 = vsel %vm1887_vm11, 1.0, %v4450_v35  ;;  %v1891_v2 = vsel %vm1888_vm12, 1.0, %v4450_v35  ;;  %v1882_v40 = vmul.f32 0.5, %v4952_v19 }
 0xeb2   : > { %4287 = vrcp.f32 %v1900_v62  ;;  %v1943_v57 = vmul.f32 1.442695, %v1939_v49 }
 0xeb3   : > { %4289 = vpow2.f32 %v1945_v47 }
 0xeb4   : > { %4291 = vpow2.f32 %v1941_v51 }
 0xeb5   : > { %4293 = vpow2.f32 %v1943_v57 }
 0xeb9   : > { %v4284_v38 = vpop.eup %4283 }
 0xeba   : > { %v4286_v41 = vpop.eup %4285  ;;  %v1910_v42 = vmul.f32 1.0614054, %v4284_v38 }
 0xebb   : > { %v1908_v44 = vmul.f32 1.0614054, %v4286_v41 }
 0xebc   : > { %v1913_v45 = vadd.f32 -1.4531521, %v1910_v42  ;;  %v4288_v46 = vpop.eup %4287 }
 0xebd   : > { %v1911_v48 = vadd.f32 -1.4531521, %v1908_v44  ;;  %v1909_v52 = vmul.f32 1.0614054, %v4288_v46  ;;  %v4290_v16 = vpop.eup %4289 }
 0xebe   : > { %v1916_v50 = vmul.f32 %v4284_v38, %v1913_v45  ;;  %v4292_v17 = vpop.eup %4291 }
 0xebf   : > { %v1914_v53 = vmul.f32 %v4286_v41, %v1911_v48  ;;  %v1912_v55 = vadd.f32 -1.4531521, %v1909_v52  ;;  %v4294_v34 = vpop.eup %4293 }
 0xec0   : > { %v1919_v54 = vadd.f32 1.4214138, %v1916_v50 }
 0xec1   : > { %v1917_v56 = vadd.f32 1.4214138, %v1914_v53  ;;  %v1915_v0 = vmul.f32 %v4288_v46, %v1912_v55 }
 0xec2   : > { %v1922_v60 = vmul.f32 %v4284_v38, %v1919_v54 }
 0xec3   : > { %v1920_v4 = vmul.f32 %v4286_v41, %v1917_v56  ;;  %v1918_v6 = vadd.f32 1.4214138, %v1915_v0 }
 0xec4   : > { %v1925_v5 = vadd.f32 -0.28449672, %v1922_v60 }
 0xec5   : > { %v1923_v7 = vadd.f32 -0.28449672, %v1920_v4  ;;  %v1921_v10 = vmul.f32 %v4288_v46, %v1918_v6 }
 0xec6   : > { %v1928_v8 = vmul.f32 %v4284_v38, %v1925_v5 }
 0xec7   : > { %v1926_v11 = vmul.f32 %v4286_v41, %v1923_v7  ;;  %v1924_v14 = vadd.f32 -0.28449672, %v1921_v10 }
 0xec8   : > { %v1931_v12 = vadd.f32 0.2548296, %v1928_v8 }
 0xec9   : > { %v1929_v61 = vadd.f32 0.2548296, %v1926_v11  ;;  %v1927_v15 = vmul.f32 %v4288_v46, %v1924_v14 }
 0xeca   : > { %v1934_v59 = vmul.f32 %v4284_v38, %v1931_v12  ;;  %v1883_v38 = vmul.f32 0.5, %v4942_v23 }
 0xecb   : > { %v1932_v58 = vmul.f32 %v4286_v41, %v1929_v61  ;;  %v1930_v20 = vadd.f32 0.2548296, %v1927_v15  ;;  %v4205_v61 = vld [vmem:[%s5451_s28 + $0x10] sm:$0xff]  }
 0xecc   : > { %v1949_v18 = vmul.f32 %v4290_v16, %v1934_v59  ;;  %3952 = vmatprep.subr.bf16.mxu0 %v4205_v61  ;;  %v4206_v59 = vld [vmem:[%s5451_s28 + $0x18] sm:$0xff]  }
 0xecd   : > { %v1947_v24 = vmul.f32 %v4292_v17, %v1932_v58  ;;  %v1933_v32 = vmul.f32 %v4288_v46, %v1930_v20  ;;  %v3617_v46 = vld [vmem:[%s5379_s16] ss:$0 sm:$0xff]  ;;  %3953 = vmatpush3.bf16.msra.mxu0 %v4205_v61 }
 0xece   : > { %v1952_v27 = vsub.f32 1.0, %v1949_v18  ;;  %3954 = vmatprep.subr.bf16.mxu0 %v4206_v59 }
 0xecf   : > { %v1950_v22 = vsub.f32 1.0, %v1947_v24  ;;  %v1948_v63 = vmul.f32 %v4294_v34, %v1933_v32 }
 0xed0   : > { %v1955_v36 = vmul.f32 %v1952_v27, %v1892_v21  ;;  %v3628_v21 = vld [vmem:[%s5452_s26 + $0x1] ss:$0 sm:$0xff] }
 0xed1   : > { %v1953_v13 = vmul.f32 %v1950_v22, %v1890_v37  ;;  %v1951_v31 = vsub.f32 1.0, %v1948_v63  ;;  %3955 = vmatpush3.bf16.msra.mxu0 %v4206_v59 }
 0xed2   : > { %v1958_v62 = vadd.f32 1.0, %v1955_v36 }
 0xed3   : > { %v1956_v33 = vadd.f32 1.0, %v1953_v13  ;;  %v1954_v3 = vmul.f32 %v1951_v31, %v1891_v2  ;;  %v3629_v31 = vld [vmem:[%s5453_s29 + $0x1] ss:$0 sm:$0xff] }
 0xed4   : > { %v1961_v42 = vmul.f32 %v1958_v62, %v1883_v38 }
 0xed5   : > { %v1957_v41 = vadd.f32 1.0, %v1954_v3  ;;  %v1959_v43 = vmul.f32 %v1956_v33, %v1881_v39 }
 0xed6   : > { %v1963_v9 = vpack.c.bf16 %v1961_v42, %v1961_v42  ;;  %v3635_v42 = vld [vmem:[%s5454_s8 + $0x1] ss:$0 sm:$0xff] }
 0xed7   : > { %v1960_v44 = vmul.f32 %v1957_v41, %v1882_v40 }
 0xed9   : > { %v1962_v45 = vpack.c.bf16 %v1960_v44, %v1959_v43 }
 0xedb   : > { %3948 = vmatprep.mubr.bf16.mxu1 %v1962_v45 }
 0xedc   : > { %3949 = vmatmul.mubr.bf16.vlgmr.msra.gmra.mrb[28].mxu1 %v1963_v9 }
 0xfaf   : > { %v3950_v47 = vpop.f32.mrb[28].mxu1 }
 0xfb0   : > { %v2069_v48 = vpop.f32.mrb[29].mxu1  ;;  %v2078_v49 = vadd.f32 %v3950_v47, %v3617_v46 }
 0xfb1   : > { %v2070_v23 = vadd.f32 %v3617_v46, %v2069_v48  ;;  %v3951_v50 = vpop.f32.mrb[30].mxu1 }
 0xfb2   : > { %v2072_v25 = vpop.f32.mrb[31].mxu1  ;;  %v4976_v52 = vadd.f32 %v2078_v49, %v4884_v28 }
 0xfb3   : > { %v4973_v19 = vadd.f32 %v2070_v23, %v4881_v26  ;;  %v2073_v51 = vadd.f32 %v3617_v46, %v2072_v25 }
 0xfb4   : > { %v2096_v56 = vsel %vm801_vm4, %v4976_v52, 0.0 }
 0xfb5   : > { %v4979_v53 = vadd.f32 %v2073_v51, %v4887_v29  ;;  %v2090_v54 = vsel %vm801_vm4, %v4973_v19, 0.0 }
 0xfb6   : > { %2091 = vadd.xlane.f32.xlu0 %v2090_v54 }
 0xfb7   : > { %v2093_v55 = vsel %vm801_vm4, %v4979_v53, 0.0 }
 0xfb8   : > { %2094 = vadd.xlane.f32.xlu1 %v2093_v55 }
 0xfba   : > { %2097 = vadd.xlane.f32.xlu0 %v2096_v56 }
0x1043   : > { %v2092_v26 = vpop.xlane.xlu0 %2091 }
0x1044   : > { %v2099_v57 = vmul.f32 0.03125, %v2092_v26 }
0x1045   : > { %v2095_v60 = vpop.xlane.xlu1 %2094 }
0x1046   : > { %v2102_v28 = vsub.f32 %v4973_v19, %v2099_v57  ;;  %v2100_v0 = vmul.f32 0.03125, %v2095_v60 }
0x1047   : > { %v2098_v29 = vpop.xlane.xlu0 %2097 }
0x1048   : > { %v2103_v4 = vsub.f32 %v4979_v53, %v2100_v0  ;;  %v2101_v5 = vmul.f32 0.03125, %v2098_v29  ;;  %v2105_v6 = vmul.f32 %v2102_v28, %v2102_v28 }
0x104a   : > { %v2104_v7 = vsub.f32 %v4976_v52, %v2101_v5  ;;  %v2108_v8 = vsel %vm801_vm4, %v2105_v6, 0.0  ;;  %v2106_v10 = vmul.f32 %v2103_v4, %v2103_v4 }
0x104b   : > { %2109 = vadd.xlane.f32.xlu1 %v2108_v8 }
0x104c   : > { %v2111_v11 = vsel %vm801_vm4, %v2106_v10, 0.0  ;;  %v2107_v12 = vmul.f32 %v2104_v7, %v2104_v7 }
0x104d   : > { %2112 = vadd.xlane.f32.xlu0 %v2111_v11 }
0x104e   : > { %v2114_v14 = vsel %vm801_vm4, %v2107_v12, 0.0 }
0x104f   : > { %2115 = vadd.xlane.f32.xlu1 %v2114_v14 }
0x10d8   : > { %v2110_v15 = vpop.xlane.xlu1 %2109 }
0x10d9   : > { %v2117_v16 = vmul.f32 0.03125, %v2110_v15 }
0x10da   : > { %v2113_v58 = vpop.xlane.xlu0 %2112 }
0x10db   : > { %v2120_v17 = vadd.f32 1e-05, %v2117_v16  ;;  %v2118_v18 = vmul.f32 0.03125, %v2113_v58 }
0x10dc   : > { %v2116_v20 = vpop.xlane.xlu1 %2115 }
0x10dd   : > { %4295 = vrsqrt.f32 %v2120_v17  ;;  %v2121_v24 = vadd.f32 1e-05, %v2118_v18  ;;  %v2119_v27 = vmul.f32 0.03125, %v2116_v20 }
0x10df   : > { %4297 = vrsqrt.f32 %v2121_v24  ;;  %v2122_v32 = vadd.f32 1e-05, %v2119_v27 }
0x10e1   : > { %4299 = vrsqrt.f32 %v2122_v32 }
0x10e7   : > { %v4296_v34 = vpop.eup %4295 }
0x10e8   : > { %v2126_v22 = vmul.f32 %v4296_v34, %v2102_v28 }
0x10e9   : > { %v4298_v36 = vpop.eup %4297 }
0x10ea   : > { %v2127_v37 = vmul.f32 %v4298_v36, %v2103_v4  ;;  %v2135_v63 = vmul.f32 %v3628_v21, %v2126_v22 }
0x10eb   : > { %v4300_v13 = vpop.eup %4299 }
0x10ec   : > { %v2128_v62 = vmul.f32 %v4300_v13, %v2104_v7  ;;  %v2136_v2 = vmul.f32 %v3628_v21, %v2127_v37  ;;  %v2144_v33 = vadd.f32 %v3629_v31, %v2135_v63 }
0x10ee   : > { %v2145_v3 = vadd.f32 %v3629_v31, %v2136_v2  ;;  %v2137_v38 = vmul.f32 %v3628_v21, %v2128_v62 }
0x10f0   : > { %v2147_v39 = vpack.c.bf16 %v2145_v3, %v2144_v33  ;;  %v2146_v40 = vadd.f32 %v3629_v31, %v2137_v38 }
0x10f2   : > { %3956 = vmatprep.mubr.msk.bf16.mxu0 %vm801_vm4, %v2147_v39  ;;  %v2148_v41 = vpack.c.bf16 %v2146_v40, %v2146_v40 }
0x10f4   : > { %3957 = vmatmul.mubr.msk.bf16.vlgmr.msra.gmra.mrb[20].mxu0 %vm801_vm4, %v2148_v41 }
0x11c7   : > { %v3958_v43 = vpop.f32.mrb[20].mxu0 }
0x11c8   : > { %v2223_v44 = vadd.f32 %v3958_v43, %v3635_v42  ;;  %v2214_v45 = vpop.f32.mrb[21].mxu0 }
0x11c9   : > { %v3959_v9 = vpop.f32.mrb[22].mxu0  ;;  %v2215_v48 = vadd.f32 %v3635_v42, %v2214_v45 }
0x11ca   : > { %v5010_v46 = vpack.c.bf16 %v2223_v44, %v2223_v44  ;;  %v2217_v47 = vpop.f32.mrb[23].mxu0 }
0x11cb   : > { %v2218_v49 = vadd.f32 %v3635_v42, %v2217_v47 }
0x11cc   : > { %2234 = vrot.lane.b32.xlu1 %v5010_v46, %s4435_s25 }
0x11cd   : > { %v5014_v23 = vpack.c.bf16 %v2218_v49, %v2215_v48 }
0x11cf   : > { %2232 = vrot.lane.b32.xlu0 %v5014_v23, %s4435_s25  ;;  %3964 = vmatprep.mubr.msk.bf16.mxu0 %vm960_vm5, %v5014_v23  ;;  %s5456_s25 = smov 64  }
0x11d0   : > { %2397 = vrot.lane.b32.xlu1 %v5014_v23, %s4436_s7 }
0x11d3   : > { %2393 = vrot.lane.b32.xlu0 %v5014_v23, %s5455_s3 }
0x11d4   : > { %2399 = vrot.lane.b32.xlu1 %v5010_v46, %s4436_s7  ;;  %s5457_s7 = smov 56  }
0x11d8   : > { %2395 = vrot.lane.b32.xlu1 %v5010_v46, %s5455_s3  ;;  %s5465_s3 = smov 16  }
0x123e   : > { %v2235_v50 = vpop.permute.xlu1 %2234 }
0x123f   : > { %v2246_v57 = vsel %vm960_vm5, %v2235_v50, 0 }
0x1241   : > { %v2233_v25 = vpop.permute.xlu0 %2232 }
0x1242   : > { %v2243_v51 = vsel %vm960_vm5, %v2233_v25, 0  ;;  %v2398_v54 = vpop.permute.xlu1 %2397  ;;  %4088 = vmatprep.subr.msk.bf16.mxu0 %vm960_vm5, %v2233_v25 }
0x1243   : > { %v2408_v55 = vsel %vm960_vm5, %v2398_v54, 0  ;;  %3961 = vmatpush3.bf16.xpose.msra.mxu0 %v2243_v51  ;;  %4091 = vmatprep.subr.msk.bf16.mxu1 %vm960_vm5, %v2398_v54 }
0x1244   : > { %4089 = vmatprep.subr.msk.bf16.mxu0 %vm960_vm5, %v2235_v50  ;;  %3977 = vmatpush3.bf16.xpose.msra.mxu1 %v2408_v55 }
0x1245   : > { %v2394_v56 = vpop.permute.xlu0 %2393 }
0x1246   : > { %v2400_v26 = vpop.permute.xlu1 %2399  ;;  %3980 = vmatprep.mubr.msk.bf16.mxu1 %vm960_vm5, %v2394_v56 }
0x1247   : > { %4092 = vmatprep.subr.msk.bf16.mxu1 %vm960_vm5, %v2400_v26  ;;  %v2411_v60 = vsel %vm960_vm5, %v2400_v26, 0 }
0x124a   : > { %v2396_v28 = vpop.permute.xlu1 %2395 }
0x124b   : > { %3963 = vmatpush3.bf16.xpose.msra.mxu0 %v2246_v57 }
0x124c   : > { %3979 = vmatpush3.bf16.xpose.msra.mxu1 %v2411_v60 }
0x1252   : > { %3965 = vmatmul.mubr.msk.bf16.vlgmr.msra.gmra.mrb[24].mxu0 %vm960_vm5, %v5010_v46 }
0x1253   : > { %3981 = vmatmul.mubr.msk.bf16.vlgmr.msra.gmra.mrb[32].mxu1 %vm960_vm5, %v2396_v28 }
0x1325   : > { %v3966_v0 = vpop.f32.mrb[24].mxu0 }
0x1326   : > { %v2282_v29 = vpop.f32.mrb[25].mxu0  ;;  %v3982_v4 = vpop.f32.mrb[32].mxu1  ;;  %v2291_v11 = vadd.f32 %v3966_v0, %v4723_v30 }
0x1327   : > { %v2283_v5 = vadd.f32 %v2282_v29, %v4723_v30  ;;  %v3967_v6 = vpop.f32.mrb[26].mxu0  ;;  %v2447_v7 = vpop.f32.mrb[33].mxu1  ;;  %v2456_v59 = vadd.f32 %v3982_v4, %v4723_v30 }
0x1328   : > { %v2285_v8 = vpop.f32.mrb[27].mxu0  ;;  %v3983_v10 = vpop.f32.mrb[34].mxu1  ;;  %v2448_v16 = vadd.f32 %v2447_v7, %v4723_v30  ;;  %v2302_v58 = vsel %vm1021_vm7, %v2291_v11, -inf }
0x1329   : > { %v2286_v12 = vadd.f32 %v2285_v8, %v4723_v30  ;;  %v2450_v14 = vpop.f32.mrb[35].mxu1  ;;  %v2296_v61 = vsel %vm1021_vm7, %v2283_v5, -inf  ;;  %v2467_v17 = vsel %vm1021_vm7, %v2456_v59, -inf }
0x132a   : > { %2297 = vmax.xlane.f32.xlu0 %v2296_v61  ;;  %v2451_v18 = vadd.f32 %v2450_v14, %v4723_v30  ;;  %v2461_v20 = vsel %vm1021_vm7, %v2448_v16, -inf }
0x132b   : > { %v2299_v15 = vsel %vm1021_vm7, %v2286_v12, -inf }
0x132c   : > { %2300 = vmax.xlane.f32.xlu1 %v2299_v15  ;;  %v2464_v24 = vsel %vm1021_vm7, %v2451_v18, -inf }
0x132e   : > { %2303 = vmax.xlane.f32.xlu0 %v2302_v58 }
0x1330   : > { %2468 = vmax.xlane.f32.xlu1 %v2467_v17 }
0x1332   : > { %2462 = vmax.xlane.f32.xlu0 %v2461_v20 }
0x1336   : > { %2465 = vmax.xlane.f32.xlu0 %v2464_v24 }
0x13b7   : > { %v2298_v27 = vpop.xlane.xlu0 %2297 }
0x13b8   : > { %v2305_v32 = vsub.f32 %v2283_v5, %v2298_v27 }
0x13b9   : > { %v2301_v34 = vpop.xlane.xlu1 %2300 }
0x13ba   : > { %v2308_v36 = vmul.f32 1.442695, %v2305_v32  ;;  %v2306_v45 = vsub.f32 %v2286_v12, %v2301_v34 }
0x13bb   : > { %v2304_v21 = vpop.xlane.xlu0 %2303 }
0x13bc   : > { %v2307_v22 = vsub.f32 %v2291_v11, %v2304_v21  ;;  %v2310_v47 = vmul.f32 1.442695, %v2306_v45 }
0x13bd   : > { %v2469_v37 = vpop.xlane.xlu1 %2468 }
0x13be   : > { %v2312_v63 = vmul.f32 1.442695, %v2307_v22  ;;  %v2472_v13 = vsub.f32 %v2456_v59, %v2469_v37 }
0x13bf   : > { %v2463_v40 = vpop.xlane.xlu0 %2462 }
0x13c0   : > { %4301 = vpow2.f32 %v2312_v63  ;;  %v2477_v31 = vmul.f32 1.442695, %v2472_v13  ;;  %v2470_v43 = vsub.f32 %v2448_v16, %v2463_v40 }
0x13c1   : > { %4303 = vpow2.f32 %v2308_v36 }
0x13c2   : > { %4305 = vpow2.f32 %v2477_v31  ;;  %v2473_v9 = vmul.f32 1.442695, %v2470_v43 }
0x13c3   : > { %v2466_v41 = vpop.xlane.xlu0 %2465 }
0x13c4   : > { %v2471_v42 = vsub.f32 %v2451_v18, %v2466_v41 }
0x13c6   : > { %v2475_v44 = vmul.f32 1.442695, %v2471_v42 }
0x13c8   : > { %4307 = vpow2.f32 %v2475_v44 }
0x13c9   : > { %4309 = vpow2.f32 %v2473_v9 }
0x13ca   : > { %v5052_v62 = vpop.eup %4301  ;;  %4311 = vpow2.f32 %v2310_v47 }
0x13cb   : > { %v5054_v2 = vpop.eup %4303  ;;  %v2320_v33 = vsel %vm1021_vm7, %v5052_v62, 0.0 }
0x13cc   : > { %v5058_v3 = vpop.eup %4305  ;;  %2321 = vadd.xlane.f32.xlu0 %v2320_v33  ;;  %v2314_v39 = vsel %vm1021_vm7, %v5054_v2, 0.0 }
0x13cd   : > { %v2485_v38 = vsel %vm1021_vm7, %v5058_v3, 0.0 }
0x13ce   : > { %2486 = vadd.xlane.f32.xlu1 %v2485_v38 }
0x13d0   : > { %2315 = vadd.xlane.f32.xlu0 %v2314_v39 }
0x13d2   : > { %v4308_v48 = vpop.eup %4307 }
0x13d3   : > { %v4310_v49 = vpop.eup %4309  ;;  %v2482_v50 = vsel %vm1021_vm7, %v4308_v48, 0.0 }
0x13d4   : > { %v2479_v25 = vsel %vm1021_vm7, %v4310_v49, 0.0  ;;  %v4312_v51 = vpop.eup %4311 }
0x13d5   : > { %v2317_v54 = vsel %vm1021_vm7, %v4312_v51, 0.0 }
0x13df   : > { %2333 = vrot.lane.b32.xlu1 %v5010_v46, %s5456_s25 }
0x13e3   : > { %2496 = vrot.lane.b32.xlu1 %v5014_v23, %s5457_s7 }
0x13e6   : > { %2331 = vrot.lane.b32.xlu0 %v5014_v23, %s5456_s25 }
0x1405   : > { %2483 = vadd.xlane.f32.xlu0 %v2482_v50 }
0x1407   : > { %2480 = vadd.xlane.f32.xlu1 %v2479_v25 }
0x140b   : > { %2318 = vadd.xlane.f32.xlu1 %v2317_v54 }
0x141b   : > { %2562 = vrot.lane.b32.xlu0 %v5014_v23, %s5458_s1 }
0x141c   : > { %2498 = vrot.lane.b32.xlu1 %v5010_v46, %s5457_s7  ;;  %s4451_s7 = smov [#allocation3]  }
0x141f   : > { %2558 = vrot.lane.b32.xlu0 %v5014_v23, %s5459_s23 }
0x1420   : > { %2564 = vrot.lane.b32.xlu1 %v5010_v46, %s5458_s1  ;;  %s5467_s1 = sld [smem:[#allocation22_spill]] }
0x1424   : > { %2560 = vrot.lane.b32.xlu1 %v5010_v46, %s5459_s23 }
0x1459   : > { %v2322_v55 = vpop.xlane.xlu0 %2321 }
0x145a   : > { %4313 = vrcp.f32 %v2322_v55 }
0x145b   : > { %v2487_v56 = vpop.xlane.xlu1 %2486 }
0x145d   : > { %v2316_v26 = vpop.xlane.xlu0 %2315 }
0x145e   : > { %4315 = vrcp.f32 %v2316_v26 }
0x145f   : > { %v2334_v57 = vpop.permute.xlu1 %2333 }
0x1460   : > { %v2343_v28 = vsel %vm1068_vm8, %v2334_v57, 0 }
0x1461   : > { %v2332_v60 = vpop.permute.xlu0 %2331 }
0x1462   : > { %3968 = vmatprep.subr.bf16.mxu0 %v2332_v60 }
0x1463   : > { %3969 = vmatpush3.bf16.msra.mxu0 %v2332_v60  ;;  %v2497_v0 = vpop.permute.xlu1 %2496 }
0x1464   : > { %4090 = vmatprep.subr.msk.bf16.mxu0 %vm1068_vm8, %v2334_v57  ;;  %v4314_v6 = vpop.eup %4313 }
0x1465   : > { %v2328_v12 = vmul.f32 %v4314_v6, %v5052_v62 }
0x1467   : > { %3971 = vmatpush3.bf16.msra.mxu0 %v2343_v28  ;;  %v2330_v58 = vpack.c.bf16 %v2328_v12, %v2328_v12 }
0x1468   : > { %3984 = vmatprep.subr.bf16.mxu0 %v2497_v0  ;;  %v4316_v7 = vpop.eup %4315 }
0x1469   : > { %v2324_v14 = vmul.f32 %v4316_v7, %v5054_v2 }
0x1492   : > { %v2484_v4 = vpop.xlane.xlu0 %2483 }
0x1494   : > { %v2481_v29 = vpop.xlane.xlu1 %2480 }
0x1495   : > { %4317 = vrcp.f32 %v2481_v29 }
0x1496   : > { %4319 = vrcp.f32 %v2484_v4  ;;  %v2563_v27 = vpop.permute.xlu0 %2562 }
0x1497   : > { %v2573_v22 = vsel %vm960_vm5, %v2563_v27, 0 }
0x1498   : > { %v2319_v5 = vpop.xlane.xlu1 %2318 }
0x1499   : > { %4321 = vrcp.f32 %v2319_v5 }
0x149a   : > { %4323 = vrcp.f32 %v2487_v56  ;;  %v2559_v21 = vpop.permute.xlu0 %2558 }
0x149c   : > { %v2499_v20 = vpop.permute.xlu1 %2498 }
0x149d   : > { %v2508_v32 = vsel %vm1068_vm8, %v2499_v20, 0 }
0x149f   : > { %v4318_v8 = vpop.eup %4317 }
0x14a0   : > { %v4320_v10 = vpop.eup %4319  ;;  %v2489_v59 = vmul.f32 %v4318_v8, %v4310_v49  ;;  %v2565_v36 = vpop.permute.xlu1 %2564 }
0x14a1   : > { %v2491_v16 = vmul.f32 %v4320_v10, %v4308_v48  ;;  %v2576_v37 = vsel %vm960_vm5, %v2565_v36, 0 }
0x14a3   : > { %v4322_v11 = vpop.eup %4321  ;;  %v2494_v18 = vpack.c.bf16 %v2491_v16, %v2489_v59 }
0x14a4   : > { %v2326_v61 = vmul.f32 %v4322_v11, %v4312_v51  ;;  %v4324_v17 = vpop.eup %4323  ;;  %v2561_v63 = vpop.permute.xlu1 %2560 }
0x14a5   : > { %v2493_v24 = vmul.f32 %v4324_v17, %v5058_v3 }
0x14a6   : > { %v2329_v15 = vpack.c.bf16 %v2326_v61, %v2324_v14 }
0x14a7   : > { %v2495_v34 = vpack.c.bf16 %v2493_v24, %v2493_v24 }
0x14a8   : > { %3972 = vmatprep.mubr.msk.bf16.mxu0 %vm1021_vm7, %v2329_v15 }
0x14a9   : > { %3973 = vmatmul.mubr.msk.bf16.vlgmr.msra.gmra.mrb[28].mxu0 %vm1021_vm7, %v2330_v58 }
0x14aa   : > { %3985 = vmatpush3.bf16.msra.mxu0 %v2497_v0  ;;  %3988 = vmatprep.mubr.msk.bf16.mxu0 %vm1021_vm7, %v2494_v18 }
0x14ab   : > { %4093 = vmatprep.subr.msk.bf16.mxu0 %vm1068_vm8, %v2499_v20 }
0x14ae   : > { %3987 = vmatpush3.bf16.msra.mxu0 %v2508_v32 }
0x14af   : > { %4094 = vmatprep.subr.msk.bf16.mxu0 %vm960_vm5, %v2563_v27 }
0x14b1   : > { %3989 = vmatmul.mubr.msk.bf16.vlgmr.msra.gmra.mrb[32].mxu0 %vm1021_vm7, %v2495_v34 }
0x14b2   : > { %3996 = vmatprep.mubr.msk.bf16.mxu0 %vm960_vm5, %v2559_v21 }
0x14b7   : > { %3993 = vmatpush3.bf16.xpose.msra.mxu0 %v2573_v22 }
0x14b8   : > { %4095 = vmatprep.subr.msk.bf16.mxu0 %vm960_vm5, %v2565_v36 }
0x14bf   : > { %3995 = vmatpush3.bf16.xpose.msra.mxu0 %v2576_v37 }
0x14c6   : > { %3997 = vmatmul.mubr.msk.bf16.vlgmr.msra.gmra.mrb[36].mxu0 %vm960_vm5, %v2561_v63 }
0x157c   : > { %v5100_v13 = vpop.f32.mrb[28].mxu0 }
0x157d   : > { %v5102_v31 = vpop.f32.mrb[29].mxu0 }
0x157e   : > { %v3975_v62 = vpop.f32.mrb[30].mxu0 }
0x157f   : > { %v5104_v2 = vpop.f32.mrb[31].mxu0 }
0x1584   : > { %v5106_v33 = vpop.f32.mrb[32].mxu0 }
0x1585   : > { %v5108_v3 = vpop.f32.mrb[33].mxu0 }
0x1586   : > { %v3991_v38 = vpop.f32.mrb[34].mxu0 }
0x1587   : > { %v5110_v39 = vpop.f32.mrb[35].mxu0 }
0x1588   : > { %v4172_v40 = vpack.i.bf16 %v5110_v39, %v5108_v3 }
0x1599   : > { %v3998_v41 = vpop.f32.mrb[36].mxu0 }
0x159a   : > { %v2612_v42 = vpop.f32.mrb[37].mxu0  ;;  %v2621_v9 = vadd.f32 %v3998_v41, %v4723_v30 }
0x159b   : > { %v2613_v43 = vadd.f32 %v2612_v42, %v4723_v30  ;;  %v3999_v44 = vpop.f32.mrb[38].mxu0 }
0x159c   : > { %v2615_v45 = vpop.f32.mrb[39].mxu0  ;;  %v2632_v50 = vsel %vm1021_vm7, %v2621_v9, -inf }
0x159d   : > { %v2616_v47 = vadd.f32 %v2615_v45, %v4723_v30  ;;  %v2626_v48 = vsel %vm1021_vm7, %v2613_v43, -inf }
0x159e   : > { %2627 = vmax.xlane.f32.xlu0 %v2626_v48 }
0x159f   : > { %v2629_v49 = vsel %vm1021_vm7, %v2616_v47, -inf }
0x15a0   : > { %2630 = vmax.xlane.f32.xlu1 %v2629_v49 }
0x15a2   : > { %2633 = vmax.xlane.f32.xlu0 %v2632_v50 }
0x162b   : > { %v2628_v25 = vpop.xlane.xlu0 %2627 }
0x162c   : > { %v2635_v51 = vsub.f32 %v2613_v43, %v2628_v25 }
0x162d   : > { %v2631_v54 = vpop.xlane.xlu1 %2630 }
0x162e   : > { %v2638_v55 = vmul.f32 1.442695, %v2635_v51  ;;  %v2636_v56 = vsub.f32 %v2616_v47, %v2631_v54 }
0x162f   : > { %v2634_v26 = vpop.xlane.xlu0 %2633 }
0x1630   : > { %4325 = vpow2.f32 %v2638_v55  ;;  %v2640_v57 = vmul.f32 1.442695, %v2636_v56  ;;  %v2637_v60 = vsub.f32 %v2621_v9, %v2634_v26 }
0x1632   : > { %4327 = vpow2.f32 %v2640_v57  ;;  %v2642_v28 = vmul.f32 1.442695, %v2637_v60 }
0x1634   : > { %4329 = vpow2.f32 %v2642_v28 }
0x163a   : > { %v4326_v0 = vpop.eup %4325 }
0x163b   : > { %v2644_v29 = vsel %vm1021_vm7, %v4326_v0, 0.0 }
0x163c   : > { %v4328_v4 = vpop.eup %4327  ;;  %2645 = vadd.xlane.f32.xlu0 %v2644_v29 }
0x163d   : > { %v2647_v6 = vsel %vm1021_vm7, %v4328_v4, 0.0 }
0x163e   : > { %v4330_v5 = vpop.eup %4329 }
0x163f   : > { %v2650_v7 = vsel %vm1021_vm7, %v4330_v5, 0.0 }
0x1640   : > { %2648 = vadd.xlane.f32.xlu0 %v2647_v6  ;;  %2651 = vadd.xlane.f32.xlu1 %v2650_v7 }
0x1651   : > { %2663 = vrot.lane.b32.xlu1 %v5010_v46, %s5460_s4 }
0x1655   : > { %2727 = vrot.lane.b32.xlu1 %v5014_v23, %s5461_s24 }
0x1656   : > { %2661 = vrot.lane.b32.xlu0 %v5014_v23, %s5460_s4  ;;  %s5466_s4 = smov 24  }
0x1659   : > { %2729 = vrot.lane.b32.xlu1 %v5010_v46, %s5461_s24 }
0x165a   : > { %2723 = vrot.lane.b32.xlu0 %v5014_v23, %s5462_s27 }
0x165d   : > { %2725 = vrot.lane.b32.xlu1 %v5010_v46, %s5462_s27 }
0x16c9   : > { %v2646_v8 = vpop.xlane.xlu0 %2645 }
0x16ca   : > { %4331 = vrcp.f32 %v2646_v8 }
0x16cd   : > { %v2652_v10 = vpop.xlane.xlu1 %2651  ;;  %v2649_v11 = vpop.xlane.xlu0 %2648 }
0x16ce   : > { %4333 = vrcp.f32 %v2652_v10 }
0x16cf   : > { %4335 = vrcp.f32 %v2649_v11 }
0x16d1   : > { %v2664_v12 = vpop.permute.xlu1 %2663  ;;  %v2662_v14 = vpop.permute.xlu0 %2661 }
0x16d2   : > { %4000 = vmatprep.subr.bf16.mxu1 %v2662_v14  ;;  %v2673_v61 = vsel %vm1068_vm8, %v2664_v12, 0 }
0x16d3   : > { %4001 = vmatpush3.bf16.msra.mxu1 %v2662_v14 }
0x16d4   : > { %4096 = vmatprep.subr.msk.bf16.mxu1 %vm1068_vm8, %v2664_v12  ;;  %v4332_v59 = vpop.eup %4331 }
0x16d5   : > { %v2728_v15 = vpop.permute.xlu1 %2727  ;;  %v2654_v18 = vmul.f32 %v4332_v59, %v4326_v0  ;;  %v2724_v34 = vpop.permute.xlu0 %2723 }
0x16d6   : > { %v2738_v32 = vsel %vm960_vm5, %v2728_v15, 0 }
0x16d7   : > { %4003 = vmatpush3.bf16.msra.mxu1 %v2673_v61 }
0x16d8   : > { %v4334_v16 = vpop.eup %4333  ;;  %4097 = vmatprep.subr.msk.bf16.mxu1 %vm960_vm5, %v2728_v15 }
0x16d9   : > { %v4336_v58 = vpop.eup %4335  ;;  %v2658_v17 = vmul.f32 %v4334_v16, %v4330_v5  ;;  %v2730_v21 = vpop.permute.xlu1 %2729  ;;  %v4207_v16 = vld [vmem:[%s5372_s9 + $0x10] sm:$0xff]  }
0x16da   : > { %v2656_v20 = vmul.f32 %v4336_v58, %v4328_v4  ;;  %v2741_v22 = vsel %vm960_vm5, %v2730_v21, 0  ;;  %v4208_v58 = vld [vmem:[%s5372_s9 + $0x18] sm:$0xff]  }
0x16db   : > { %v2660_v24 = vpack.c.bf16 %v2658_v17, %v2658_v17 }
0x16dc   : > { %v2659_v27 = vpack.c.bf16 %v2656_v20, %v2654_v18 }
0x16dd   : > { %v2726_v36 = vpop.permute.xlu1 %2725 }
0x16de   : > { %4004 = vmatprep.mubr.msk.bf16.mxu1 %vm1021_vm7, %v2659_v27 }
0x16df   : > { %4005 = vmatmul.mubr.msk.bf16.vlgmr.msra.gmra.mrb[36].mxu1 %vm1021_vm7, %v2660_v24 }
0x16e0   : > { %4012 = vmatprep.mubr.msk.bf16.mxu1 %vm960_vm5, %v2724_v34  ;;  %4009 = vmatpush3.bf16.xpose.msra.mxu1 %v2738_v32 }
0x16e1   : > { %4098 = vmatprep.subr.msk.bf16.mxu1 %vm960_vm5, %v2730_v21 }
0x16e8   : > { %4011 = vmatpush3.bf16.xpose.msra.mxu1 %v2741_v22 }
0x16ef   : > { %4013 = vmatmul.mubr.msk.bf16.vlgmr.msra.gmra.mrb[40].mxu1 %vm960_vm5, %v2726_v36 }
0x17b2   : > { %v4006_v37 = vpop.f32.mrb[36].mxu1 }
0x17b3   : > { %v2709_v63 = vpop.f32.mrb[37].mxu1 }
0x17b4   : > { %v4007_v62 = vpop.f32.mrb[38].mxu1 }
0x17b5   : > { %v2712_v38 = vpop.f32.mrb[39].mxu1 }
0x17b6   : > { %v4177_v41 = vpack.i.bf16 %v2712_v38, %v2709_v63 }
0x17c2   : > { %v4014_v42 = vpop.f32.mrb[40].mxu1 }
0x17c3   : > { %v2777_v43 = vpop.f32.mrb[41].mxu1  ;;  %v2786_v47 = vadd.f32 %v4014_v42, %v4723_v30 }
0x17c4   : > { %v2778_v44 = vadd.f32 %v2777_v43, %v4723_v30  ;;  %v4015_v45 = vpop.f32.mrb[42].mxu1 }
0x17c5   : > { %v2780_v9 = vpop.f32.mrb[43].mxu1  ;;  %v2797_v25 = vsel %vm1021_vm7, %v2786_v47, -inf }
0x17c6   : > { %v2781_v48 = vadd.f32 %v2780_v9, %v4723_v30  ;;  %v2791_v49 = vsel %vm1021_vm7, %v2778_v44, -inf }
0x17c7   : > { %2792 = vmax.xlane.f32.xlu0 %v2791_v49 }
0x17c8   : > { %v2794_v50 = vsel %vm1021_vm7, %v2781_v48, -inf }
0x17c9   : > { %2795 = vmax.xlane.f32.xlu1 %v2794_v50 }
0x17cb   : > { %2798 = vmax.xlane.f32.xlu0 %v2797_v25 }
0x1854   : > { %v2793_v51 = vpop.xlane.xlu0 %2792 }
0x1855   : > { %v2800_v54 = vsub.f32 %v2778_v44, %v2793_v51 }
0x1856   : > { %v2796_v55 = vpop.xlane.xlu1 %2795 }
0x1857   : > { %v2803_v56 = vmul.f32 1.442695, %v2800_v54  ;;  %v2801_v26 = vsub.f32 %v2781_v48, %v2796_v55 }
0x1858   : > { %v2799_v57 = vpop.xlane.xlu0 %2798 }
0x1859   : > { %4337 = vpow2.f32 %v2803_v56  ;;  %v2805_v60 = vmul.f32 1.442695, %v2801_v26  ;;  %v2802_v28 = vsub.f32 %v2786_v47, %v2799_v57 }
0x185b   : > { %4339 = vpow2.f32 %v2805_v60  ;;  %v2807_v30 = vmul.f32 1.442695, %v2802_v28 }
0x185d   : > { %4341 = vpow2.f32 %v2807_v30 }
0x1863   : > { %v4338_v0 = vpop.eup %4337 }
0x1864   : > { %v2809_v29 = vsel %vm1021_vm7, %v4338_v0, 0.0 }
0x1865   : > { %v4340_v4 = vpop.eup %4339  ;;  %2810 = vadd.xlane.f32.xlu0 %v2809_v29 }
0x1866   : > { %v2812_v6 = vsel %vm1021_vm7, %v4340_v4, 0.0 }
0x1867   : > { %v4342_v5 = vpop.eup %4341 }
0x1868   : > { %v2815_v7 = vsel %vm1021_vm7, %v4342_v5, 0.0 }
0x1869   : > { %2813 = vadd.xlane.f32.xlu0 %v2812_v6  ;;  %2816 = vadd.xlane.f32.xlu1 %v2815_v7 }
0x187a   : > { %2828 = vrot.lane.b32.xlu1 %v5010_v46, %s5463_s2 }
0x187e   : > { %4173 = vrot.lane.b32.xlu1 %v4172_v40, %s5464_s6 }
0x187f   : > { %2826 = vrot.lane.b32.xlu0 %v5014_v23, %s5463_s2 }
0x1882   : > { %2895 = vrot.lane.b32.xlu1 %v5106_v33, %s5464_s6 }
0x1883   : > { %4178 = vrot.lane.b32.xlu0 %v4177_v41, %s5465_s3 }
0x1886   : > { %2907 = vrot.lane.b32.xlu1 %v4006_v37, %s5465_s3  ;;  %s701_s3 = sand.u32 1, %s4423_s30  }
0x1887   : > { %s702_s24 = scalar_lea.vmem [#allocation3], %s701_s3  ;;  %s3503_s25 = scalar_lea.sflag [#allocation4], %s701_s3 }
0x1888   : > { %s3515_s27 = sshll.u32 %s702_s24, 4  ;;  %s5323_s27 = int_to_ptr.vmem [resolvable:$true] %s3515_s27 }
0x18f2   : > { %v2811_v8 = vpop.xlane.xlu0 %2810 }
0x18f3   : > { %4343 = vrcp.f32 %v2811_v8 }
0x18f6   : > { %v2817_v10 = vpop.xlane.xlu1 %2816  ;;  %v2814_v11 = vpop.xlane.xlu0 %2813 }
0x18f7   : > { %4345 = vrcp.f32 %v2817_v10 }
0x18f8   : > { %4347 = vrcp.f32 %v2814_v11 }
0x18fa   : > { %v2827_v46 = vpop.permute.xlu0 %2826  ;;  %v2829_v3 = vpop.permute.xlu1 %2828 }
0x18fb   : > { %4016 = vmatprep.subr.bf16.mxu0 %v2827_v46  ;;  %v2838_v23 = vsel %vm1068_vm8, %v2829_v3, 0 }
0x18fc   : > { %4017 = vmatpush3.bf16.msra.mxu0 %v2827_v46 }
0x18fd   : > { %4099 = vmatprep.subr.msk.bf16.mxu0 %vm1068_vm8, %v2829_v3  ;;  %v4344_v39 = vpop.eup %4343 }
0x18fe   : > { %v2819_v14 = vmul.f32 %v4344_v39, %v4338_v0  ;;  %v4174_v32 = vpop.permute.xlu1 %4173  ;;  %v4179_v36 = vpop.permute.xlu0 %4178 }
0x18ff   : > { %v4176_v21 = vunpack.i.h.bf16 %v4174_v32  ;;  %v4175_v22 = vunpack.i.l.bf16 %v4174_v32  ;;  %v4181_v63 = vunpack.i.h.bf16 %v4179_v36  ;;  %v4180_v62 = vunpack.i.l.bf16 %v4179_v36 }
0x1900   : > { %4019 = vmatpush3.bf16.msra.mxu0 %v2838_v23 }
0x1901   : > { %v4346_v33 = vpop.eup %4345  ;;  %4024 = vmatprep.subr.bf16.mxu0 %v4207_v16  ;;  %v2925_v38 = vsel %vm960_vm5, %v5104_v2, %v4176_v21  ;;  %v2924_v41 = vsel %vm960_vm5, %v5102_v31, %v4175_v22  ;;  %v3668_v22 = vld [vmem:[%s5374_s11 + $0x1] ss:$0 sm:$0xff] }
0x1902   : > { %v4348_v40 = vpop.eup %4347  ;;  %v2823_v12 = vmul.f32 %v4346_v33, %v4342_v5  ;;  %v2896_v34 = vpop.permute.xlu1 %2895  ;;  %v2928_v48 = vsel %vm1654_vm9, %v2925_v38, %v4181_v63  ;;  %v2927_v49 = vsel %vm1654_vm9, %v2924_v41, %v4180_v62  ;;  %v3669_v41 = vld [vmem:[%s5375_s12 + $0x1] ss:$0 sm:$0xff] }
0x1903   : > { %v2821_v61 = vmul.f32 %v4348_v40, %v4340_v4  ;;  %v2926_v43 = vsel %vm960_vm5, %v5100_v13, %v2896_v34  ;;  %v3661_v13 = vld [vmem:[%s5373_s10 + $0x1] ss:$0 sm:$0xff] }
0x1904   : > { %v2825_v59 = vpack.c.bf16 %v2823_v12, %v2823_v12 }
0x1905   : > { %v2824_v15 = vpack.c.bf16 %v2821_v61, %v2819_v14  ;;  %v4209_v61 = vld [vmem:[%s5376_s13 + $0x10] sm:$0xff]  }
0x1906   : > { %v2908_v37 = vpop.permute.xlu1 %2907  ;;  %4032 = vmatprep.subr.bf16.mxu1 %v4209_v61 }
0x1907   : > { %4020 = vmatprep.mubr.msk.bf16.mxu0 %vm1021_vm7, %v2824_v15  ;;  %v2929_v45 = vsel %vm1654_vm9, %v2926_v43, %v2908_v37  ;;  %4033 = vmatpush3.bf16.msra.mxu1 %v4209_v61 }
0x1908   : > { %4021 = vmatmul.mubr.msk.bf16.vlgmr.msra.gmra.mrb[40].mxu0 %vm1021_vm7, %v2825_v59  ;;  %v4210_v59 = vld [vmem:[%s5376_s13 + $0x18] sm:$0xff]  }
0x1909   : > { %4025 = vmatpush3.bf16.msra.mxu0 %v4207_v16  ;;  %4034 = vmatprep.subr.bf16.mxu1 %v4210_v59 }
0x190a   : > { %4026 = vmatprep.subr.bf16.mxu0 %v4208_v58 }
0x190b   : > { %4035 = vmatpush3.bf16.msra.mxu1 %v4210_v59 }
0x190c   : > { %4060 = vmatprep.subr.bf16.mxu1 %v4433_v1 }
0x190d   : > { %4027 = vmatpush3.bf16.msra.mxu0 %v4208_v58 }
0x19db   : > { %v4022_v17 = vpop.f32.mrb[40].mxu0 }
0x19dc   : > { %2919 = vrot.lane.b32.xlu1 %v4022_v17, %s5466_s4  ;;  %v2874_v18 = vpop.f32.mrb[41].mxu0 }
0x19dd   : > { %v4023_v20 = vpop.f32.mrb[42].mxu0 }
0x19de   : > { %v2877_v24 = vpop.f32.mrb[43].mxu0 }
0x19df   : > { %v4182_v27 = vpack.i.bf16 %v2877_v24, %v2874_v18 }
0x19e1   : > { %4183 = vrot.lane.b32.xlu0 %v4182_v27, %s5466_s4  ;;  %s3712_s4 = sshll.u32 %s4593_s5, 4  ;;  %s4369_s5 = scalar_lea.vmem %s5323_s27, 16 }
0x19e2   : > { %s5321_s8 = scalar_lea.hbm %s5469_s0, %s3712_s4  ;;  %p4370_p11 = scmp.ne.s32.totalorder %s5323_s27, %s4369_s5 }
0x19e4   : > { %p4371_p12 = pnand %p4370_p11, %p4610_p5 }
0x19e6   : > { %p4372_p13 = pneg %p4371_p12 }
0x1a4e   : > { %v2920_v42 = vpop.permute.xlu1 %2919 }
0x1a4f   : > { %v2932_v50 = vsel %vm1021_vm7, %v2929_v45, %v2920_v42 }
0x1a50   : > { %v2934_v51 = vpack.c.bf16 %v2932_v50, %v2932_v50  ;;  %v4212_v50 = vld [vmem:[%s5378_s15 + $0x48] sm:$0xff]  }
0x1a53   : > { %v4184_v44 = vpop.permute.xlu0 %4183 }
0x1a54   : > { %v4186_v9 = vunpack.i.h.bf16 %v4184_v44  ;;  %v4185_v47 = vunpack.i.l.bf16 %v4184_v44 }
0x1a56   : > { %v2930_v2 = vsel %vm1021_vm7, %v2927_v49, %v4185_v47  ;;  %v2931_v25 = vsel %vm1021_vm7, %v2928_v48, %v4186_v9  ;;  %v4211_v49 = vld [vmem:[%s5378_s15 + $0x40] sm:$0xff]  }
0x1a57   : > { %v2933_v31 = vpack.c.bf16 %v2931_v25, %v2930_v2  ;;  %4040 = vmatprep.subr.bf16.mxu0 %v4211_v49  ;;  %v4213_v2 = vld [vmem:[%s5378_s15 + $0x50] sm:$0xff]   ;;  %v4214_v25 = vld [vmem:[%s5378_s15 + $0x58] sm:$0xff]  }
0x1a59   : > { %4028 = vmatprep.mubr.msk.bf16.mxu0 %vm801_vm4, %v2933_v31  ;;  %v4215_v31 = vld [vmem:[%s5378_s15 + $0x60] sm:$0xff]  }
0x1a5a   : > { %4029 = vmatmul.mubr.msk.bf16.vlgmr.msra.gmra.mrb[44].mxu0 %vm801_vm4, %v2934_v51  ;;  %v4216_v51 = vld [vmem:[%s5378_s15 + $0x68] sm:$0xff]  }
0x1a5b   : > { %4041 = vmatpush3.bf16.msra.mxu0 %v4211_v49 }
0x1a5c   : > { %4042 = vmatprep.subr.bf16.mxu0 %v4212_v50 }
0x1a5f   : > { %4043 = vmatpush3.bf16.msra.mxu0 %v4212_v50 }
0x1a60   : > { %4044 = vmatprep.subr.bf16.mxu0 %v4213_v2 }
0x1a63   : > { %4045 = vmatpush3.bf16.msra.mxu0 %v4213_v2 }
0x1a64   : > { %4046 = vmatprep.subr.bf16.mxu0 %v4214_v25 }
0x1a67   : > { %4047 = vmatpush3.bf16.msra.mxu0 %v4214_v25 }
0x1a68   : > { %4048 = vmatprep.subr.bf16.mxu0 %v4215_v31 }
0x1a6b   : > { %4049 = vmatpush3.bf16.msra.mxu0 %v4215_v31 }
0x1a6c   : > { %4050 = vmatprep.subr.bf16.mxu0 %v4216_v51 }
0x1a6f   : > { %4051 = vmatpush3.bf16.msra.mxu0 %v4216_v51 }
0x1b2d   : > { %v4030_v54 = vpop.f32.mrb[44].mxu0 }
0x1b2e   : > { %v3000_v55 = vpop.f32.mrb[45].mxu0  ;;  %v3009_v56 = vadd.f32 %v4030_v54, %v3661_v13  ;;  %v4218_v54 = vld [vmem:[%s5378_s15 + $0x78] sm:$0xff]  }
0x1b2f   : > { %v3001_v26 = vadd.f32 %v3661_v13, %v3000_v55  ;;  %v4031_v57 = vpop.f32.mrb[46].mxu0  ;;  %v3675_v55 = vld [vmem:[%s5377_s14 + $0x1] ss:$0 sm:$0xff] }
0x1b30   : > { %v3003_v60 = vpop.f32.mrb[47].mxu0  ;;  %v3016_v0 = vadd.f32 %v3009_v56, %v4976_v52 }
0x1b31   : > { %v5196_v28 = vadd.f32 %v3001_v26, %v4973_v19  ;;  %v3004_v30 = vadd.f32 %v3661_v13, %v3003_v60  ;;  %v4217_v13 = vld [vmem:[%s5378_s15 + $0x70] sm:$0xff]  }
0x1b32   : > { %v3027_v6 = vsel %vm801_vm4, %v3016_v0, 0.0  ;;  %4052 = vmatprep.subr.bf16.mxu0 %v4217_v13 }
0x1b33   : > { %v3015_v29 = vadd.f32 %v3004_v30, %v4979_v53  ;;  %v3021_v4 = vsel %vm801_vm4, %v5196_v28, 0.0  ;;  %4053 = vmatpush3.bf16.msra.mxu0 %v4217_v13 }
0x1b34   : > { %3022 = vadd.xlane.f32.xlu0 %v3021_v4  ;;  %4054 = vmatprep.subr.bf16.mxu0 %v4218_v54 }
0x1b35   : > { %v3024_v5 = vsel %vm801_vm4, %v3015_v29, 0.0 }
0x1b36   : > { %3025 = vadd.xlane.f32.xlu1 %v3024_v5 }
0x1b37   : > { %4055 = vmatpush3.bf16.msra.mxu0 %v4218_v54 }
0x1b38   : > { %3028 = vadd.xlane.f32.xlu0 %v3027_v6 }
0x1bc1   : > { %v3023_v7 = vpop.xlane.xlu0 %3022 }
0x1bc2   : > { %v3030_v8 = vmul.f32 0.03125, %v3023_v7 }
0x1bc3   : > { %v3026_v10 = vpop.xlane.xlu1 %3025 }
0x1bc4   : > { %v3033_v19 = vsub.f32 %v5196_v28, %v3030_v8  ;;  %v3031_v11 = vmul.f32 0.03125, %v3026_v10 }
0x1bc5   : > { %v3029_v46 = vpop.xlane.xlu0 %3028 }
0x1bc6   : > { %v3034_v52 = vsub.f32 %v3015_v29, %v3031_v11  ;;  %v3032_v3 = vmul.f32 0.03125, %v3029_v46  ;;  %v3036_v53 = vmul.f32 %v3033_v19, %v3033_v19 }
0x1bc8   : > { %v3035_v23 = vsub.f32 %v3016_v0, %v3032_v3  ;;  %v3039_v39 = vsel %vm801_vm4, %v3036_v53, 0.0  ;;  %v3037_v33 = vmul.f32 %v3034_v52, %v3034_v52 }
0x1bc9   : > { %3040 = vadd.xlane.f32.xlu0 %v3039_v39 }
0x1bca   : > { %v3038_v40 = vmul.f32 %v3035_v23, %v3035_v23  ;;  %v3042_v12 = vsel %vm801_vm4, %v3037_v33, 0.0 }
0x1bcc   : > { %v3045_v14 = vsel %vm801_vm4, %v3038_v40, 0.0 }
0x1bcd   : > { %3043 = vadd.xlane.f32.xlu0 %v3042_v12  ;;  %3046 = vadd.xlane.f32.xlu1 %v3045_v14 }
0x1c56   : > { %v3041_v15 = vpop.xlane.xlu0 %3040 }
0x1c57   : > { %v3048_v16 = vmul.f32 0.03125, %v3041_v15 }
0x1c59   : > { %v3051_v58 = vadd.f32 1e-05, %v3048_v16 }
0x1c5a   : > { %v3047_v17 = vpop.xlane.xlu1 %3046  ;;  %v3044_v18 = vpop.xlane.xlu0 %3043 }
0x1c5b   : > { %4349 = vrsqrt.f32 %v3051_v58  ;;  %v3050_v20 = vmul.f32 0.03125, %v3047_v17  ;;  %v3049_v24 = vmul.f32 0.03125, %v3044_v18 }
0x1c5d   : > { %v3053_v27 = vadd.f32 1e-05, %v3050_v20  ;;  %v3052_v32 = vadd.f32 1e-05, %v3049_v24 }
0x1c5f   : > { %4351 = vrsqrt.f32 %v3053_v27 }
0x1c60   : > { %4353 = vrsqrt.f32 %v3052_v32 }
0x1c65   : > { %v4350_v34 = vpop.eup %4349 }
0x1c66   : > { %v3057_v21 = vmul.f32 %v4350_v34, %v3033_v19 }
0x1c68   : > { %v3066_v38 = vmul.f32 %v3668_v22, %v3057_v21 }
0x1c69   : > { %v4352_v36 = vpop.eup %4351 }
0x1c6a   : > { %v4354_v37 = vpop.eup %4353  ;;  %v3059_v63 = vmul.f32 %v4352_v36, %v3035_v23  ;;  %v3075_v45 = vadd.f32 %v3669_v41, %v3066_v38 }
0x1c6b   : > { %v3058_v62 = vmul.f32 %v4354_v37, %v3034_v52 }
0x1c6c   : > { %v3068_v42 = vmul.f32 %v3668_v22, %v3059_v63 }
0x1c6d   : > { %v3067_v43 = vmul.f32 %v3668_v22, %v3058_v62 }
0x1c6e   : > { %v3077_v44 = vadd.f32 %v3669_v41, %v3068_v42 }
0x1c6f   : > { %v3076_v9 = vadd.f32 %v3669_v41, %v3067_v43 }
0x1c70   : > { %v3079_v47 = vpack.c.bf16 %v3077_v44, %v3077_v44 }
0x1c71   : > { %v3078_v48 = vpack.c.bf16 %v3076_v9, %v3075_v45 }
0x1c73   : > { %4036 = vmatprep.mubr.msk.bf16.mxu1 %vm801_vm4, %v3078_v48 }
0x1c74   : > { %4037 = vmatmul.mubr.msk.bf16.vlgmr.msra.gmra.mrb[44].mxu1 %vm801_vm4, %v3079_v47 }
0x1c75   : > { %4064 = vmatprep.mubr.msk.bf16.mxu1 %vm4434_vm0, %v4433_v1 }
0x1d47   : > { %v4038_v56 = vpop.f32.mrb[44].mxu1 }
0x1d48   : > { %v5252_v26 = vadd.f32 %v4038_v56, %v3675_v55  ;;  %v3145_v57 = vpop.f32.mrb[45].mxu1 }
0x1d49   : > { %v5254_v60 = vadd.f32 %v3675_v55, %v3145_v57  ;;  %v4039_v30 = vpop.f32.mrb[46].mxu1 }
0x1d4a   : > { %v5257_v0 = vmul.f32 0.70710677, %v5252_v26  ;;  %v3148_v29 = vpop.f32.mrb[47].mxu1 }
0x1d4b   : > { %v5260_v4 = vmul.f32 0.70710677, %v5254_v60  ;;  %v5262_v5 = vadd.f32 %v3675_v55, %v3148_v29 }
0x1d4c   : > { %v3173_v6 = vand.u32 2147483647, %v5257_v0  ;;  %vm3167_vm13 = vcmp.ge.f32.partialorder %v5257_v0, 0.0 }
0x1d4d   : > { %v3171_v7 = vand.u32 2147483647, %v5260_v4  ;;  %v5267_v10 = vmul.f32 0.70710677, %v5262_v5  ;;  %vm3165_vm14 = vcmp.ge.f32.partialorder %v5260_v4, 0.0  ;;  %v3170_v29 = vsel %vm3167_vm13, 1.0, %v4450_v35 }
0x1d4e   : > { %v3176_v8 = vmul.f32 0.3275911, %v3173_v6  ;;  %v3215_v23 = vsub.f32 0.0, %v3173_v6 }
0x1d4f   : > { %v3174_v19 = vmul.f32 0.3275911, %v3171_v7  ;;  %v3172_v46 = vand.u32 2147483647, %v5267_v10  ;;  %v3213_v39 = vsub.f32 0.0, %v3171_v7  ;;  %vm3166_vm15 = vcmp.ge.f32.partialorder %v5267_v10, 0.0 }
0x1d50   : > { %v3179_v11 = vadd.f32 1.0, %v3176_v8  ;;  %v3218_v40 = vmul.f32 %v3215_v23, %v3173_v6  ;;  %v3168_v8 = vsel %vm3165_vm14, 1.0, %v4450_v35  ;;  %v3159_v23 = vmul.f32 0.5, %v5254_v60 }
0x1d51   : > { %v3177_v52 = vadd.f32 1.0, %v3174_v19  ;;  %v3175_v3 = vmul.f32 0.3275911, %v3172_v46  ;;  %v3214_v12 = vsub.f32 0.0, %v3172_v46  ;;  %v3216_v59 = vmul.f32 %v3213_v39, %v3171_v7 }
0x1d52   : > { %4355 = vrcp.f32 %v3179_v11  ;;  %v3223_v17 = vmul.f32 1.442695, %v3218_v40  ;;  %v3160_v39 = vmul.f32 0.5, %v5262_v5 }
0x1d53   : > { %4357 = vrcp.f32 %v3177_v52  ;;  %v3178_v53 = vadd.f32 1.0, %v3175_v3  ;;  %v3217_v20 = vmul.f32 %v3214_v12, %v3172_v46  ;;  %v3219_v27 = vmul.f32 1.442695, %v3216_v59 }
0x1d54   : > { %v3169_v52 = vsel %vm3166_vm15, 1.0, %v4450_v35  ;;  %v3697_v35 = vld [vmem:[%s5379_s16 + $0x1] ss:$0 sm:$0xff] }
0x1d55   : > { %4359 = vrcp.f32 %v3178_v53  ;;  %v3221_v37 = vmul.f32 1.442695, %v3217_v20  ;;  %v3161_v53 = vmul.f32 0.5, %v5252_v26 }
0x1d56   : > { %4361 = vpow2.f32 %v3223_v17 }
0x1d57   : > { %4363 = vpow2.f32 %v3219_v27 }
0x1d58   : > { %4365 = vpow2.f32 %v3221_v37  ;;  %v3362_v37 = vld [vmem:[%s5380_s17] sm:$0x1] }
0x1d5c   : > { %v4356_v33 = vpop.eup %4355 }
0x1d5d   : > { %v4358_v14 = vpop.eup %4357  ;;  %v3188_v61 = vmul.f32 1.0614054, %v4356_v33 }
0x1d5e   : > { %v3186_v15 = vmul.f32 1.0614054, %v4358_v14 }
0x1d5f   : > { %v3191_v16 = vadd.f32 -1.4531521, %v3188_v61  ;;  %v4360_v58 = vpop.eup %4359 }
0x1d60   : > { %v3189_v18 = vadd.f32 -1.4531521, %v3186_v15  ;;  %v3187_v32 = vmul.f32 1.0614054, %v4360_v58  ;;  %v4362_v25 = vpop.eup %4361 }
0x1d61   : > { %v3194_v24 = vmul.f32 %v4356_v33, %v3191_v16  ;;  %v4364_v51 = vpop.eup %4363 }
0x1d62   : > { %v3192_v34 = vmul.f32 %v4358_v14, %v3189_v18  ;;  %v3190_v22 = vadd.f32 -1.4531521, %v3187_v32  ;;  %v4366_v30 = vpop.eup %4365  ;;  %v4219_v32 = vld [vmem:[%s5382_s19] sm:$0xff]  }
0x1d63   : > { %v3197_v21 = vadd.f32 1.4214138, %v3194_v24  ;;  %4061 = vmatpush3.bf16.msra.mxu1 %v4219_v32 }
0x1d64   : > { %v3195_v36 = vadd.f32 1.4214138, %v3192_v34  ;;  %v3193_v62 = vmul.f32 %v4360_v58, %v3190_v22  ;;  %4062 = vmatprep.subr.bf16.mxu1 %v4433_v1 }
0x1d65   : > { %v3200_v63 = vmul.f32 %v4356_v33, %v3197_v21 }
0x1d66   : > { %v3198_v38 = vmul.f32 %v4358_v14, %v3195_v36  ;;  %v3196_v42 = vadd.f32 1.4214138, %v3193_v62  ;;  %v3363_v62 = vld [vmem:[%s5381_s18] sm:$0x1] }
0x1d67   : > { %v3203_v41 = vadd.f32 -0.28449672, %v3200_v63 }
0x1d68   : > { %v3201_v43 = vadd.f32 -0.28449672, %v3198_v38  ;;  %v3199_v45 = vmul.f32 %v4360_v58, %v3196_v42  ;;  %v4221_v42 = vld [vmem:[%s5384_s21] sm:$0xff]  }
0x1d69   : > { %v3206_v44 = vmul.f32 %v4356_v33, %v3203_v41 }
0x1d6a   : > { %v3204_v9 = vmul.f32 %v4358_v14, %v3201_v43  ;;  %v3202_v48 = vadd.f32 -0.28449672, %v3199_v45  ;;  %v3384_v45 = vld [vmem:[%s5383_s20] sm:$0x1] }
0x1d6b   : > { %v3209_v47 = vadd.f32 0.2548296, %v3206_v44  ;;  %v4222_v44 = vld [vmem:[%s5384_s21 + $0x8] sm:$0xff]  }
0x1d6c   : > { %v3207_v49 = vadd.f32 0.2548296, %v3204_v9  ;;  %v3205_v2 = vmul.f32 %v4360_v58, %v3202_v48 }
0x1d6d   : > { %v3212_v50 = vmul.f32 %v4356_v33, %v3209_v47 }
0x1d6e   : > { %v3210_v31 = vmul.f32 %v4358_v14, %v3207_v49  ;;  %v3208_v54 = vadd.f32 0.2548296, %v3205_v2 }
0x1d6f   : > { %v3227_v13 = vmul.f32 %v4362_v25, %v3212_v50 }
0x1d70   : > { %v3225_v55 = vmul.f32 %v4364_v51, %v3210_v31  ;;  %v3211_v57 = vmul.f32 %v4360_v58, %v3208_v54 }
0x1d71   : > { %v3230_v56 = vsub.f32 1.0, %v3227_v13 }
0x1d72   : > { %v3228_v6 = vsub.f32 1.0, %v3225_v55  ;;  %v3226_v19 = vmul.f32 %v4366_v30, %v3211_v57 }
0x1d73   : > { %v3233_v7 = vmul.f32 %v3230_v56, %v3170_v29 }
0x1d74   : > { %v3231_v11 = vmul.f32 %v3228_v6, %v3168_v8  ;;  %v3229_v46 = vsub.f32 1.0, %v3226_v19 }
0x1d75   : > { %v3236_v0 = vadd.f32 1.0, %v3233_v7 }
0x1d76   : > { %v3234_v3 = vadd.f32 1.0, %v3231_v11  ;;  %v3232_v4 = vmul.f32 %v3229_v46, %v3169_v52 }
0x1d77   : > { %v3239_v40 = vmul.f32 %v3236_v0, %v3161_v53 }
0x1d78   : > { %v3235_v33 = vadd.f32 1.0, %v3232_v4  ;;  %v3237_v12 = vmul.f32 %v3234_v3, %v3159_v23 }
0x1d79   : > { %v3241_v10 = vpack.c.bf16 %v3239_v40, %v3239_v40 }
0x1d7a   : > { %v3238_v14 = vmul.f32 %v3235_v33, %v3160_v39 }
0x1d7c   : > { %v3240_v61 = vpack.c.bf16 %v3238_v14, %v3237_v12 }
0x1d7e   : > { %4056 = vmatprep.mubr.bf16.mxu0 %v3240_v61 }
0x1d7f   : > { %4057 = vmatmul.mubr.bf16.vlgmr.msra.gmra.mrb[48].mxu0 %v3241_v10 }
0x1e52   : > { %v4058_v59 = vpop.f32.mrb[48].mxu0 }
0x1e53   : > { %v3349_v15 = vpop.f32.mrb[49].mxu0 }
0x1e54   : > { %v3350_v16 = vadd.f32 %v3697_v35, %v3349_v15  ;;  %v4059_v26 = vpop.f32.mrb[50].mxu0 }
0x1e55   : > { %v3352_v58 = vpop.f32.mrb[51].mxu0 }
0x1e56   : > { %v3361_v60 = vadd.f32 %v3350_v16, %v5196_v28  ;;  %v4220_v28 = vld [vmem:[%s5382_s19 + $0x8] sm:$0xff]  }
0x1e57   : > { %4063 = vmatpush3.bf16.msra.mxu1 %v4220_v28 }
0x1e58   : > { %v3364_v5 = vsel %vm795_vm2, %v3361_v60, 0.0  ;;  %4068 = vmatprep.subr.bf16.mxu1 %v4433_v1 }
0x1e59   : > { %3365 = vadd.xlane.f32.xlu0 %v3364_v5 }
0x1ee6   : > { %v3366_v17 = vpop.xlane.xlu0 %3365 }
0x1ee7   : > { %v3367_v18 = vmul.f32 0.03125, %v3366_v17 }
0x1ee9   : > { %v3368_v20 = vsub.f32 %v3361_v60, %v3367_v18 }
0x1eeb   : > { %v3369_v24 = vmul.f32 %v3368_v20, %v3368_v20 }
0x1eed   : > { %v3370_v27 = vsel %vm795_vm2, %v3369_v24, 0.0 }
0x1eee   : > { %3371 = vadd.xlane.f32.xlu1 %v3370_v27 }
0x1f7b   : > { %v3372_v34 = vpop.xlane.xlu1 %3371 }
0x1f7c   : > { %v3373_v21 = vmul.f32 0.03125, %v3372_v34 }
0x1f7e   : > { %v3374_v22 = vadd.f32 1e-05, %v3373_v21 }
0x1f80   : > { %4367 = vrsqrt.f32 %v3374_v22 }
0x1f8a   : > { %v4368_v36 = vpop.eup %4367 }
0x1f8b   : > { %v3376_v63 = vmul.f32 %v4368_v36, %v3368_v20 }
0x1f8d   : > { %v3377_v38 = vmul.f32 %v3376_v63, %v3362_v37 }
0x1f8f   : > { %v3378_v41 = vadd.f32 %v3377_v38, %v3363_v62 }
0x1f91   : > { %v3379_v43 = vpack.c.bf16 %v3378_v41, %v3378_v41 }
0x1f93   : > { %4065 = vmatmul.mubr.msk.bf16.vlgmr.msra.gmra.mrb[48].mxu1 %vm801_vm4, %v3379_v43 }
0x1f94   : > { %4069 = vmatpush3.bf16.msra.mxu1 %v4221_v42  ;;  %4072 = vmatprep.mubr.msk.bf16.mxu1 %vm4434_vm0, %v4433_v1 }
0x1f95   : > { %4070 = vmatprep.subr.bf16.mxu1 %v4433_v1  ;;  %v3445_v1 = vld [vmem:[%s5467_s1] sm:$0x1]  ;;  %s4373_s1 = sshll.u32 %s4451_s7, 4  ;;  %s4374_s1 = int_to_ptr.vmem [resolvable:$false] %s4373_s1 }
0x1f96   : > { %s4375_s2 = scalar_lea.vmem %s4374_s1, 32  ;;  %p4376_p0 = scmp.lt.s32.totalorder %s5323_s27, %s4374_s1 }
0x1f97   : > { %p4377_p1 = scmp.lt.s32.totalorder %s4375_s2, %s4369_s5 }
0x1f98   : > { %4071 = vmatpush3.bf16.msra.mxu1 %v4222_v44 }
0x1f99   : > { %p4378_p2 = por %p4377_p1, %p4376_p0 }
0x1f9b   : > { %p4379_p3 = pnand %p4378_p2, %p4372_p13 }
0x2066   : > { %v3434_v9 = vpop.f32.mrb[48].mxu1 }
0x2067   : > { %v3435_v47 = vadd.f32 %v3434_v9, %v3384_v45  ;;  %v4066_v48 = vpop.f32.mrb[49].mxu1 }
0x2068   : > { %v3437_v49 = vpop.f32.mrb[50].mxu1 }
0x2069   : > { %v3440_v50 = vpack.c.bf16 %v3435_v47, %v3435_v47  ;;  %v4067_v2 = vpop.f32.mrb[51].mxu1 }
0x206b   : > { %4073 = vmatmul.mubr.msk.bf16.vlgmr.msra.gmra.mrb[52].mxu1 %vm801_vm4, %v3440_v50 }
0x213e   : > { %v3495_v25 = vpop.f32.mrb[52].mxu1 }
0x213f   : > { %v3496_v31 = vadd.f32 %v3495_v25, %v3445_v1  ;;  %v4074_v51 = vpop.f32.mrb[53].mxu1 }
0x2140   : > { %v3498_v13 = vpop.f32.mrb[54].mxu1 }
0x2141   : > { %3501 = vst [vmem:[%s702_s24] sm:$0x1] %v3496_v31  ;;  %v4075_v54 = vpop.f32.mrb[55].mxu1 }
0x2142   : > { %4382 = shalt.err (!%p4379_p3)
}
0x2143   : > { %s4383_s3 = scalar_lea.hbm %s5321_s8, 16  ;;  %s4387_s6 = scalar_lea.hbm %s5469_s0, 32 }
0x2144   : > { %p4384_p4 = scmp.ne.s32.totalorder %s5321_s8, %s4383_s3  ;;  %p4388_p9 = scmp.lt.u32.totalorder %s5321_s8, %s5469_s0 }
0x2145   : > { %p4389_p10 = scmp.lt.u32.totalorder %s4387_s6, %s4383_s3  ;;  %p4391_p12 = scmp.lt.u32.totalorder %s4383_s3, %s5321_s8 }
0x2146   : > { %p4385_p7 = pnand %p4384_p4, %p4610_p5 }
0x2147   : > { %p4390_p11 = por %p4389_p10, %p4388_p9 }
0x2148   : > { %p4386_p8 = pneg %p4385_p7 }
0x2149   : > { %p4392_p13 = por %p4391_p12, %p4390_p11 }
0x214b   : > { %p4393_p0 = pnand %p4392_p13, %p4386_p8 }
0x214d   : > { %4396 = shalt.err (!%p4393_p0)
}
0x214e   : > { %4100 = dma.vmem_to_hbm [thread:$0]  (%p4610_p5), %s5323_s27, 16, %s5321_s8, %s3503_s25  }
0x214f PF: > { %s5470_s5 = sld [smem:[#allocation8_spill]]  ;;  %s5471_s2 = sld [smem:[#allocation6_spill]] }
0x2155   : > { %p4106_p1 = scmp.ge.s32.totalorder %s5470_s5, 2  ;;  %s3527_s24 = sand.u32 1, %s5471_s2  }
0x2156   : > { %s3528_s7 = scalar_lea.sflag [#allocation4], %s3527_s24 }
0x2157   : > { %p4103_p2 = pnand %p4106_p1, %p4614_p6 }
0x2159   : > { %4414 = dma.done.wait (!%p4103_p2), %s3528_s7, 16  }
0x215a   : > { %4416 = vsyncadd (!%p4103_p2), %s3528_s7, 4294967280  ;;  %s5473_s25 = sld [smem:[#allocation9_spill]]  ;;  %s5474_s3 = sld [smem:[#allocation7_spill]] }
0x215b   : > { %s5475_s24 = sld [smem:[#allocation10_spill]]  ;;  %s5476_s4 = smov %s4423_s30 }
0x2160   : > { %p33_p3 = scmp.ge.s32.totalorder %s5473_s25, 4   ;;  %s5477_s30 = smov %s5474_s3 }
0x2162   :  { %35 = sbr.rel (!%p33_p3) target bundleno = 15 (0xf), region = 159 }
0x2169   :  { %3532 = vsyncpa [#allocation4], 1 }
0x216a   :  { %3534 = vsyncpa [#allocation4 + $0x1], 1 }

</bundles_post_ra>
